<compile_context>
chip_gen: v6e
topology: v6e:2x2x1
jax: 0.10.0
libtpu: 0.0.40
codegen_flags: <defaults>
</compile_context>

<pallas_src>
import functools

import jax
import jax.numpy as jnp
from jax import lax
from jax.experimental import pallas as pl
from jax.experimental.pallas import tpu as pltpu


def _convlstm_kernel(x_ref, h_ref, c_ref, w_ref, b_ref, h_out_ref, c_out_ref,
                     comb_ref, col_ref, *,
                     H, W, Cx, Ch, KH, KW, ph, pw, left, B_blk):
    """One grid step = B_blk batch elements.

    x_ref     : (B_blk, Cx, H*W)          input, NCHW flattened        (VMEM)
    h_ref     : (B_blk, Ch, H*W)          hidden state                 (VMEM)
    c_ref     : (B_blk, Ch, H*W)          cell state                   (VMEM)
    w_ref     : (KH*KW*Cin, 4*Ch)         conv weights (im2col layout) (VMEM)
    b_ref     : (1, 4*Ch)                 conv bias                    (VMEM)
    outputs   : h_next, c_next            (B_blk, Ch, H*W)  (NCHW, lane-dense)
    comb_ref  : (H+2*ph, left+W+left, Cin) zero-padded NHWC scratch
    col_ref   : (B_blk*H*W, KH*KW*Cin)    im2col scratch
    """
    Cin = Cx + Ch
    HW = H * W

    # Border of the padded buffer must be exactly zero; scratch contents are not
    # guaranteed across (possibly multi-core) grid steps, so clear every step.
    comb_ref[...] = jnp.zeros_like(comb_ref)

    # ---- build im2col: col[(b,y,x), k*Cin + c] = combined_pad[b, y+dy, x+dx, c]
    for b in range(B_blk):
        # NCHW -> channels-on-lanes in-register: (C, H*W) -> (H*W, C)  (XLU).
        x_t = jnp.transpose(x_ref[b].astype(jnp.float32))            # (HW, Cx)
        h_t = jnp.transpose(h_ref[b].astype(jnp.float32))            # (HW, Ch)
        # torch.cat([x, h], dim=channels) + zero "same" padding, fused:
        # interior is written at sublane offset `left` (8-aligned).
        comb_ref[ph:ph + H, left:left + W, 0:Cx] = x_t.reshape(H, W, Cx)
        comb_ref[ph:ph + H, left:left + W, Cx:Cin] = h_t.reshape(H, W, Ch)

        for dy in range(KH):
            for dx in range(KW):
                k = dy * KW + dx
                x0 = left - pw + dx
                patch = comb_ref[dy:dy + H, x0:x0 + W, :]             # (H, W, Cin)
                col_ref[b * HW:(b + 1) * HW, k * Cin:(k + 1) * Cin] = (
                    patch.reshape(HW, Cin))

    # ---- whole conv as a single MXU matmul: (B*HW, K*Cin) @ (K*Cin, 4Ch) ----
    acc = jnp.dot(col_ref[...], w_ref[...].astype(jnp.float32),
                  preferred_element_type=jnp.float32)                 # (B*HW, 4Ch)
    acc = acc + b_ref[...].astype(jnp.float32)                        # bias, once

    # ---- lane-dense gate math: transpose once, then everything at 128 lanes --
    acc_t = jnp.transpose(acc)                                        # (4Ch, B*HW)
    ifo = jax.nn.sigmoid(acc_t[0:3 * Ch, :])                          # i,f,o fused
    g = jnp.tanh(acc_t[3 * Ch:4 * Ch, :])                             # (Ch, B*HW)

    for b in range(B_blk):
        lo, hi = b * HW, (b + 1) * HW
        i_g = ifo[0:Ch, lo:hi]
        f_g = ifo[Ch:2 * Ch, lo:hi]
        o_g = ifo[2 * Ch:3 * Ch, lo:hi]
        c_cur = c_ref[b].astype(jnp.float32)                          # (Ch, HW)
        c_nx = f_g * c_cur + i_g * g[:, lo:hi]
        h_nx = o_g * jnp.tanh(c_nx)
        c_out_ref[b] = c_nx.astype(c_out_ref.dtype)
        h_out_ref[b] = h_nx.astype(h_out_ref.dtype)


def conv_lstm_cell_pallas(x_nchw, h_nchw, c_nchw, weight_oihw, bias_o,
                          kernel_size=(3, 3), batch_block=1):
    """Forward pass identical to ConvLSTMCell.forward. All args NCHW / torch layout."""
    KH, KW = kernel_size
    assert KH % 2 == 1 and KW % 2 == 1, "module uses 'same' padding (odd kernel)"
    ph, pw = KH // 2, KW // 2

    N, Cx, H, W = x_nchw.shape
    Ch = h_nchw.shape[1]
    Cin = Cx + Ch
    four_ch = 4 * Ch
    HW = H * W
    assert weight_oihw.shape == (four_ch, Cin, KH, KW)
    assert N % batch_block == 0

    # Free metadata reshapes only (no transpose / concat / pad in the wrapper).
    x2 = x_nchw.reshape(N, Cx, HW)
    h2 = h_nchw.reshape(N, Ch, HW)
    c2 = c_nchw.reshape(N, Ch, HW)

    # (Cout, Cin, KH, KW) -> (KH*KW*Cin, Cout), matching im2col column order.
    w2 = jnp.transpose(weight_oihw, (2, 3, 1, 0)).reshape(KH * KW * Cin, four_ch)
    b2 = bias_o.reshape(1, four_ch)

    # Padded-combined scratch: interior starts at sublane offset `left` so the
    # per-element scatter store stays sublane-aligned; borders are zero padding.
    left = 8 * ((pw + 7) // 8)
    Hp = H + 2 * ph
    Wpad = left + W + left

    kern = functools.partial(_convlstm_kernel, H=H, W=W, Cx=Cx, Ch=Ch,
                             KH=KH, KW=KW, ph=ph, pw=pw, left=left,
                             B_blk=batch_block)

    out_sds = jax.ShapeDtypeStruct((N, Ch, HW), x_nchw.dtype)

    h_next, c_next = pl.pallas_call(
        kern,
        out_shape=(out_sds, out_sds),
        grid_spec=pltpu.PrefetchScalarGridSpec(
            num_scalar_prefetch=0,
            grid=(N // batch_block,),
            in_specs=[
                pl.BlockSpec((batch_block, Cx, HW), lambda n: (n, 0, 0)),
                pl.BlockSpec((batch_block, Ch, HW), lambda n: (n, 0, 0)),
                pl.BlockSpec((batch_block, Ch, HW), lambda n: (n, 0, 0)),
                pl.BlockSpec((KH * KW * Cin, four_ch), lambda n: (0, 0)),
                pl.BlockSpec((1, four_ch), lambda n: (0, 0)),
            ],
            out_specs=[
                pl.BlockSpec((batch_block, Ch, HW), lambda n: (n, 0, 0)),
                pl.BlockSpec((batch_block, Ch, HW), lambda n: (n, 0, 0)),
            ],
            scratch_shapes=[
                pltpu.VMEM((Hp, Wpad, Cin), jnp.float32),
                pltpu.VMEM((batch_block * HW, KH * KW * Cin), jnp.float32),
            ],
        ),
        compiler_params=pltpu.CompilerParams(
            dimension_semantics=("parallel",),
            vmem_limit_bytes=32 * 1024 * 1024,
        ),
    )(x2, h2, c2, w2, b2)

    # Free reshapes back to NCHW (outputs already channel-major).
    return h_next.reshape(N, Ch, H, W), c_next.reshape(N, Ch, H, W)


def _reference(x_nchw, h_nchw, c_nchw, weight_oihw, bias_o, kernel_size=(3, 3)):
    """Plain-JAX reference mirroring the torch forward (for correctness check)."""
    KH, KW = kernel_size
    combined = jnp.concatenate([x_nchw, h_nchw], axis=1)               # NCHW
    cc = lax.conv_general_dilated(
        combined, weight_oihw,
        window_strides=(1, 1),
        padding=((KH // 2, KH // 2), (KW // 2, KW // 2)),
        dimension_numbers=("NCHW", "OIHW", "NCHW"))
    cc = cc + bias_o[None, :, None, None]
    cc_i, cc_f, cc_o, cc_g = jnp.split(cc, 4, axis=1)
    i = jax.nn.sigmoid(cc_i)
    f = jax.nn.sigmoid(cc_f)
    o = jax.nn.sigmoid(cc_o)
    g = jnp.tanh(cc_g)
    c_next = f * c_nchw + i * g
    h_next = o * jnp.tanh(c_next)
    return h_next, c_next


if __name__ == "__main__":
    # Module config: input_dim=4, hidden_dim=32, kernel_size=(3,3), bias=True
    batch, input_dim, hidden_dim, H, W = 2, 4, 32, 16, 16
    KH, KW = 3, 3
    Cin = input_dim + hidden_dim

    key = jax.random.PRNGKey(0)
    kx, kh, kc, kw_, kb = jax.random.split(key, 5)

    x = jax.random.normal(kx, (batch, input_dim, H, W), dtype=jnp.float32)
    h_cur = jax.random.normal(kh, (batch, hidden_dim, H, W), dtype=jnp.float32)
    c_cur = jax.random.normal(kc, (batch, hidden_dim, H, W), dtype=jnp.float32)

    # Deterministic synthetic conv parameters (shapes from nn.Conv2d in __init__).
    weight = jax.random.normal(kw_, (4 * hidden_dim, Cin, KH, KW),
                               dtype=jnp.float32) * 0.05
    bias = jax.random.normal(kb, (4 * hidden_dim,), dtype=jnp.float32) * 0.05

    # batch_block=1 keeps 2 "parallel" grid steps (feeds both TCs on v7x).
    h_next, c_next = conv_lstm_cell_pallas(x, h_cur, c_cur, weight, bias,
                                           kernel_size=(KH, KW), batch_block=1)
    jax.block_until_ready((h_next, c_next))

    h_ref, c_ref = _reference(x, h_cur, c_cur, weight, bias, kernel_size=(KH, KW))
    assert jnp.allclose(h_next, h_ref, atol=1e-4, rtol=1e-4), "h_next mismatch"
    assert jnp.allclose(c_next, c_ref, atol=1e-4, rtol=1e-4), "c_next mismatch"

    print("KERNEL_OK")
</pallas_src>

<mosaic_0001>
module attributes {stable_mosaic.version = 11 : i64} {
  func.func @_convlstm_kernel(%arg0: i32, %arg1: memref<1x4x256xf32, #tpu.memory_space<vmem>>, %arg2: memref<1x32x256xf32, #tpu.memory_space<vmem>>, %arg3: memref<1x32x256xf32, #tpu.memory_space<vmem>>, %arg4: memref<324x128xf32, #tpu.memory_space<vmem>>, %arg5: memref<1x128xf32, #tpu.memory_space<vmem>>, %arg6: memref<1x32x256xf32, #tpu.memory_space<vmem>>, %arg7: memref<1x32x256xf32, #tpu.memory_space<vmem>>, %arg8: memref<18x32x36xf32, #tpu.memory_space<vmem>>, %arg9: memref<256x324xf32, #tpu.memory_space<vmem>>) attributes {dimension_semantics = [#tpu.dimension_semantics<parallel>], iteration_bounds = array<i64: 2>, scalar_prefetch = 0 : i64, scratch_operands = 2 : i64, tpu.core_type = #tpu.core_type<tc>, window_params = [{transform_indices = @transform_0, window_bounds = array<i64: 1, 4, 256>}, {transform_indices = @transform_1, window_bounds = array<i64: 1, 32, 256>}, {transform_indices = @transform_2, window_bounds = array<i64: 1, 32, 256>}, {pipeline_mode = #tpu.pipeline_mode<synchronous>, transform_indices = @transform_3, window_bounds = array<i64: 324, 128>}, {pipeline_mode = #tpu.pipeline_mode<synchronous>, transform_indices = @transform_4, window_bounds = array<i64: 1, 128>}, {transform_indices = @transform_5, window_bounds = array<i64: 1, 32, 256>}, {transform_indices = @transform_6, window_bounds = array<i64: 1, 32, 256>}]} {
    %cst = arith.constant 0.000000e+00 : f32
    %0 = vector.broadcast %cst : f32 to vector<18x32x36xf32>
    %c0 = arith.constant 0 : index
    %c0_0 = arith.constant 0 : index
    %c0_1 = arith.constant 0 : index
    %1 = vector.load %arg8[%c0, %c0_0, %c0_1] : memref<18x32x36xf32, #tpu.memory_space<vmem>>, vector<18x32x36xf32>
    tpu.vector_store %arg8[%c0, %c0_0, %c0_1], %0 {strides = array<i32>} : memref<18x32x36xf32, #tpu.memory_space<vmem>>, vector<18x32x36xf32>,
    %c0_2 = arith.constant 0 : index
    %c0_3 = arith.constant 0 : index
    %c0_4 = arith.constant 0 : index
    %2 = vector.load %arg1[%c0_2, %c0_3, %c0_4] : memref<1x4x256xf32, #tpu.memory_space<vmem>>, vector<1x4x256xf32>
    %3 = vector.shape_cast %2 : vector<1x4x256xf32> to vector<4x256xf32>
    %4 = tpu.transpose %3, [1, 0] : vector<4x256xf32> -> vector<256x4xf32>
    %c0_5 = arith.constant 0 : index
    %c0_6 = arith.constant 0 : index
    %c0_7 = arith.constant 0 : index
    %5 = vector.load %arg2[%c0_5, %c0_6, %c0_7] : memref<1x32x256xf32, #tpu.memory_space<vmem>>, vector<1x32x256xf32>
    %6 = vector.shape_cast %5 : vector<1x32x256xf32> to vector<32x256xf32>
    %7 = tpu.transpose %6, [1, 0] : vector<32x256xf32> -> vector<256x32xf32>
    %8 = vector.shape_cast %4 : vector<256x4xf32> to vector<16x16x4xf32>
    %c1 = arith.constant 1 : index
    %c8 = arith.constant 8 : index
    %c0_8 = arith.constant 0 : index
    %9 = vector.load %arg8[%c1, %c8, %c0_8] : memref<18x32x36xf32, #tpu.memory_space<vmem>>, vector<16x16x4xf32>
    tpu.vector_store %arg8[%c1, %c8, %c0_8], %8 {strides = array<i32>} : memref<18x32x36xf32, #tpu.memory_space<vmem>>, vector<16x16x4xf32>,
    %10 = vector.shape_cast %7 : vector<256x32xf32> to vector<16x16x32xf32>
    %c1_9 = arith.constant 1 : index
    %c8_10 = arith.constant 8 : index
    %c4 = arith.constant 4 : index
    %11 = vector.load %arg8[%c1_9, %c8_10, %c4] : memref<18x32x36xf32, #tpu.memory_space<vmem>>, vector<16x16x32xf32>
    tpu.vector_store %arg8[%c1_9, %c8_10, %c4], %10 {strides = array<i32>} : memref<18x32x36xf32, #tpu.memory_space<vmem>>, vector<16x16x32xf32>,
    %c0_11 = arith.constant 0 : index
    %c7 = arith.constant 7 : index
    %c0_12 = arith.constant 0 : index
    %12 = vector.load %arg8[%c0_11, %c7, %c0_12] : memref<18x32x36xf32, #tpu.memory_space<vmem>>, vector<16x16x36xf32>
    %13 = vector.shape_cast %12 : vector<16x16x36xf32> to vector<256x36xf32>
    %c0_13 = arith.constant 0 : index
    %c0_14 = arith.constant 0 : index
    %14 = vector.load %arg9[%c0_13, %c0_14] : memref<256x324xf32, #tpu.memory_space<vmem>>, vector<256x36xf32>
    tpu.vector_store %arg9[%c0_13, %c0_14], %13 {strides = array<i32>} : memref<256x324xf32, #tpu.memory_space<vmem>>, vector<256x36xf32>,
    %c0_15 = arith.constant 0 : index
    %c8_16 = arith.constant 8 : index
    %c0_17 = arith.constant 0 : index
    %15 = vector.load %arg8[%c0_15, %c8_16, %c0_17] : memref<18x32x36xf32, #tpu.memory_space<vmem>>, vector<16x16x36xf32>
    %16 = vector.shape_cast %15 : vector<16x16x36xf32> to vector<256x36xf32>
    %c0_18 = arith.constant 0 : index
    %c36 = arith.constant 36 : index
    %17 = vector.load %arg9[%c0_18, %c36] : memref<256x324xf32, #tpu.memory_space<vmem>>, vector<256x36xf32>
    tpu.vector_store %arg9[%c0_18, %c36], %16 {strides = array<i32>} : memref<256x324xf32, #tpu.memory_space<vmem>>, vector<256x36xf32>,
    %c0_19 = arith.constant 0 : index
    %c9 = arith.constant 9 : index
    %c0_20 = arith.constant 0 : index
    %18 = vector.load %arg8[%c0_19, %c9, %c0_20] : memref<18x32x36xf32, #tpu.memory_space<vmem>>, vector<16x16x36xf32>
    %19 = vector.shape_cast %18 : vector<16x16x36xf32> to vector<256x36xf32>
    %c0_21 = arith.constant 0 : index
    %c72 = arith.constant 72 : index
    %20 = vector.load %arg9[%c0_21, %c72] : memref<256x324xf32, #tpu.memory_space<vmem>>, vector<256x36xf32>
    tpu.vector_store %arg9[%c0_21, %c72], %19 {strides = array<i32>} : memref<256x324xf32, #tpu.memory_space<vmem>>, vector<256x36xf32>,
    %c1_22 = arith.constant 1 : index
    %c7_23 = arith.constant 7 : index
    %c0_24 = arith.constant 0 : index
    %21 = vector.load %arg8[%c1_22, %c7_23, %c0_24] : memref<18x32x36xf32, #tpu.memory_space<vmem>>, vector<16x16x36xf32>
    %22 = vector.shape_cast %21 : vector<16x16x36xf32> to vector<256x36xf32>
    %c0_25 = arith.constant 0 : index
    %c108 = arith.constant 108 : index
    %23 = vector.load %arg9[%c0_25, %c108] : memref<256x324xf32, #tpu.memory_space<vmem>>, vector<256x36xf32>
    tpu.vector_store %arg9[%c0_25, %c108], %22 {strides = array<i32>} : memref<256x324xf32, #tpu.memory_space<vmem>>, vector<256x36xf32>,
    %c1_26 = arith.constant 1 : index
    %c8_27 = arith.constant 8 : index
    %c0_28 = arith.constant 0 : index
    %24 = vector.load %arg8[%c1_26, %c8_27, %c0_28] : memref<18x32x36xf32, #tpu.memory_space<vmem>>, vector<16x16x36xf32>
    %25 = vector.shape_cast %24 : vector<16x16x36xf32> to vector<256x36xf32>
    %c0_29 = arith.constant 0 : index
    %c144 = arith.constant 144 : index
    %26 = vector.load %arg9[%c0_29, %c144] : memref<256x324xf32, #tpu.memory_space<vmem>>, vector<256x36xf32>
    tpu.vector_store %arg9[%c0_29, %c144], %25 {strides = array<i32>} : memref<256x324xf32, #tpu.memory_space<vmem>>, vector<256x36xf32>,
    %c1_30 = arith.constant 1 : index
    %c9_31 = arith.constant 9 : index
    %c0_32 = arith.constant 0 : index
    %27 = vector.load %arg8[%c1_30, %c9_31, %c0_32] : memref<18x32x36xf32, #tpu.memory_space<vmem>>, vector<16x16x36xf32>
    %28 = vector.shape_cast %27 : vector<16x16x36xf32> to vector<256x36xf32>
    %c0_33 = arith.constant 0 : index
    %c180 = arith.constant 180 : index
    %29 = vector.load %arg9[%c0_33, %c180] : memref<256x324xf32, #tpu.memory_space<vmem>>, vector<256x36xf32>
    tpu.vector_store %arg9[%c0_33, %c180], %28 {strides = array<i32>} : memref<256x324xf32, #tpu.memory_space<vmem>>, vector<256x36xf32>,
    %c2 = arith.constant 2 : index
    %c7_34 = arith.constant 7 : index
    %c0_35 = arith.constant 0 : index
    %30 = vector.load %arg8[%c2, %c7_34, %c0_35] : memref<18x32x36xf32, #tpu.memory_space<vmem>>, vector<16x16x36xf32>
    %31 = vector.shape_cast %30 : vector<16x16x36xf32> to vector<256x36xf32>
    %c0_36 = arith.constant 0 : index
    %c216 = arith.constant 216 : index
    %32 = vector.load %arg9[%c0_36, %c216] : memref<256x324xf32, #tpu.memory_space<vmem>>, vector<256x36xf32>
    tpu.vector_store %arg9[%c0_36, %c216], %31 {strides = array<i32>} : memref<256x324xf32, #tpu.memory_space<vmem>>, vector<256x36xf32>,
    %c2_37 = arith.constant 2 : index
    %c8_38 = arith.constant 8 : index
    %c0_39 = arith.constant 0 : index
    %33 = vector.load %arg8[%c2_37, %c8_38, %c0_39] : memref<18x32x36xf32, #tpu.memory_space<vmem>>, vector<16x16x36xf32>
    %34 = vector.shape_cast %33 : vector<16x16x36xf32> to vector<256x36xf32>
    %c0_40 = arith.constant 0 : index
    %c252 = arith.constant 252 : index
    %35 = vector.load %arg9[%c0_40, %c252] : memref<256x324xf32, #tpu.memory_space<vmem>>, vector<256x36xf32>
    tpu.vector_store %arg9[%c0_40, %c252], %34 {strides = array<i32>} : memref<256x324xf32, #tpu.memory_space<vmem>>, vector<256x36xf32>,
    %c2_41 = arith.constant 2 : index
    %c9_42 = arith.constant 9 : index
    %c0_43 = arith.constant 0 : index
    %36 = vector.load %arg8[%c2_41, %c9_42, %c0_43] : memref<18x32x36xf32, #tpu.memory_space<vmem>>, vector<16x16x36xf32>
    %37 = vector.shape_cast %36 : vector<16x16x36xf32> to vector<256x36xf32>
    %c0_44 = arith.constant 0 : index
    %c288 = arith.constant 288 : index
    %38 = vector.load %arg9[%c0_44, %c288] : memref<256x324xf32, #tpu.memory_space<vmem>>, vector<256x36xf32>
    tpu.vector_store %arg9[%c0_44, %c288], %37 {strides = array<i32>} : memref<256x324xf32, #tpu.memory_space<vmem>>, vector<256x36xf32>,
    %c0_45 = arith.constant 0 : index
    %c0_46 = arith.constant 0 : index
    %39 = vector.load %arg9[%c0_45, %c0_46] : memref<256x324xf32, #tpu.memory_space<vmem>>, vector<256x324xf32>
    %c0_47 = arith.constant 0 : index
    %c0_48 = arith.constant 0 : index
    %40 = vector.load %arg4[%c0_47, %c0_48] : memref<324x128xf32, #tpu.memory_space<vmem>>, vector<324x128xf32>
    %cst_49 = arith.constant dense<0.000000e+00> : vector<256x128xf32>
    %41 = tpu.matmul %39, %40, %cst_49 {dimension_numbers = #tpu.dot_dimension_numbers<[1], [0], [0], [1], [0, 0, 1, 1], [], []>} : vector<256x324xf32>, vector<324x128xf32>, vector<256x128xf32> -> vector<256x128xf32>
    %c0_50 = arith.constant 0 : index
    %c0_51 = arith.constant 0 : index
    %42 = vector.load %arg5[%c0_50, %c0_51] : memref<1x128xf32, #tpu.memory_space<vmem>>, vector<1x128xf32>
    %43 = vector.broadcast %42 : vector<1x128xf32> to vector<256x128xf32>
    %44 = arith.addf %41, %43 : vector<256x128xf32>
    %45 = tpu.transpose %44, [1, 0] : vector<256x128xf32> -> vector<128x256xf32>
    %46 = vector.extract_strided_slice %45 {offsets = [0, 0], sizes = [96, 256], strides = [1, 1]} : vector<128x256xf32> to vector<96x256xf32>
    %47 = arith.negf %46 : vector<96x256xf32>
    %48 = math.exp %47 : vector<96x256xf32>
    %cst_52 = arith.constant 1.000000e+00 : f32
    %49 = vector.broadcast %cst_52 : f32 to vector<96x256xf32>
    %50 = arith.addf %49, %48 : vector<96x256xf32>
    %51 = arith.divf %49, %50 : vector<96x256xf32>
    %52 = vector.extract_strided_slice %45 {offsets = [96, 0], sizes = [32, 256], strides = [1, 1]} : vector<128x256xf32> to vector<32x256xf32>
    %53 = math.tanh %52 : vector<32x256xf32>
    %54 = vector.extract_strided_slice %51 {offsets = [0, 0], sizes = [32, 256], strides = [1, 1]} : vector<96x256xf32> to vector<32x256xf32>
    %55 = vector.extract_strided_slice %51 {offsets = [32, 0], sizes = [32, 256], strides = [1, 1]} : vector<96x256xf32> to vector<32x256xf32>
    %56 = vector.extract_strided_slice %51 {offsets = [64, 0], sizes = [32, 256], strides = [1, 1]} : vector<96x256xf32> to vector<32x256xf32>
    %c0_53 = arith.constant 0 : index
    %c0_54 = arith.constant 0 : index
    %c0_55 = arith.constant 0 : index
    %57 = vector.load %arg3[%c0_53, %c0_54, %c0_55] : memref<1x32x256xf32, #tpu.memory_space<vmem>>, vector<1x32x256xf32>
    %58 = vector.shape_cast %57 : vector<1x32x256xf32> to vector<32x256xf32>
    %59 = arith.mulf %55, %58 : vector<32x256xf32>
    %60 = arith.mulf %54, %53 : vector<32x256xf32>
    %61 = arith.addf %59, %60 : vector<32x256xf32>
    %62 = math.tanh %61 : vector<32x256xf32>
    %63 = arith.mulf %56, %62 : vector<32x256xf32>
    %c0_56 = arith.constant 0 : index
    %c0_57 = arith.constant 0 : index
    %c0_58 = arith.constant 0 : index
    %64 = vector.load %arg7[%c0_56, %c0_57, %c0_58] : memref<1x32x256xf32, #tpu.memory_space<vmem>>, vector<1x32x256xf32>
    %65 = vector.shape_cast %64 : vector<1x32x256xf32> to vector<32x256xf32>
    %66 = vector.shape_cast %61 : vector<32x256xf32> to vector<1x32x256xf32>
    tpu.vector_store %arg7[%c0_56, %c0_57, %c0_58], %66 {strides = array<i32>} : memref<1x32x256xf32, #tpu.memory_space<vmem>>, vector<1x32x256xf32>,
    %c0_59 = arith.constant 0 : index
    %c0_60 = arith.constant 0 : index
    %c0_61 = arith.constant 0 : index
    %67 = vector.load %arg6[%c0_59, %c0_60, %c0_61] : memref<1x32x256xf32, #tpu.memory_space<vmem>>, vector<1x32x256xf32>
    %68 = vector.shape_cast %67 : vector<1x32x256xf32> to vector<32x256xf32>
    %69 = vector.shape_cast %63 : vector<32x256xf32> to vector<1x32x256xf32>
    tpu.vector_store %arg6[%c0_59, %c0_60, %c0_61], %69 {strides = array<i32>} : memref<1x32x256xf32, #tpu.memory_space<vmem>>, vector<1x32x256xf32>,
    return
  }
  func.func @transform_0(%arg0: i32) -> (i32, i32, i32) {
    %c0_i32 = arith.constant 0 : i32
    %c0_i32_0 = arith.constant 0 : i32
    %c0_i32_1 = arith.constant 0 : i32
    return %arg0, %c0_i32, %c0_i32_0 : i32, i32, i32
  }
  func.func @transform_1(%arg0: i32) -> (i32, i32, i32) {
    %c0_i32 = arith.constant 0 : i32
    %c0_i32_0 = arith.constant 0 : i32
    %c0_i32_1 = arith.constant 0 : i32
    return %arg0, %c0_i32, %c0_i32_0 : i32, i32, i32
  }
  func.func @transform_2(%arg0: i32) -> (i32, i32, i32) {
    %c0_i32 = arith.constant 0 : i32
    %c0_i32_0 = arith.constant 0 : i32
    %c0_i32_1 = arith.constant 0 : i32
    return %arg0, %c0_i32, %c0_i32_0 : i32, i32, i32
  }
  func.func @transform_3(%arg0: i32) -> (i32, i32) {
    %c0_i32 = arith.constant 0 : i32
    %c0_i32_0 = arith.constant 0 : i32
    %c0_i32_1 = arith.constant 0 : i32
    return %c0_i32, %c0_i32_0 : i32, i32
  }
  func.func @transform_4(%arg0: i32) -> (i32, i32) {
    %c0_i32 = arith.constant 0 : i32
    %c0_i32_0 = arith.constant 0 : i32
    %c0_i32_1 = arith.constant 0 : i32
    return %c0_i32, %c0_i32_0 : i32, i32
  }
  func.func @transform_5(%arg0: i32) -> (i32, i32, i32) {
    %c0_i32 = arith.constant 0 : i32
    %c0_i32_0 = arith.constant 0 : i32
    %c0_i32_1 = arith.constant 0 : i32
    return %arg0, %c0_i32, %c0_i32_0 : i32, i32, i32
  }
  func.func @transform_6(%arg0: i32) -> (i32, i32, i32) {
    %c0_i32 = arith.constant 0 : i32
    %c0_i32_0 = arith.constant 0 : i32
    %c0_i32_1 = arith.constant 0 : i32
    return %arg0, %c0_i32, %c0_i32_0 : i32, i32, i32
  }
}

</mosaic_0001>

<bundles_post_ra>
// kernel: tpu_custom_call.1
= control target key start
LH: loop header
LB: loop body
LE: loop exit
PB: predicated region body
PF: predicated region fallthrough
CT: control target
= control target key end

     0   :  { %s6035_s0 = inlined_call_operand.hbm [shape: f32[2,4,256], index: 0, kind: input, shape index: {}]   ;;  %s6036_s1 = inlined_call_operand.hbm [shape: f32[2,32,256], index: 1, kind: input, shape index: {}]   ;;  %s6037_s2 = inlined_call_operand.hbm [shape: f32[2,32,256], index: 2, kind: input, shape index: {}]   ;;  %s6038_s3 = inlined_call_operand.hbm [shape: f32[324,128], index: 3, kind: input, shape index: {}]   ;;  %s6039_s4 = inlined_call_operand.vmem [shape: f32[1,128], index: 4, kind: input, shape index: {}]   ;;  %s6040_s5 = inlined_call_operand.hbm [shape: f32[2,32,256], index: 5, kind: output, shape index: {0}]   ;;  %s6041_s6 = inlined_call_operand.hbm [shape: f32[2,32,256], index: 6, kind: output, shape index: {1}]  }
   0x1   :  { %6056 = sst [smem:[#allocation26_spill]] %s6036_s1 }
   0x2   :  { %6057 = sst [smem:[#allocation27_spill]] %s6040_s5 }
   0x3   :  { %12 = vsyncpa [#allocation5], 0 }
   0x4   :  { %14 = vsyncpa [#allocation5 + $0x1], 0 }
   0x5   :  { %15 = vsyncpa [#allocation8], 0 }
   0x6   :  { %17 = vsyncpa [#allocation8 + $0x1], 0 }
   0x7   :  { %18 = vsyncpa [#allocation11], 0 }
   0x8   :  { %19 = vsyncpa [#allocation6], 0 }
   0x9   :  { %21 = vsyncpa [#allocation6 + $0x1], 0 }
   0xa   :  { %22 = vsyncpa [#allocation14], 0 }
   0xb   :  { %24 = vsyncpa [#allocation14 + $0x1], 0  ;;  %s4371_s21 = smov 0   ;;  %s4373_s22 = smov 0  }
   0xc   :  { %s4375_s23 = smov 0   ;;  %s4377_s24 = smov 0  }
   0xd LB: > { %6058 = sst [smem:[#allocation20_spill]] %s4301_s21  ;;  %s4392_s25 = sadd.s32 1, %s4313_s24   ;;  %s4313_s24 = sphi %s4377_s24, %s6086_s24   ;;  %s4309_s23 = sphi %s4375_s23, %s6088_s23   ;;  %s4305_s22 = sphi %s4373_s22, %s6090_s22   ;;  %s4301_s21 = sphi %s4371_s21, %s6089_s21  }
   0xe   : > { %6059 = sst [smem:[#allocation21_spill]] %s4309_s23  ;;  %s37_s26 = sadd.s32 1, %s4309_s23 }
   0xf   : > { %6060 = sst [smem:[#allocation22_spill]] %s4313_s24  ;;  %s34_s27 = ssub.s32 %s4313_s24, %s4392_s25 }
  0x10   : > { %6061 = sst [smem:[#allocation23_spill]] %s4392_s25  ;;  %p6042_p0 = scmp.ne.s32.totalorder %s4309_s23, %s4305_s22 }
  0x11   : > { %p35_p1 = scmp.eq.s32.totalorder %s34_s27, 0  ;;  %p45_p2 = scmp.eq.s32.totalorder %s4313_s24, 0 }
  0x12   : > { %p3920_p4 = scmp.lt.s32.totalorder %s4313_s24, 2  ;;  %s4409_s29 = sand.u32 1, %s4309_s23  }
  0x13   : > { %s4403_s28 = scalar_select %p35_p1, %s4309_s23, %s37_s26  }
  0x14   : > { %p46_p5 = por %p45_p2, %p6042_p0  ;;  %s255_s30 = sand.u32 1, %s4313_s24  }
  0x15   : > { %6062 = sst [smem:[#allocation24_spill]] %s4403_s28  ;;  %s3629_s7 = sshll.u32 %s4409_s29, 6 }
  0x16   : > { %p4413_p6 = pnand %p3920_p4, %p46_p5  ;;  %s3709_s9 = sshll.u32 %s4313_s24, 10 }
  0x17   : > { %s6064_s1 = sld [smem:[#allocation26_spill]]  ;;  %s259_s13 = scalar_lea.vmem [#allocation7], %s3629_s7 }
  0x18   : > { %s266_s14 = sshll.u32 %s259_s13, 4  ;;  %s4429_s15 = scalar_lea.sflag [#allocation8], %s255_s30  ;;  %s4427_s14 = int_to_ptr.vmem [resolvable:$true] %s266_s14 }
  0x19   : > { %p4435_p8 = pneg %p4413_p6 }
  0x1d   : > { %s4423_s12 = scalar_lea.hbm %s6064_s1, %s3709_s9  ;;  %s4106_s20 = scalar_lea.hbm %s6064_s1, 2048 }
  0x1e   : > { %s4101_s16 = scalar_lea.hbm %s4423_s12, 1024  ;;  %p4107_p11 = scmp.lt.s32.totalorder %s4423_s12, %s6064_s1 }
  0x1f   : > { %p4102_p7 = scmp.ne.s32.totalorder %s4423_s12, %s4101_s16  ;;  %p4108_p12 = scmp.lt.s32.totalorder %s4106_s20, %s4101_s16 }
  0x21   : > { %p4104_p9 = pnand %p4435_p8, %p4102_p7  ;;  %p4109_p13 = por %p4108_p12, %p4107_p11 }
  0x23   : > { %p4105_p10 = pneg %p4104_p9 }
  0x25   : > { %p4110_p1 = pnand %p4109_p13, %p4105_p10 }
  0x27   : > { %4113 = shalt.err (!%p4110_p1)
}
  0x28   : > { %s4114_s30 = scalar_lea.vmem %s4427_s14, 1024  ;;  %s4315_s10 = smov [#allocation7]  }
  0x29   : > { %p4115_p2 = scmp.ne.s32.totalorder %s4427_s14, %s4114_s30  ;;  %s4119_s11 = sshll.u32 %s4315_s10, 4  ;;  %s4120_s11 = int_to_ptr.vmem [resolvable:$false] %s4119_s11 }
  0x2a   : > { %s4121_s13 = scalar_lea.vmem %s4120_s11, 2048  ;;  %p4122_p7 = scmp.lt.s32.totalorder %s4427_s14, %s4120_s11 }
  0x2b   : > { %p4117_p4 = pnand %p4115_p2, %p4435_p8  ;;  %p4123_p9 = scmp.lt.s32.totalorder %s4121_s13, %s4114_s30 }
  0x2d   : > { %p4118_p5 = pneg %p4117_p4  ;;  %p4124_p3 = por %p4123_p9, %p4122_p7 }
  0x2f   : > { %p4125_p0 = pnand %p4124_p3, %p4118_p5 }
  0x31   : > { %4128 = shalt.err (!%p4125_p0)
}
  0x32   : > { %s6043_s16 = smov 256   ;;  %s6044_s18 = smov 16  }
  0x33   : > { %3908 = dma.hbm_to_vmem [thread:$0]  (!%p4413_p6), %s4423_s12, 1024, %s4427_s14, %s4429_s15, %s6043_s16, %s6043_s16, %s6044_s18  }
  0x34   : > { %s4466_s26 = scalar_lea.hbm %s6037_s2, %s3709_s9  ;;  %s280_s27 = scalar_lea.vmem [#allocation9], %s3629_s7 }
  0x35   : > { %s287_s30 = sshll.u32 %s280_s27, 4  ;;  %s4473_s10 = sadd.s32 4294967295, %s4313_s24   ;;  %s4470_s30 = int_to_ptr.vmem [resolvable:$true] %s287_s30 }
  0x36   : > { %s3622_s11 = sadd.s32 4294967294, %s4313_s24   ;;  %p50_p0 = scmp.ne.s32.totalorder %s4305_s22, %s4301_s21 }
  0x37   : > { %p6046_p3 = scmp.eq.s32.totalorder %s4473_s10, 0  ;;  %p168_p10 = scmp.eq.s32.totalorder %s4473_s10, 1 }
  0x38   : > { %p174_p11 = scmp.eq.s32.totalorder %s3622_s11, 1  ;;  %p3623_p13 = scmp.ge.s32.totalorder %s4313_s24, 1 }
  0x39   : > { %p4482_p12 = por %p6046_p3, %p50_p0  ;;  %p6067_p1 = scmp.ne.s32.totalorder %s4309_s23, %s4305_s22 }
  0x3a   : > { %p4494_p4 = por %p174_p11, %p50_p0  ;;  %p207_p5 = scmp.lt.s32.totalorder %s4313_s24, 3 }
  0x3b   : > { %s6066_s9 = scalar_select %p4482_p12, 1, 0 }
  0x3c   : > { %p4490_p2 = por %p168_p10, %p6067_p1  ;;  %p4499_p7 = pnand %p3623_p13, %p207_p5 }
  0x3d   : > { %s6069_s12 = scalar_select %p4494_p4, 1, 0 }
  0x3e   : > { %s6068_s7 = scalar_select %p4490_p2, 1, 0 }
  0x3f   : > { %6070 = sst [smem:[#allocation25_spill]] %s6069_s12  ;;  %s4318_s13 = smov [#allocation10]  }
  0x40   : > { %s6071_s14 = scalar_select %p4499_p7, 1, 0 }
  0x41   : > { %s219_s19 = sshll.u32 %s4318_s13, 4  ;;  %p3898_p9 = pneg %p4499_p7  ;;  %s220_s19 = int_to_ptr.vmem [resolvable:$true] %s219_s19 }
  0x42   : > { %s3626_s20 = sshll.u32 %s4409_s29, 3  ;;  %s3708_s27 = sshll.u32 %s4313_s24, 7 }
  0x43   : > { %p4509_p10 = pnand %p3898_p9, %p6046_p3  ;;  %s4516_s1 = scalar_lea.hbm %s6035_s0, %s3708_s27 }
  0x44   : > { %s240_s28 = scalar_lea.vmem [#allocation4], %s3626_s20  ;;  %s4140_s13 = scalar_lea.vmem %s220_s19, 5248 }
  0x45   : > { %s248_s23 = sshll.u32 %s240_s28, 4  ;;  %p4131_p0 = pneg %p4509_p10  ;;  %s4518_s23 = int_to_ptr.vmem [resolvable:$true] %s248_s23 }
  0x46   : > { %p4141_p11 = scmp.ne.s32.totalorder %s220_s19, %s4140_s13  ;;  %p4148_p5 = scmp.lt.s32.totalorder %s220_s19, %s220_s19 }
  0x47   : > { %p4149_p9 = scmp.lt.s32.totalorder %s4140_s13, %s4140_s13 }
  0x48   : > { %p4143_p13 = pnand %p4141_p11, %p4131_p0 }
  0x49   : > { %p4150_p3 = por %p4149_p9, %p4148_p5 }
  0x4a   : > { %p4144_p1 = pneg %p4143_p13 }
  0x4c   : > { %p4151_p4 = pnand %p4150_p3, %p4144_p1 }
  0x4e   : > { %4154 = shalt.err (!%p4151_p4)
}
  0x4f   : > { %s4319_s25 = smov 128   ;;  %s4320_s28 = smov 8  }
  0x50   : > { %3901 = dma.hbm_to_vmem [thread:$0]  (!%p4509_p10), %s6038_s3, 5248, %s220_s19, [#allocation11], %s4319_s25, %s4319_s25, %s4320_s28  }
  0x51   : > { %s237_s20 = scalar_lea.sflag [#allocation5], %s4409_s29  ;;  %s4155_s27 = scalar_lea.hbm %s4516_s1, 128 }
  0x52   : > { %p4156_p0 = scmp.ne.s32.totalorder %s4516_s1, %s4155_s27  ;;  %s4160_s12 = scalar_lea.hbm %s6035_s0, 256 }
  0x53   : > { %p4161_p4 = scmp.lt.s32.totalorder %s4516_s1, %s6035_s0  ;;  %p4162_p13 = scmp.lt.s32.totalorder %s4160_s12, %s4155_s27 }
  0x54   : > { %p4158_p11 = pnand %p4156_p0, %p4435_p8 }
  0x55   : > { %p4163_p1 = por %p4162_p13, %p4161_p4 }
  0x56   : > { %p4159_p3 = pneg %p4158_p11 }
  0x58   : > { %p4164_p5 = pnand %p4163_p1, %p4159_p3 }
  0x5a   : > { %4167 = shalt.err (!%p4164_p5)
}
  0x5b   : > { %s4168_s25 = scalar_lea.vmem %s4518_s23, 128  ;;  %s4321_s29 = smov [#allocation4]  }
  0x5c   : > { %p4169_p10 = scmp.ne.s32.totalorder %s4518_s23, %s4168_s25  ;;  %s4173_s24 = sshll.u32 %s4321_s29, 4  ;;  %s4174_s24 = int_to_ptr.vmem [resolvable:$false] %s4173_s24 }
  0x5d   : > { %s4175_s19 = scalar_lea.vmem %s4174_s24, 256  ;;  %p4176_p11 = scmp.lt.s32.totalorder %s4518_s23, %s4174_s24 }
  0x5e   : > { %p4171_p9 = pnand %p4169_p10, %p4435_p8  ;;  %p4177_p2 = scmp.lt.s32.totalorder %s4175_s19, %s4168_s25 }
  0x60   : > { %p4172_p0 = pneg %p4171_p9  ;;  %p4178_p12 = por %p4177_p2, %p4176_p11 }
  0x62   : > { %p4179_p7 = pnand %p4178_p12, %p4172_p0 }
  0x64   : > { %4182 = shalt.err (!%p4179_p7)
}
  0x65   : > { %3905 = dma.hbm_to_vmem [thread:$0]  (!%p4413_p6), %s4516_s1, 128, %s4518_s23, %s237_s20  }
  0x66   : > { %s4183_s5 = scalar_lea.hbm %s4466_s26, 1024  ;;  %s4188_s11 = scalar_lea.hbm %s6037_s2, 2048 }
  0x67   : > { %p4184_p3 = scmp.ne.s32.totalorder %s4466_s26, %s4183_s5  ;;  %p4189_p12 = scmp.lt.s32.totalorder %s4466_s26, %s6037_s2 }
  0x68   : > { %p4190_p2 = scmp.lt.s32.totalorder %s4188_s11, %s4183_s5 }
  0x69   : > { %p4186_p4 = pnand %p4184_p3, %p4435_p8 }
  0x6a   : > { %p4191_p7 = por %p4190_p2, %p4189_p12 }
  0x6b   : > { %p4187_p13 = pneg %p4186_p4 }
  0x6d   : > { %p4192_p1 = pnand %p4191_p7, %p4187_p13 }
  0x6f   : > { %4195 = shalt.err (!%p4192_p1)
}
  0x70   : > { %s4196_s1 = scalar_lea.vmem %s4470_s30, 1024  ;;  %s4322_s23 = smov [#allocation9]  }
  0x71   : > { %p4197_p5 = scmp.ne.s32.totalorder %s4470_s30, %s4196_s1  ;;  %s4201_s18 = sshll.u32 %s4322_s23, 4  ;;  %s4202_s18 = int_to_ptr.vmem [resolvable:$false] %s4201_s18 }
  0x72   : > { %s4203_s20 = scalar_lea.vmem %s4202_s18, 2048  ;;  %p4204_p0 = scmp.lt.s32.totalorder %s4470_s30, %s4202_s18 }
  0x73   : > { %p4199_p10 = pnand %p4197_p5, %p4435_p8  ;;  %p4205_p11 = scmp.lt.s32.totalorder %s4203_s20, %s4196_s1 }
  0x75   : > { %p4200_p9 = pneg %p4199_p10  ;;  %p4206_p3 = por %p4205_p11, %p4204_p0 }
  0x77   : > { %p4207_p4 = pnand %p4206_p3, %p4200_p9 }
  0x79   : > { %4210 = shalt.err (!%p4207_p4)
}
  0x7a   : > { %s6073_s27 = smov 16   ;;  %s6074_s13 = smov 256  }
  0x7b   : > { %3911 = dma.hbm_to_vmem [thread:$0]  (!%p4413_p6), %s4466_s26, 1024, %s4470_s30, %s4429_s15, %s6074_s13, %s6074_s13, %s6073_s27  }
  0x7c   : > { %p6075_p8 = scmp.ne.s32.totalorder %s6071_s14, 0 }
  0x7d   : > { %s4575_s17 = sand.u32 (!%p6075_p8), 1, %s4305_s22   ;;  %p6076_p13 = scmp.ne.s32.totalorder (!%p6075_p8), %s6066_s9, 0 }
  0x7e   : > { %299 = sbr.rel (%p6075_p8) target bundleno = 1472 (0x5c0), region = 40  ;;  %s3636_s25 = sshll.u32 (!%p6075_p8), %s4575_s17, 3 }
  0x7f   : > { %s302_s29 = scalar_lea.sflag (!%p6075_p8), [#allocation5], %s4575_s17  ;;  %s305_s24 = scalar_lea.vmem (!%p6075_p8), [#allocation4], %s3636_s25 }
  0x83   : > { %4280 = dma.done.wait (%p6076_p13), %s302_s29, 128  }
  0x84   : > { %4282 = vsyncadd (%p6076_p13), %s302_s29, 4294967168  ;;  %s310_s8 = sand.u32 1, %s4473_s10   ;;  %s4585_s15 = sshll.u32 %s4575_s17, 6 }
  0x85   : > { %s311_s26 = scalar_lea.sflag [#allocation8], %s310_s8  ;;  %s4588_s30 = scalar_lea.vmem [#allocation7], %s4585_s15 }
  0x86   : > { %4284 = dma.done.wait (%p6076_p13), %s311_s26, 2048  }
  0x87   : > { %4286 = vsyncadd (%p6076_p13), %s311_s26, 4294965248  ;;  %s4595_s14 = scalar_lea.vmem [#allocation9], %s4585_s15  ;;  %p6077_p6 = scmp.eq.s32.totalorder %s4473_s10, 0 }
  0x89   : > { %4288 = dma.done.wait (%p6077_p6), [#allocation11], 5248   ;;  %p6078_p12 = pmov %p6077_p6 }
  0x8a   : > { %v512_v0 = vld [vmem:[%s4588_s30] sm:$0xff]  ;;  %v4602_v1 = vld [vmem:[%s305_s24] sm:$0xff]  ;;  %vm371_vm0 = vcmask 293888   ;;  %v4323_v5 = vmov 0.0   ;;  %v513_v7 = vld [vmem:[%s4588_s30 + $0x8] sm:$0xff]  ;;  %vm585_vm1 = vcmask 31744  }
  0x8b   : > { %4290 = vsyncadd (%p6078_p12), [#allocation11], 4294962048  ;;  %520 = vxpose.xlu1.b32.start [1/4] (short) %v512_v0, 128  ;;  %448 = vxpose.xlu0.b32.start.end [1/1] (short) %v4602_v1, 128  ;;  %v514_v2 = vld [vmem:[%s4588_s30 + $0x10] sm:$0xff]  ;;  %v516_v3 = vld [vmem:[%s4588_s30 + $0x20] sm:$0xff]  ;;  %377 = vst.msk [vmem:[#allocation2 + $0x28] sm:$0xff] %vm371_vm0, %v4323_v5  ;;  %v446_v6 = vcombine.high %v4602_v1, %v4602_v1  ;;  %s4324_s9 = smov 4  }
  0x8c   : > { %v518_v4 = vld [vmem:[%s4588_s30 + $0x30] sm:$0xff]  ;;  %372 = vst.msk [vmem:[#allocation2] sm:$0xff] %vm371_vm0, %v4323_v5  ;;  %373 = vst.msk [vmem:[#allocation2 + $0x8] sm:$0xff] %vm371_vm0, %v4323_v5  ;;  %2699 = vmatprep.subr.mxu0 %v4323_v5  ;;  %3820 = vmatprep.subr.mxu1 %v4323_v5  ;;  %v515_v8 = vld [vmem:[%s4588_s30 + $0x18] sm:$0xff]  ;;  %s4325_s19 = smov 36   ;;  %vm746_vm2 = vcmask 293920  }
  0x8d   : > { %374 = vst.msk [vmem:[#allocation2 + $0x10] sm:$0xff] %vm371_vm0, %v4323_v5  ;;  %375 = vst.msk [vmem:[#allocation2 + $0x18] sm:$0xff] %vm371_vm0, %v4323_v5  ;;  %v517_v9 = vld [vmem:[%s4588_s30 + $0x28] sm:$0xff]  ;;  %v519_v10 = vld [vmem:[%s4588_s30 + $0x38] sm:$0xff]  ;;  %vm1003_vm3 = vcmask 589088   ;;  %s4326_s5 = smov 72  }
  0x8e   : > { %376 = vst.msk [vmem:[#allocation2 + $0x20] sm:$0xff] %vm371_vm0, %v4323_v5  ;;  %378 = vst.msk [vmem:[#allocation2 + $0x30] sm:$0xff] %vm371_vm0, %v4323_v5  ;;  %s4327_s21 = smov 108   ;;  %s4328_s12 = smov 16   ;;  %vm1196_vm4 = vcmask 884288   ;;  %vm1389_vm5 = vcmask 1048416  }
  0x8f   : > { %521 = vxpose.xlu1.b32.cont [2/4] (short) %v514_v2, 128  ;;  %379 = vst.msk [vmem:[#allocation2 + $0x38] sm:$0xff] %vm371_vm0, %v4323_v5  ;;  %380 = vst.msk [vmem:[#allocation2 + $0x40] sm:$0xff] %vm371_vm0, %v4323_v5  ;;  %s4329_s11 = smov 52   ;;  %s4330_s28 = smov 88   ;;  %vm1391_vm6 = vcmask 130048   ;;  %vm1615_vm7 = vcmask 425088  }
  0x90   : > { %381 = vst.msk [vmem:[#allocation2 + $0x48] sm:$0xff] %vm371_vm0, %v4323_v5  ;;  %382 = vst.msk [vmem:[#allocation2 + $0x50] sm:$0xff] %vm371_vm0, %v4323_v5  ;;  %s4331_s16 = smov 124   ;;  %vm1808_vm8 = vcmask 720288   ;;  %vm2002_vm9 = vcmask 1015488   ;;  %vm2195_vm10 = vcmask 1048544  }
  0x91   : > { %383 = vst.msk [vmem:[#allocation2 + $0x58] sm:$0xff] %vm371_vm0, %v4323_v5  ;;  %384 = vst.msk [vmem:[#allocation2 + $0x60] sm:$0xff] %vm371_vm0, %v4323_v5  ;;  %vm2197_vm11 = vcmask 261120   ;;  %vm2695_vm12 = vcmask 1043456   ;;  %s4332_s1 = smov 32   ;;  %vm2421_vm13 = vcmask 556288  }
  0x92   : > { %385 = vst.msk [vmem:[#allocation2 + $0x68] sm:$0xff] %vm371_vm0, %v4323_v5  ;;  %386 = vst.msk [vmem:[#allocation2 + $0x70] sm:$0xff] %vm371_vm0, %v4323_v5  ;;  %vm2598_vm14 = vcmask 556032   ;;  %s5920_s20 = scalar_lea.vmem [#allocation13], %s4585_s15  ;;  %s5928_s27 = scalar_lea.vmem [#allocation12], %s4585_s15 }
  0x93   : > { %522 = vxpose.xlu1.b32.cont [3/4] (short) %v516_v3, 128  ;;  %387 = vst.msk [vmem:[#allocation2 + $0x78] sm:$0xff] %vm371_vm0, %v4323_v5  ;;  %388 = vst.msk [vmem:[#allocation2 + $0x80] sm:$0xff] %vm371_vm0, %v4323_v5  ;;  %s3711_s13 = sshll.u32 %s4473_s10, 10  ;;  %s3464_s25 = sshll.u32 %s5920_s20, 4  ;;  %s5950_s25 = int_to_ptr.vmem [resolvable:$true] %s3464_s25 }
  0x94   : > { %389 = vst.msk [vmem:[#allocation2 + $0x88] sm:$0xff] %vm371_vm0, %v4323_v5  ;;  %390 = vst.msk [vmem:[#allocation2 + $0x90] sm:$0xff] %vm371_vm0, %v4323_v5  ;;  %s5948_s8 = scalar_lea.hbm %s6041_s6, %s3711_s13  ;;  %s3435_s15 = scalar_lea.sflag [#allocation14], %s4575_s17 }
  0x95   : > { %391 = vst.msk [vmem:[#allocation2 + $0x98] sm:$0xff] %vm371_vm0, %v4323_v5  ;;  %392 = vst.msk [vmem:[#allocation2 + $0xa0] sm:$0xff] %vm371_vm0, %v4323_v5  ;;  %s4211_s26 = scalar_lea.vmem %s5950_s25, 1024  ;;  %p6079_p7 = scmp.ne.s32.totalorder %s6068_s7, 0 }
  0x96   : > { %393 = vst.msk [vmem:[#allocation2 + $0xa8] sm:$0xff] %vm371_vm0, %v4323_v5  ;;  %394 = vst.msk [vmem:[#allocation2 + $0xb0] sm:$0xff] %vm371_vm0, %v4323_v5  ;;  %p4212_p2 = scmp.ne.s32.totalorder %s5950_s25, %s4211_s26  ;;  %s4333_s30 = smov [#allocation13]  }
  0x97   : > { %523 = vxpose.xlu1.b32.end [4/4] (short) %v518_v4, 128  ;;  %395 = vst.msk [vmem:[#allocation2 + $0xb8] sm:$0xff] %vm371_vm0, %v4323_v5  ;;  %396 = vst.msk [vmem:[#allocation2 + $0xc0] sm:$0xff] %vm371_vm0, %v4323_v5 }
  0x98   : > { %397 = vst.msk [vmem:[#allocation2 + $0xc8] sm:$0xff] %vm371_vm0, %v4323_v5  ;;  %398 = vst.msk [vmem:[#allocation2 + $0xd0] sm:$0xff] %vm371_vm0, %v4323_v5  ;;  %p4213_p1 = pnand %p4212_p2, %p6079_p7 }
  0x99   : > { %399 = vst.msk [vmem:[#allocation2 + $0xd8] sm:$0xff] %vm371_vm0, %v4323_v5  ;;  %400 = vst.msk [vmem:[#allocation2 + $0xe0] sm:$0xff] %vm371_vm0, %v4323_v5 }
  0x9a   : > { %401 = vst.msk [vmem:[#allocation2 + $0xe8] sm:$0xff] %vm371_vm0, %v4323_v5  ;;  %402 = vst.msk [vmem:[#allocation2 + $0xf0] sm:$0xff] %vm371_vm0, %v4323_v5  ;;  %p4214_p5 = pneg %p4213_p1 }
  0x9b   : > { %403 = vst.msk [vmem:[#allocation2 + $0xf8] sm:$0xff] %vm371_vm0, %v4323_v5  ;;  %404 = vst.msk [vmem:[#allocation2 + $0x100] sm:$0xff] %vm371_vm0, %v4323_v5 }
  0x9c   : > { %405 = vst.msk [vmem:[#allocation2 + $0x108] sm:$0xff] %vm371_vm0, %v4323_v5  ;;  %406 = vst.msk [vmem:[#allocation2 + $0x110] sm:$0xff] %vm371_vm0, %v4323_v5 }
  0x9d   : > { %407 = vst.msk [vmem:[#allocation2 + $0x118] sm:$0xff] %vm371_vm0, %v4323_v5  ;;  %408 = vst.msk [vmem:[#allocation2 + $0x120] sm:$0xff] %vm371_vm0, %v4323_v5 }
  0x9e   : > { %409 = vst.msk [vmem:[#allocation2 + $0x128] sm:$0xff] %vm371_vm0, %v4323_v5  ;;  %410 = vst.msk [vmem:[#allocation2 + $0x130] sm:$0xff] %vm371_vm0, %v4323_v5 }
  0x9f   : > { %411 = vst.msk [vmem:[#allocation2 + $0x138] sm:$0xff] %vm371_vm0, %v4323_v5  ;;  %412 = vst.msk [vmem:[#allocation2 + $0x140] sm:$0xff] %vm371_vm0, %v4323_v5 }
  0xa0   : > { %413 = vst.msk [vmem:[#allocation2 + $0x148] sm:$0xff] %vm371_vm0, %v4323_v5  ;;  %414 = vst.msk [vmem:[#allocation2 + $0x150] sm:$0xff] %vm371_vm0, %v4323_v5 }
  0xa1   : > { %415 = vst.msk [vmem:[#allocation2 + $0x158] sm:$0xff] %vm371_vm0, %v4323_v5  ;;  %416 = vst.msk [vmem:[#allocation2 + $0x160] sm:$0xff] %vm371_vm0, %v4323_v5 }
  0xa2   : > { %417 = vst.msk [vmem:[#allocation2 + $0x168] sm:$0xff] %vm371_vm0, %v4323_v5  ;;  %418 = vst.msk [vmem:[#allocation2 + $0x170] sm:$0xff] %vm371_vm0, %v4323_v5 }
  0xa3   : > { %419 = vst.msk [vmem:[#allocation2 + $0x178] sm:$0xff] %vm371_vm0, %v4323_v5  ;;  %420 = vst.msk [vmem:[#allocation2 + $0x180] sm:$0xff] %vm371_vm0, %v4323_v5 }
  0xa4   : > { %421 = vst.msk [vmem:[#allocation2 + $0x188] sm:$0xff] %vm371_vm0, %v4323_v5  ;;  %422 = vst.msk [vmem:[#allocation2 + $0x190] sm:$0xff] %vm371_vm0, %v4323_v5 }
  0xa5   : > { %423 = vst.msk [vmem:[#allocation2 + $0x198] sm:$0xff] %vm371_vm0, %v4323_v5  ;;  %424 = vst.msk [vmem:[#allocation2 + $0x1a0] sm:$0xff] %vm371_vm0, %v4323_v5 }
  0xa6   : > { %425 = vst.msk [vmem:[#allocation2 + $0x1a8] sm:$0xff] %vm371_vm0, %v4323_v5  ;;  %426 = vst.msk [vmem:[#allocation2 + $0x1b0] sm:$0xff] %vm371_vm0, %v4323_v5 }
  0xa7   : > { %427 = vst.msk [vmem:[#allocation2 + $0x1b8] sm:$0xff] %vm371_vm0, %v4323_v5  ;;  %428 = vst.msk [vmem:[#allocation2 + $0x1c0] sm:$0xff] %vm371_vm0, %v4323_v5 }
  0xa8   : > { %429 = vst.msk [vmem:[#allocation2 + $0x1c8] sm:$0xff] %vm371_vm0, %v4323_v5  ;;  %430 = vst.msk [vmem:[#allocation2 + $0x1d0] sm:$0xff] %vm371_vm0, %v4323_v5 }
  0xa9   : > { %431 = vst.msk [vmem:[#allocation2 + $0x1d8] sm:$0xff] %vm371_vm0, %v4323_v5  ;;  %432 = vst.msk [vmem:[#allocation2 + $0x1e0] sm:$0xff] %vm371_vm0, %v4323_v5 }
  0xaa   : > { %433 = vst.msk [vmem:[#allocation2 + $0x1e8] sm:$0xff] %vm371_vm0, %v4323_v5  ;;  %434 = vst.msk [vmem:[#allocation2 + $0x1f0] sm:$0xff] %vm371_vm0, %v4323_v5 }
  0xab   : > { %435 = vst.msk [vmem:[#allocation2 + $0x1f8] sm:$0xff] %vm371_vm0, %v4323_v5  ;;  %436 = vst.msk [vmem:[#allocation2 + $0x200] sm:$0xff] %vm371_vm0, %v4323_v5 }
  0xac   : > { %437 = vst.msk [vmem:[#allocation2 + $0x208] sm:$0xff] %vm371_vm0, %v4323_v5  ;;  %438 = vst.msk [vmem:[#allocation2 + $0x210] sm:$0xff] %vm371_vm0, %v4323_v5 }
  0xad   : > { %439 = vst.msk [vmem:[#allocation2 + $0x218] sm:$0xff] %vm371_vm0, %v4323_v5  ;;  %440 = vst.msk [vmem:[#allocation2 + $0x220] sm:$0xff] %vm371_vm0, %v4323_v5 }
  0xae   : > { %441 = vst.msk [vmem:[#allocation2 + $0x228] sm:$0xff] %vm371_vm0, %v4323_v5  ;;  %442 = vst.msk [vmem:[#allocation2 + $0x230] sm:$0xff] %vm371_vm0, %v4323_v5 }
  0xaf   : > { %443 = vst.msk [vmem:[#allocation2 + $0x238] sm:$0xff] %vm371_vm0, %v4323_v5 }
  0xc8   : > { %552 = vxpose.xlu1.b32.start [1/4] (short) %v513_v7, 128  ;;  %480 = vxpose.xlu0.b32.start.end [1/1] (short) %v446_v6, 128 }
  0xcc   : > { %553 = vxpose.xlu1.b32.cont [2/4] (short) %v515_v8, 128 }
  0xd0   : > { %554 = vxpose.xlu1.b32.cont [3/4] (short) %v517_v9, 128 }
  0xd4   : > { %555 = vxpose.xlu1.b32.end [4/4] (short) %v519_v10, 128  ;;  %v843_v10 = vld [vmem:[#allocation2 + $0x8] sm:$0xff] }
 0x107   : > { %v536_v11 = vpop.trf.xlu1  ;;  %v464_v12 = vpop.trf.xlu0 }
 0x108   : > { %586 = vst.msk [vmem:[#allocation2 + $0x28] sm:$0xff] %vm585_vm1, %v464_v12 }
 0x10b   : > { %v537_v13 = vpop.trf.xlu1  ;;  %v465_v14 = vpop.trf.xlu0 }
 0x10c   : > { %587 = vst.msk [vmem:[#allocation2 + $0x30] sm:$0xff] %vm585_vm1, %v465_v14  ;;  %v780_v14 = vld [vmem:[#allocation2 + $0xf] sm:$0xff] }
 0x10d   : > { %812 = vst.msk [vmem:[#allocation3 + $0x18] sm:$0xff] %vm371_vm0, %v780_v14 }
 0x10f   : > { %v538_v15 = vpop.trf.xlu1  ;;  %v466_v16 = vpop.trf.xlu0 }
 0x110   : > { %588 = vst.msk [vmem:[#allocation2 + $0x48] sm:$0xff] %vm585_vm1, %v466_v16 }
 0x113   : > { %v539_v17 = vpop.trf.xlu1  ;;  %v467_v18 = vpop.trf.xlu0 }
 0x114   : > { %589 = vst.msk [vmem:[#allocation2 + $0x50] sm:$0xff] %vm585_vm1, %v467_v18 }
 0x117   : > { %v540_v19 = vpop.trf.xlu1  ;;  %v468_v20 = vpop.trf.xlu0 }
 0x118   : > { %590 = vst.msk [vmem:[#allocation2 + $0x68] sm:$0xff] %vm585_vm1, %v468_v20 }
 0x11b   : > { %v541_v21 = vpop.trf.xlu1  ;;  %v469_v22 = vpop.trf.xlu0 }
 0x11c   : > { %591 = vst.msk [vmem:[#allocation2 + $0x70] sm:$0xff] %vm585_vm1, %v469_v22 }
 0x11f   : > { %v542_v23 = vpop.trf.xlu1  ;;  %v470_v24 = vpop.trf.xlu0 }
 0x120   : > { %592 = vst.msk [vmem:[#allocation2 + $0x88] sm:$0xff] %vm585_vm1, %v470_v24 }
 0x122   : > { %652 = vrot.lane.b32.xlu1 %v537_v13, %s4324_s9  ;;  %v844_v13 = vld [vmem:[#allocation2 + $0x10] sm:$0xff] }
 0x123   : > { %v543_v25 = vpop.trf.xlu1  ;;  %v471_v26 = vpop.trf.xlu0 }
 0x124   : > { %593 = vst.msk [vmem:[#allocation2 + $0x90] sm:$0xff] %vm585_vm1, %v471_v26 }
 0x126   : > { %654 = vrot.lane.b32.xlu1 %v538_v15, %s4324_s9  ;;  %v779_v15 = vld [vmem:[#allocation2 + $0x7] sm:$0xff] }
 0x127   : > { %v544_v27 = vpop.trf.xlu1  ;;  %v472_v28 = vpop.trf.xlu0  ;;  %811 = vst.msk [vmem:[#allocation3] sm:$0xff] %vm371_vm0, %v779_v15 }
 0x128   : > { %594 = vst.msk [vmem:[#allocation2 + $0xa8] sm:$0xff] %vm585_vm1, %v472_v28 }
 0x12a   : > { %656 = vrot.lane.b32.xlu1 %v539_v17, %s4324_s9 }
 0x12b   : > { %v545_v29 = vpop.trf.xlu1  ;;  %v473_v30 = vpop.trf.xlu0 }
 0x12c   : > { %595 = vst.msk [vmem:[#allocation2 + $0xb0] sm:$0xff] %vm585_vm1, %v473_v30 }
 0x12d   : > { %650 = vrot.lane.b32.xlu0 %v536_v11, %s4324_s9 }
 0x12e   : > { %658 = vrot.lane.b32.xlu1 %v540_v19, %s4324_s9 }
 0x12f   : > { %v546_v31 = vpop.trf.xlu1  ;;  %v474_v32 = vpop.trf.xlu0 }
 0x130   : > { %596 = vst.msk [vmem:[#allocation2 + $0xc8] sm:$0xff] %vm585_vm1, %v474_v32 }
 0x131   : > { %660 = vrot.lane.b32.xlu0 %v541_v21, %s4324_s9 }
 0x132   : > { %662 = vrot.lane.b32.xlu1 %v542_v23, %s4324_s9 }
 0x133   : > { %v547_v33 = vpop.trf.xlu1  ;;  %v475_v34 = vpop.trf.xlu0 }
 0x134   : > { %597 = vst.msk [vmem:[#allocation2 + $0xd0] sm:$0xff] %vm585_vm1, %v475_v34 }
 0x135   : > { %664 = vrot.lane.b32.xlu0 %v543_v25, %s4324_s9 }
 0x136   : > { %666 = vrot.lane.b32.xlu1 %v544_v27, %s4324_s9 }
 0x137   : > { %v548_v35 = vpop.trf.xlu1  ;;  %v476_v36 = vpop.trf.xlu0 }
 0x138   : > { %598 = vst.msk [vmem:[#allocation2 + $0xe8] sm:$0xff] %vm585_vm1, %v476_v36 }
 0x139   : > { %668 = vrot.lane.b32.xlu0 %v545_v29, %s4324_s9 }
 0x13a   : > { %670 = vrot.lane.b32.xlu1 %v546_v31, %s4324_s9 }
 0x13b   : > { %v549_v37 = vpop.trf.xlu1  ;;  %v477_v38 = vpop.trf.xlu0 }
 0x13c   : > { %599 = vst.msk [vmem:[#allocation2 + $0xf0] sm:$0xff] %vm585_vm1, %v477_v38 }
 0x13d   : > { %672 = vrot.lane.b32.xlu0 %v547_v33, %s4324_s9 }
 0x13e   : > { %674 = vrot.lane.b32.xlu1 %v548_v35, %s4324_s9 }
 0x13f   : > { %v550_v39 = vpop.trf.xlu1  ;;  %v478_v40 = vpop.trf.xlu0 }
 0x140   : > { %600 = vst.msk [vmem:[#allocation2 + $0x108] sm:$0xff] %vm585_vm1, %v478_v40 }
 0x141   : > { %676 = vrot.lane.b32.xlu0 %v549_v37, %s4324_s9 }
 0x142   : > { %678 = vrot.lane.b32.xlu1 %v550_v39, %s4324_s9 }
 0x143   : > { %v551_v41 = vpop.trf.xlu1  ;;  %v479_v42 = vpop.trf.xlu0 }
 0x144   : > { %601 = vst.msk [vmem:[#allocation2 + $0x110] sm:$0xff] %vm585_vm1, %v479_v42 }
 0x145   : > { %680 = vrot.lane.b32.xlu0 %v551_v41, %s4324_s9 }
 0x147   : > { %v568_v43 = vpop.trf.xlu1  ;;  %v496_v44 = vpop.trf.xlu0 }
 0x148   : > { %682 = vrot.lane.b32.xlu1 %v568_v43, %s4324_s9  ;;  %602 = vst.msk [vmem:[#allocation2 + $0x128] sm:$0xff] %vm585_vm1, %v496_v44 }
 0x14b   : > { %v569_v45 = vpop.trf.xlu1  ;;  %v497_v46 = vpop.trf.xlu0 }
 0x14c   : > { %684 = vrot.lane.b32.xlu0 %v569_v45, %s4324_s9  ;;  %603 = vst.msk [vmem:[#allocation2 + $0x130] sm:$0xff] %vm585_vm1, %v497_v46 }
 0x14f   : > { %v570_v47 = vpop.trf.xlu1  ;;  %v498_v48 = vpop.trf.xlu0 }
 0x150   : > { %686 = vrot.lane.b32.xlu1 %v570_v47, %s4324_s9  ;;  %604 = vst.msk [vmem:[#allocation2 + $0x148] sm:$0xff] %vm585_vm1, %v498_v48 }
 0x153   : > { %v571_v49 = vpop.trf.xlu1  ;;  %v499_v50 = vpop.trf.xlu0 }
 0x154   : > { %688 = vrot.lane.b32.xlu0 %v571_v49, %s4324_s9  ;;  %605 = vst.msk [vmem:[#allocation2 + $0x150] sm:$0xff] %vm585_vm1, %v499_v50 }
 0x157   : > { %v572_v51 = vpop.trf.xlu1  ;;  %v500_v52 = vpop.trf.xlu0 }
 0x158   : > { %690 = vrot.lane.b32.xlu1 %v572_v51, %s4324_s9  ;;  %606 = vst.msk [vmem:[#allocation2 + $0x168] sm:$0xff] %vm585_vm1, %v500_v52 }
 0x15b   : > { %v573_v53 = vpop.trf.xlu1  ;;  %v501_v54 = vpop.trf.xlu0 }
 0x15c   : > { %692 = vrot.lane.b32.xlu0 %v573_v53, %s4324_s9  ;;  %607 = vst.msk [vmem:[#allocation2 + $0x170] sm:$0xff] %vm585_vm1, %v501_v54 }
 0x15f   : > { %v574_v55 = vpop.trf.xlu1  ;;  %v502_v56 = vpop.trf.xlu0 }
 0x160   : > { %694 = vrot.lane.b32.xlu1 %v574_v55, %s4324_s9  ;;  %608 = vst.msk [vmem:[#allocation2 + $0x188] sm:$0xff] %vm585_vm1, %v502_v56 }
 0x163   : > { %v575_v57 = vpop.trf.xlu1  ;;  %v503_v58 = vpop.trf.xlu0 }
 0x164   : > { %696 = vrot.lane.b32.xlu0 %v575_v57, %s4324_s9  ;;  %609 = vst.msk [vmem:[#allocation2 + $0x190] sm:$0xff] %vm585_vm1, %v503_v58 }
 0x167   : > { %v576_v59 = vpop.trf.xlu1  ;;  %v504_v60 = vpop.trf.xlu0 }
 0x168   : > { %698 = vrot.lane.b32.xlu1 %v576_v59, %s4324_s9  ;;  %610 = vst.msk [vmem:[#allocation2 + $0x1a8] sm:$0xff] %vm585_vm1, %v504_v60 }
 0x16b   : > { %v577_v61 = vpop.trf.xlu1  ;;  %v505_v62 = vpop.trf.xlu0 }
 0x16c   : > { %700 = vrot.lane.b32.xlu0 %v577_v61, %s4324_s9  ;;  %611 = vst.msk [vmem:[#allocation2 + $0x1b0] sm:$0xff] %vm585_vm1, %v505_v62 }
 0x16f   : > { %v578_v63 = vpop.trf.xlu1  ;;  %v506_v0 = vpop.trf.xlu0 }
 0x170   : > { %702 = vrot.lane.b32.xlu1 %v578_v63, %s4324_s9  ;;  %612 = vst.msk [vmem:[#allocation2 + $0x1c8] sm:$0xff] %vm585_vm1, %v506_v0 }
 0x173   : > { %v579_v1 = vpop.trf.xlu1  ;;  %v507_v2 = vpop.trf.xlu0 }
 0x174   : > { %704 = vrot.lane.b32.xlu0 %v579_v1, %s4324_s9  ;;  %613 = vst.msk [vmem:[#allocation2 + $0x1d0] sm:$0xff] %vm585_vm1, %v507_v2 }
 0x177   : > { %v580_v3 = vpop.trf.xlu1  ;;  %v508_v4 = vpop.trf.xlu0 }
 0x178   : > { %706 = vrot.lane.b32.xlu1 %v580_v3, %s4324_s9  ;;  %614 = vst.msk [vmem:[#allocation2 + $0x1e8] sm:$0xff] %vm585_vm1, %v508_v4 }
 0x17b   : > { %v581_v6 = vpop.trf.xlu1  ;;  %v509_v7 = vpop.trf.xlu0 }
 0x17c   : > { %708 = vrot.lane.b32.xlu0 %v581_v6, %s4324_s9  ;;  %615 = vst.msk [vmem:[#allocation2 + $0x1f0] sm:$0xff] %vm585_vm1, %v509_v7 }
 0x17f   : > { %v582_v8 = vpop.trf.xlu1  ;;  %v510_v9 = vpop.trf.xlu0 }
 0x180   : > { %616 = vst.msk [vmem:[#allocation2 + $0x208] sm:$0xff] %vm585_vm1, %v510_v9  ;;  %710 = vrot.lane.b32.xlu1 %v582_v8, %s4324_s9 }
 0x183   : > { %v583_v11 = vpop.trf.xlu1  ;;  %v511_v12 = vpop.trf.xlu0 }
 0x184   : > { %712 = vrot.lane.b32.xlu0 %v583_v11, %s4324_s9  ;;  %617 = vst.msk [vmem:[#allocation2 + $0x210] sm:$0xff] %vm585_vm1, %v511_v12  ;;  %907 = vrot.lane.b32.xlu1 %v843_v10, %s4325_s19 }
 0x188   : > { %909 = vrot.lane.b32.xlu0 %v844_v13, %s4325_s19 }
 0x194   : > { %v653_v16 = vpop.permute.xlu1 %652 }
 0x195   : > { %748 = vst.msk [vmem:[#allocation2 + $0x30] sm:$0xff] %vm746_vm2, %v653_v16 }
 0x198   : > { %v655_v17 = vpop.permute.xlu1 %654 }
 0x199   : > { %749 = vst.msk [vmem:[#allocation2 + $0x48] sm:$0xff] %vm746_vm2, %v655_v17 }
 0x19c   : > { %v657_v18 = vpop.permute.xlu1 %656  ;;  %v4830_v19 = vld [vmem:[#allocation2 + $0x30] sm:$0xff] }
 0x19d   : > { %750 = vst.msk [vmem:[#allocation2 + $0x50] sm:$0xff] %vm746_vm2, %v657_v18  ;;  %913 = vrot.lane.b32.xlu0 %v4830_v19, %s4325_s19 }
 0x19f   : > { %v651_v20 = vpop.permute.xlu0 %650 }
 0x1a0   : > { %747 = vst.msk [vmem:[#allocation2 + $0x28] sm:$0xff] %vm746_vm2, %v651_v20  ;;  %v659_v21 = vpop.permute.xlu1 %658  ;;  %v4836_v22 = vld [vmem:[#allocation2 + $0x47] sm:$0xff] }
 0x1a1   : > { %751 = vst.msk [vmem:[#allocation2 + $0x68] sm:$0xff] %vm746_vm2, %v659_v21  ;;  %v4871_v35 = vld [vmem:[#allocation2 + $0x48] sm:$0xff] }
 0x1a2   : > { %815 = vst.msk [vmem:[#allocation3 + $0x60] sm:$0xff] %vm371_vm0, %v4836_v22 }
 0x1a3   : > { %v661_v23 = vpop.permute.xlu0 %660 }
 0x1a4   : > { %752 = vst.msk [vmem:[#allocation2 + $0x70] sm:$0xff] %vm746_vm2, %v661_v23  ;;  %v663_v24 = vpop.permute.xlu1 %662  ;;  %v4842_v25 = vld [vmem:[#allocation2 + $0x50] sm:$0xff] }
 0x1a5   : > { %753 = vst.msk [vmem:[#allocation2 + $0x88] sm:$0xff] %vm746_vm2, %v663_v24  ;;  %917 = vrot.lane.b32.xlu0 %v4842_v25, %s4325_s19  ;;  %v4847_v26 = vld [vmem:[#allocation2 + $0x4f] sm:$0xff] }
 0x1a6   : > { %816 = vst.msk [vmem:[#allocation3 + $0x78] sm:$0xff] %vm371_vm0, %v4847_v26 }
 0x1a7   : > { %v665_v27 = vpop.permute.xlu0 %664  ;;  %v4851_v28 = vld [vmem:[#allocation2 + $0x28] sm:$0xff] }
 0x1a8   : > { %v4853_v29 = vld [vmem:[#allocation2 + $0x2f] sm:$0xff]  ;;  %754 = vst.msk [vmem:[#allocation2 + $0x90] sm:$0xff] %vm746_vm2, %v665_v27  ;;  %v667_v30 = vpop.permute.xlu1 %666  ;;  %911 = vrot.lane.b32.xlu1 %v4851_v28, %s4325_s19  ;;  %v4860_v31 = vld [vmem:[#allocation2 + $0x27] sm:$0xff] }
 0x1a9   : > { %814 = vst.msk [vmem:[#allocation3 + $0x48] sm:$0xff] %vm371_vm0, %v4853_v29  ;;  %v4862_v32 = vld [vmem:[#allocation2 + $0x67] sm:$0xff]  ;;  %813 = vst.msk [vmem:[#allocation3 + $0x30] sm:$0xff] %vm371_vm0, %v4860_v31 }
 0x1aa   : > { %755 = vst.msk [vmem:[#allocation2 + $0xa8] sm:$0xff] %vm746_vm2, %v667_v30  ;;  %v4889_v41 = vld [vmem:[#allocation2 + $0x68] sm:$0xff] }
 0x1ab   : > { %817 = vst.msk [vmem:[#allocation3 + $0x90] sm:$0xff] %vm371_vm0, %v4862_v32  ;;  %v669_v33 = vpop.permute.xlu0 %668  ;;  %v4869_v34 = vld [vmem:[#allocation2 + $0x70] sm:$0xff] }
 0x1ac   : > { %756 = vst.msk [vmem:[#allocation2 + $0xb0] sm:$0xff] %vm746_vm2, %v669_v33  ;;  %v671_v36 = vpop.permute.xlu1 %670  ;;  %921 = vrot.lane.b32.xlu0 %v4869_v34, %s4325_s19  ;;  %915 = vrot.lane.b32.xlu1 %v4871_v35, %s4325_s19  ;;  %v4878_v37 = vld [vmem:[#allocation2 + $0x6f] sm:$0xff]  ;;  %v4880_v38 = vld [vmem:[#allocation2 + $0x87] sm:$0xff] }
 0x1ad   : > { %757 = vst.msk [vmem:[#allocation2 + $0xc8] sm:$0xff] %vm746_vm2, %v671_v36  ;;  %v4905_v47 = vld [vmem:[#allocation2 + $0x88] sm:$0xff] }
 0x1ae   : > { %818 = vst.msk [vmem:[#allocation3 + $0xa8] sm:$0xff] %vm371_vm0, %v4878_v37  ;;  %819 = vst.msk [vmem:[#allocation3 + $0xc0] sm:$0xff] %vm371_vm0, %v4880_v38 }
 0x1af   : > { %v673_v39 = vpop.permute.xlu0 %672  ;;  %v4887_v40 = vld [vmem:[#allocation2 + $0x90] sm:$0xff] }
 0x1b0   : > { %758 = vst.msk [vmem:[#allocation2 + $0xd0] sm:$0xff] %vm746_vm2, %v673_v39  ;;  %v675_v42 = vpop.permute.xlu1 %674  ;;  %925 = vrot.lane.b32.xlu0 %v4887_v40, %s4325_s19  ;;  %919 = vrot.lane.b32.xlu1 %v4889_v41, %s4325_s19  ;;  %v4896_v43 = vld [vmem:[#allocation2 + $0x8f] sm:$0xff] }
 0x1b1   : > { %v4898_v44 = vld [vmem:[#allocation2 + $0xa7] sm:$0xff]  ;;  %759 = vst.msk [vmem:[#allocation2 + $0xe8] sm:$0xff] %vm746_vm2, %v675_v42 }
 0x1b2   : > { %820 = vst.msk [vmem:[#allocation3 + $0xd8] sm:$0xff] %vm371_vm0, %v4896_v43  ;;  %821 = vst.msk [vmem:[#allocation3 + $0xf0] sm:$0xff] %vm371_vm0, %v4898_v44  ;;  %v4920_v52 = vld [vmem:[#allocation2 + $0xa8] sm:$0xff] }
 0x1b3   : > { %v677_v45 = vpop.permute.xlu0 %676  ;;  %v854_v46 = vld [vmem:[#allocation2 + $0xb0] sm:$0xff] }
 0x1b4   : > { %760 = vst.msk [vmem:[#allocation2 + $0xf0] sm:$0xff] %vm746_vm2, %v677_v45  ;;  %v679_v48 = vpop.permute.xlu1 %678  ;;  %929 = vrot.lane.b32.xlu0 %v854_v46, %s4325_s19  ;;  %923 = vrot.lane.b32.xlu1 %v4905_v47, %s4325_s19  ;;  %v4911_v49 = vld [vmem:[#allocation2 + $0xaf] sm:$0xff]  ;;  %v4913_v50 = vld [vmem:[#allocation2 + $0xc7] sm:$0xff] }
 0x1b5   : > { %761 = vst.msk [vmem:[#allocation2 + $0x108] sm:$0xff] %vm746_vm2, %v679_v48  ;;  %v855_v1 = vld [vmem:[#allocation2 + $0xc8] sm:$0xff] }
 0x1b6   : > { %822 = vst.msk [vmem:[#allocation3 + $0x108] sm:$0xff] %vm371_vm0, %v4911_v49  ;;  %823 = vst.msk [vmem:[#allocation3 + $0x120] sm:$0xff] %vm371_vm0, %v4913_v50 }
 0x1b7   : > { %v681_v51 = vpop.permute.xlu0 %680  ;;  %v4925_v53 = vld [vmem:[#allocation2 + $0xcf] sm:$0xff] }
 0x1b8   : > { %762 = vst.msk [vmem:[#allocation2 + $0x110] sm:$0xff] %vm746_vm2, %v681_v51  ;;  %927 = vrot.lane.b32.xlu1 %v4920_v52, %s4325_s19  ;;  %v793_v54 = vld [vmem:[#allocation2 + $0xe7] sm:$0xff]  ;;  %v856_v4 = vld [vmem:[#allocation2 + $0xd0] sm:$0xff] }
 0x1b9   : > { %824 = vst.msk [vmem:[#allocation3 + $0x138] sm:$0xff] %vm371_vm0, %v4925_v53  ;;  %825 = vst.msk [vmem:[#allocation3 + $0x150] sm:$0xff] %vm371_vm0, %v793_v54  ;;  %v857_v10 = vld [vmem:[#allocation2 + $0xe8] sm:$0xff] }
 0x1ba   : > { %v683_v55 = vpop.permute.xlu1 %682 }
 0x1bb   : > { %763 = vst.msk [vmem:[#allocation2 + $0x128] sm:$0xff] %vm746_vm2, %v683_v55  ;;  %v794_v56 = vld [vmem:[#allocation2 + $0xef] sm:$0xff] }
 0x1bc   : > { %v795_v57 = vld [vmem:[#allocation2 + $0x107] sm:$0xff]  ;;  %826 = vst.msk [vmem:[#allocation3 + $0x168] sm:$0xff] %vm371_vm0, %v794_v56  ;;  %v858_v13 = vld [vmem:[#allocation2 + $0xf0] sm:$0xff] }
 0x1bd   : > { %827 = vst.msk [vmem:[#allocation3 + $0x180] sm:$0xff] %vm371_vm0, %v795_v57  ;;  %v859_v18 = vld [vmem:[#allocation2 + $0x108] sm:$0xff] }
 0x1be   : > { %v685_v58 = vpop.permute.xlu0 %684 }
 0x1bf   : > { %764 = vst.msk [vmem:[#allocation2 + $0x130] sm:$0xff] %vm746_vm2, %v685_v58  ;;  %v796_v59 = vld [vmem:[#allocation2 + $0x10f] sm:$0xff] }
 0x1c0   : > { %828 = vst.msk [vmem:[#allocation3 + $0x198] sm:$0xff] %vm371_vm0, %v796_v59  ;;  %v860_v23 = vld [vmem:[#allocation2 + $0x110] sm:$0xff] }
 0x1c2   : > { %v687_v60 = vpop.permute.xlu1 %686  ;;  %v861_v61 = vld [vmem:[#allocation2 + $0x128] sm:$0xff] }
 0x1c3   : > { %v797_v62 = vld [vmem:[#allocation2 + $0x127] sm:$0xff]  ;;  %765 = vst.msk [vmem:[#allocation2 + $0x148] sm:$0xff] %vm746_vm2, %v687_v60  ;;  %943 = vrot.lane.b32.xlu1 %v861_v61, %s4325_s19 }
 0x1c4   : > { %829 = vst.msk [vmem:[#allocation3 + $0x1b0] sm:$0xff] %vm371_vm0, %v797_v62  ;;  %v2565_v60 = vld [vmem:[#allocation10 + $0x78] sm:$0xff] }
 0x1c5   : > { %2700 = vmatpush1.msra.mxu0 %v2565_v60  ;;  %3852 = vmatpush1.msra.mxu1 %v2565_v60 }
 0x1c6   : > { %v689_v63 = vpop.permute.xlu0 %688  ;;  %v862_v0 = vld [vmem:[#allocation2 + $0x130] sm:$0xff]  ;;  %2701 = vmatprep.subr.mxu0 %v4323_v5  ;;  %3821 = vmatprep.subr.mxu1 %v4323_v5 }
 0x1c7   : > { %766 = vst.msk [vmem:[#allocation2 + $0x150] sm:$0xff] %vm746_vm2, %v689_v63  ;;  %945 = vrot.lane.b32.xlu0 %v862_v0, %s4325_s19  ;;  %931 = vrot.lane.b32.xlu1 %v855_v1, %s4325_s19  ;;  %v798_v2 = vld [vmem:[#allocation2 + $0x12f] sm:$0xff]  ;;  %v2564_v0 = vld [vmem:[#allocation10 + $0x70] sm:$0xff]  ;;  %v2563_v1 = vld [vmem:[#allocation10 + $0x68] sm:$0xff] }
 0x1c8   : > { %830 = vst.msk [vmem:[#allocation3 + $0x1c8] sm:$0xff] %vm371_vm0, %v798_v2  ;;  %2702 = vmatpush1.msra.mxu0 %v2564_v0  ;;  %v1036_v2 = vld [vmem:[#allocation2 + $0x9] sm:$0xff]  ;;  %3853 = vmatpush1.msra.mxu1 %v2564_v0  ;;  %v1049_v0 = vld [vmem:[#allocation2 + $0xd1] sm:$0xff] }
 0x1c9   : > { %2703 = vmatprep.subr.mxu0 %v4323_v5  ;;  %3822 = vmatprep.subr.mxu1 %v4323_v5 }
 0x1ca   : > { %v691_v3 = vpop.permute.xlu1 %690  ;;  %v863_v6 = vld [vmem:[#allocation2 + $0x148] sm:$0xff]  ;;  %2704 = vmatpush1.msra.mxu0 %v2563_v1  ;;  %3854 = vmatpush1.msra.mxu1 %v2563_v1 }
 0x1cb   : > { %v799_v7 = vld [vmem:[#allocation2 + $0x147] sm:$0xff]  ;;  %767 = vst.msk [vmem:[#allocation2 + $0x168] sm:$0xff] %vm746_vm2, %v691_v3  ;;  %933 = vrot.lane.b32.xlu0 %v856_v4, %s4325_s19  ;;  %947 = vrot.lane.b32.xlu1 %v863_v6, %s4325_s19 }
 0x1cc   : > { %831 = vst.msk [vmem:[#allocation3 + $0x1e0] sm:$0xff] %vm371_vm0, %v799_v7  ;;  %2705 = vmatprep.subr.mxu0 %v4323_v5  ;;  %3823 = vmatprep.subr.mxu1 %v4323_v5  ;;  %v1050_v1 = vld [vmem:[#allocation2 + $0xe9] sm:$0xff] }
 0x1ce   : > { %v693_v8 = vpop.permute.xlu0 %692  ;;  %v864_v9 = vld [vmem:[#allocation2 + $0x150] sm:$0xff] }
 0x1cf   : > { %768 = vst.msk [vmem:[#allocation2 + $0x170] sm:$0xff] %vm746_vm2, %v693_v8  ;;  %949 = vrot.lane.b32.xlu0 %v864_v9, %s4325_s19  ;;  %935 = vrot.lane.b32.xlu1 %v857_v10, %s4325_s19  ;;  %v800_v11 = vld [vmem:[#allocation2 + $0x14f] sm:$0xff] }
 0x1d0   : > { %832 = vst.msk [vmem:[#allocation3 + $0x1f8] sm:$0xff] %vm371_vm0, %v800_v11  ;;  %v2562_v8 = vld [vmem:[#allocation10 + $0x60] sm:$0xff]  ;;  %v2561_v9 = vld [vmem:[#allocation10 + $0x58] sm:$0xff] }
 0x1d1   : > { %v1037_v10 = vld [vmem:[#allocation2 + $0x11] sm:$0xff]  ;;  %2706 = vmatpush1.msra.mxu0 %v2562_v8  ;;  %3855 = vmatpush1.msra.mxu1 %v2562_v8  ;;  %v5028_v11 = vld [vmem:[#allocation2 + $0x29] sm:$0xff] }
 0x1d2   : > { %v695_v12 = vpop.permute.xlu1 %694  ;;  %v865_v14 = vld [vmem:[#allocation2 + $0x168] sm:$0xff]  ;;  %2707 = vmatprep.subr.mxu0 %v4323_v5  ;;  %3824 = vmatprep.subr.mxu1 %v4323_v5 }
 0x1d3   : > { %v801_v15 = vld [vmem:[#allocation2 + $0x167] sm:$0xff]  ;;  %769 = vst.msk [vmem:[#allocation2 + $0x188] sm:$0xff] %vm746_vm2, %v695_v12  ;;  %937 = vrot.lane.b32.xlu0 %v858_v13, %s4325_s19  ;;  %951 = vrot.lane.b32.xlu1 %v865_v14, %s4325_s19  ;;  %v2559_v14 = vld [vmem:[#allocation10 + $0x48] sm:$0xff] }
 0x1d4   : > { %833 = vst.msk [vmem:[#allocation3 + $0x210] sm:$0xff] %vm371_vm0, %v801_v15  ;;  %2708 = vmatpush1.msra.mxu0 %v2561_v9  ;;  %v2560_v13 = vld [vmem:[#allocation10 + $0x50] sm:$0xff]  ;;  %3856 = vmatpush1.msra.mxu1 %v2561_v9  ;;  %v5037_v15 = vld [vmem:[#allocation2 + $0x31] sm:$0xff]  ;;  %v1052_v8 = vld [vmem:[#allocation2 + $0x109] sm:$0xff] }
 0x1d5   : > { %2709 = vmatprep.subr.mxu0 %v4323_v5  ;;  %3825 = vmatprep.subr.mxu1 %v4323_v5 }
 0x1d6   : > { %v697_v16 = vpop.permute.xlu0 %696  ;;  %v866_v17 = vld [vmem:[#allocation2 + $0x170] sm:$0xff]  ;;  %2710 = vmatpush1.msra.mxu0 %v2560_v13  ;;  %3857 = vmatpush1.msra.mxu1 %v2560_v13 }
 0x1d7   : > { %770 = vst.msk [vmem:[#allocation2 + $0x190] sm:$0xff] %vm746_vm2, %v697_v16  ;;  %953 = vrot.lane.b32.xlu0 %v866_v17, %s4325_s19  ;;  %939 = vrot.lane.b32.xlu1 %v859_v18, %s4325_s19  ;;  %v802_v20 = vld [vmem:[#allocation2 + $0x16f] sm:$0xff] }
 0x1d8   : > { %834 = vst.msk [vmem:[#allocation3 + $0x228] sm:$0xff] %vm371_vm0, %v802_v20  ;;  %v5039_v16 = vld [vmem:[#allocation2 + $0x49] sm:$0xff]  ;;  %2711 = vmatprep.subr.mxu0 %v4323_v5  ;;  %3826 = vmatprep.subr.mxu1 %v4323_v5  ;;  %v5048_v18 = vld [vmem:[#allocation2 + $0x51] sm:$0xff] }
 0x1d9   : > { %v2558_v17 = vld [vmem:[#allocation10 + $0x40] sm:$0xff]  ;;  %2712 = vmatpush1.msra.mxu0 %v2559_v14  ;;  %3858 = vmatpush1.msra.mxu1 %v2559_v14 }
 0x1da   : > { %v699_v21 = vpop.permute.xlu1 %698  ;;  %v867_v24 = vld [vmem:[#allocation2 + $0x188] sm:$0xff]  ;;  %2713 = vmatprep.subr.mxu0 %v4323_v5  ;;  %3827 = vmatprep.subr.mxu1 %v4323_v5  ;;  %v1053_v13 = vld [vmem:[#allocation2 + $0x111] sm:$0xff] }
 0x1db   : > { %v803_v27 = vld [vmem:[#allocation2 + $0x187] sm:$0xff]  ;;  %771 = vst.msk [vmem:[#allocation2 + $0x1a8] sm:$0xff] %vm746_vm2, %v699_v21  ;;  %941 = vrot.lane.b32.xlu0 %v860_v23, %s4325_s19  ;;  %955 = vrot.lane.b32.xlu1 %v867_v24, %s4325_s19  ;;  %v5059_v24 = vld [vmem:[#allocation2 + $0x71] sm:$0xff] }
 0x1dc   : > { %835 = vst.msk [vmem:[#allocation3 + $0x240] sm:$0xff] %vm371_vm0, %v803_v27  ;;  %v5050_v20 = vld [vmem:[#allocation2 + $0x69] sm:$0xff]  ;;  %2714 = vmatpush1.msra.mxu0 %v2558_v17  ;;  %3859 = vmatpush1.msra.mxu1 %v2558_v17  ;;  %v2556_v23 = vld [vmem:[#allocation10 + $0x30] sm:$0xff] }
 0x1dd   : > { %v2557_v21 = vld [vmem:[#allocation10 + $0x38] sm:$0xff]  ;;  %2715 = vmatprep.subr.mxu0 %v4323_v5  ;;  %3828 = vmatprep.subr.mxu1 %v4323_v5  ;;  %v2580_v17 = vld [vmem:[#allocation10 + $0xf0] sm:$0xff] }
 0x1de   : > { %v701_v30 = vpop.permute.xlu0 %700  ;;  %v868_v33 = vld [vmem:[#allocation2 + $0x190] sm:$0xff]  ;;  %2716 = vmatpush1.msra.mxu0 %v2557_v21  ;;  %3860 = vmatpush1.msra.mxu1 %v2557_v21  ;;  %v2579_v21 = vld [vmem:[#allocation10 + $0xe8] sm:$0xff] }
 0x1df   : > { %v804_v36 = vld [vmem:[#allocation2 + $0x18f] sm:$0xff]  ;;  %772 = vst.msk [vmem:[#allocation2 + $0x1b0] sm:$0xff] %vm746_vm2, %v701_v30  ;;  %957 = vrot.lane.b32.xlu0 %v868_v33, %s4325_s19  ;;  %2717 = vmatprep.subr.mxu0 %v4323_v5  ;;  %v2555_v30 = vld [vmem:[#allocation10 + $0x28] sm:$0xff] }
 0x1e0   : > { %836 = vst.msk [vmem:[#allocation3 + $0x258] sm:$0xff] %vm371_vm0, %v804_v36  ;;  %v5061_v27 = vld [vmem:[#allocation2 + $0x89] sm:$0xff]  ;;  %2718 = vmatpush1.msra.mxu0 %v2556_v23  ;;  %3829 = vmatprep.subr.mxu1 %v4323_v5  ;;  %v5070_v33 = vld [vmem:[#allocation2 + $0x91] sm:$0xff] }
 0x1e1   : > { %2719 = vmatprep.subr.mxu0 %v4323_v5  ;;  %3861 = vmatpush1.msra.mxu1 %v2556_v23  ;;  %v1046_v36 = vld [vmem:[#allocation2 + $0xa9] sm:$0xff] }
 0x1e2   : > { %v703_v39 = vpop.permute.xlu1 %702  ;;  %v4965_v42 = vld [vmem:[#allocation2 + $0x1a8] sm:$0xff]  ;;  %2720 = vmatpush1.msra.mxu0 %v2555_v30  ;;  %3830 = vmatprep.subr.mxu1 %v4323_v5 }
 0x1e3   : > { %v4967_v45 = vld [vmem:[#allocation2 + $0x1a7] sm:$0xff]  ;;  %773 = vst.msk [vmem:[#allocation2 + $0x1c8] sm:$0xff] %vm746_vm2, %v703_v39  ;;  %959 = vrot.lane.b32.xlu1 %v4965_v42, %s4325_s19  ;;  %v2554_v39 = vld [vmem:[#allocation10 + $0x20] sm:$0xff]  ;;  %2721 = vmatprep.subr.mxu0 %v4323_v5 }
 0x1e4   : > { %837 = vst.msk [vmem:[#allocation3 + $0x270] sm:$0xff] %vm371_vm0, %v4967_v45  ;;  %3862 = vmatpush1.msra.mxu1 %v2555_v30  ;;  %2722 = vmatpush1.msra.mxu0 %v2554_v39  ;;  %v1054_v14 = vld [vmem:[#allocation2 + $0x129] sm:$0xff] }
 0x1e5   : > { %3831 = vmatprep.subr.mxu1 %v4323_v5  ;;  %2723 = vmatprep.subr.mxu0 %v4323_v5 }
 0x1e6   : > { %v705_v46 = vpop.permute.xlu0 %704  ;;  %v4974_v48 = vld [vmem:[#allocation2 + $0x1b0] sm:$0xff]  ;;  %3863 = vmatpush1.msra.mxu1 %v2554_v39 }
 0x1e7   : > { %v4976_v51 = vld [vmem:[#allocation2 + $0x1af] sm:$0xff]  ;;  %774 = vst.msk [vmem:[#allocation2 + $0x1d0] sm:$0xff] %vm746_vm2, %v705_v46  ;;  %961 = vrot.lane.b32.xlu0 %v4974_v48, %s4325_s19  ;;  %3832 = vmatprep.subr.mxu1 %v4323_v5 }
 0x1e8   : > { %838 = vst.msk [vmem:[#allocation3 + $0x288] sm:$0xff] %vm371_vm0, %v4976_v51  ;;  %v2553_v46 = vld [vmem:[#allocation10 + $0x18] sm:$0xff] }
 0x1e9   : > { %2724 = vmatpush1.msra.mxu0 %v2553_v46  ;;  %3864 = vmatpush1.msra.mxu1 %v2553_v46  ;;  %v1056_v39 = vld [vmem:[#allocation2 + $0x149] sm:$0xff] }
 0x1ea   : > { %v707_v54 = vpop.permute.xlu1 %706  ;;  %v4983_v55 = vld [vmem:[#allocation2 + $0x1c8] sm:$0xff]  ;;  %2725 = vmatprep.subr.mxu0 %v4323_v5  ;;  %3833 = vmatprep.subr.mxu1 %v4323_v5  ;;  %v2578_v46 = vld [vmem:[#allocation10 + $0xe0] sm:$0xff] }
 0x1eb   : > { %v4985_v56 = vld [vmem:[#allocation2 + $0x1c7] sm:$0xff]  ;;  %775 = vst.msk [vmem:[#allocation2 + $0x1e8] sm:$0xff] %vm746_vm2, %v707_v54  ;;  %963 = vrot.lane.b32.xlu1 %v4983_v55, %s4325_s19  ;;  %v1047_v54 = vld [vmem:[#allocation2 + $0xb1] sm:$0xff] }
 0x1ec   : > { %839 = vst.msk [vmem:[#allocation3 + $0x2a0] sm:$0xff] %vm371_vm0, %v4985_v56 }
 0x1ee   : > { %v709_v57 = vpop.permute.xlu0 %708  ;;  %v4992_v58 = vld [vmem:[#allocation2 + $0x1d0] sm:$0xff] }
 0x1ef   : > { %v4994_v59 = vld [vmem:[#allocation2 + $0x1cf] sm:$0xff]  ;;  %776 = vst.msk [vmem:[#allocation2 + $0x1f0] sm:$0xff] %vm746_vm2, %v709_v57  ;;  %965 = vrot.lane.b32.xlu0 %v4992_v58, %s4325_s19 }
 0x1f0   : > { %840 = vst.msk [vmem:[#allocation3 + $0x2b8] sm:$0xff] %vm371_vm0, %v4994_v59  ;;  %v1048_v57 = vld [vmem:[#allocation2 + $0xc9] sm:$0xff] }
 0x1f2   : > { %v5003_v61 = vld [vmem:[#allocation2 + $0x1e8] sm:$0xff]  ;;  %v711_v62 = vpop.permute.xlu1 %710 }
 0x1f3   : > { %v5005_v63 = vld [vmem:[#allocation2 + $0x1e7] sm:$0xff]  ;;  %967 = vrot.lane.b32.xlu1 %v5003_v61, %s4325_s19  ;;  %777 = vst.msk [vmem:[#allocation2 + $0x208] sm:$0xff] %vm746_vm2, %v711_v62 }
 0x1f4   : > { %841 = vst.msk [vmem:[#allocation3 + $0x2d0] sm:$0xff] %vm371_vm0, %v5005_v63  ;;  %v2552_v62 = vld [vmem:[#allocation10 + $0x10] sm:$0xff] }
 0x1f5   : > { %2726 = vmatpush1.msra.mxu0 %v2552_v62  ;;  %3865 = vmatpush1.msra.mxu1 %v2552_v62  ;;  %v1058_v62 = vld [vmem:[#allocation2 + $0x169] sm:$0xff] }
 0x1f6   : > { %v5014_v3 = vld [vmem:[#allocation2 + $0x1f0] sm:$0xff]  ;;  %v713_v4 = vpop.permute.xlu0 %712  ;;  %v908_v6 = vpop.permute.xlu1 %907  ;;  %2727 = vmatprep.subr.mxu0 %v4323_v5  ;;  %3834 = vmatprep.subr.mxu1 %v4323_v5 }
 0x1f7   : > { %v5016_v7 = vld [vmem:[#allocation2 + $0x1ef] sm:$0xff]  ;;  %969 = vrot.lane.b32.xlu0 %v5014_v3, %s4325_s19  ;;  %1100 = vrot.lane.b32.xlu1 %v1036_v2, %s4326_s5  ;;  %778 = vst.msk [vmem:[#allocation2 + $0x210] sm:$0xff] %vm746_vm2, %v713_v4  ;;  %v2551_v2 = vld [vmem:[#allocation10 + $0x8] sm:$0xff] }
 0x1f8   : > { %1004 = vst.msk [vmem:[#allocation3] sm:$0xff] %vm1003_vm3, %v908_v6  ;;  %2728 = vmatpush1.msra.mxu0 %v2551_v2  ;;  %v2550_v4 = vld [vmem:[#allocation10] sm:$0xff]  ;;  %3866 = vmatpush1.msra.mxu1 %v2551_v2 }
 0x1f9   : > { %842 = vst.msk [vmem:[#allocation3 + $0x2e8] sm:$0xff] %vm371_vm0, %v5016_v7  ;;  %v1051_v6 = vld [vmem:[#allocation2 + $0xf1] sm:$0xff]  ;;  %2729 = vmatprep.subr.mxu0 %v4323_v5  ;;  %3835 = vmatprep.subr.mxu1 %v4323_v5 }
 0x1fa   : > { %v910_v12 = vpop.permute.xlu0 %909  ;;  %2730 = vmatpush1.msra.mxu0 %v2550_v4  ;;  %3867 = vmatpush1.msra.mxu1 %v2550_v4 }
 0x1fb   : > { %1102 = vrot.lane.b32.xlu0 %v1037_v10, %s4326_s5  ;;  %1104 = vrot.lane.b32.xlu1 %v5028_v11, %s4326_s5  ;;  %1005 = vst.msk [vmem:[#allocation3 + $0x18] sm:$0xff] %vm1003_vm3, %v910_v12  ;;  %v2581_v10 = vld [vmem:[#allocation10 + $0xf8] sm:$0xff] }
 0x1fc   : > { %2731 = vmatprep.subr.mxu0 %v4323_v5  ;;  %3836 = vmatprep.subr.mxu1 %v4323_v5 }
 0x1fd   : > { %2732 = vmatpush2.msra.mxu0 %v2581_v10  ;;  %3868 = vmatpush2.msra.mxu1 %v2581_v10 }
 0x1fe   : > { %2733 = vmatprep.subr.mxu0 %v4323_v5  ;;  %3837 = vmatprep.subr.mxu1 %v4323_v5 }
 0x1ff   : > { %1106 = vrot.lane.b32.xlu0 %v5037_v15, %s4326_s5  ;;  %1108 = vrot.lane.b32.xlu1 %v5039_v16, %s4326_s5 }
 0x200   : > { %2734 = vmatpush2.msra.mxu0 %v2580_v17  ;;  %3869 = vmatpush2.msra.mxu1 %v2580_v17 }
 0x201   : > { %2735 = vmatprep.subr.mxu0 %v4323_v5  ;;  %3838 = vmatprep.subr.mxu1 %v4323_v5 }
 0x202   : > { %2736 = vmatpush2.msra.mxu0 %v2579_v21  ;;  %3870 = vmatpush2.msra.mxu1 %v2579_v21 }
 0x203   : > { %1110 = vrot.lane.b32.xlu0 %v5048_v18, %s4326_s5  ;;  %1112 = vrot.lane.b32.xlu1 %v5050_v20, %s4326_s5 }
 0x204   : > { %2737 = vmatprep.subr.mxu0 %v4323_v5  ;;  %3839 = vmatprep.subr.mxu1 %v4323_v5 }
 0x205   : > { %2738 = vmatpush2.msra.mxu0 %v2578_v46  ;;  %3871 = vmatpush2.msra.mxu1 %v2578_v46 }
 0x206   : > { %2739 = vmatprep.subr.mxu0 %v4323_v5  ;;  %3840 = vmatprep.subr.mxu1 %v4323_v5 }
 0x207   : > { %1114 = vrot.lane.b32.xlu0 %v5059_v24, %s4326_s5  ;;  %1116 = vrot.lane.b32.xlu1 %v5061_v27, %s4326_s5 }
 0x20b   : > { %1118 = vrot.lane.b32.xlu0 %v5070_v33, %s4326_s5  ;;  %1120 = vrot.lane.b32.xlu1 %v1046_v36, %s4326_s5  ;;  %v1055_v36 = vld [vmem:[#allocation2 + $0x131] sm:$0xff] }
 0x20f   : > { %1122 = vrot.lane.b32.xlu0 %v1047_v54, %s4326_s5  ;;  %v914_v60 = vpop.permute.xlu0 %913  ;;  %1124 = vrot.lane.b32.xlu1 %v1048_v57, %s4326_s5 }
 0x210   : > { %1007 = vst.msk [vmem:[#allocation3 + $0x48] sm:$0xff] %vm1003_vm3, %v914_v60  ;;  %v1057_v60 = vld [vmem:[#allocation2 + $0x151] sm:$0xff] }
 0x213   : > { %1126 = vrot.lane.b32.xlu0 %v1049_v0, %s4326_s5  ;;  %1128 = vrot.lane.b32.xlu1 %v1050_v1, %s4326_s5  ;;  %v2577_v0 = vld [vmem:[#allocation10 + $0xd8] sm:$0xff]  ;;  %v2576_v1 = vld [vmem:[#allocation10 + $0xd0] sm:$0xff] }
 0x214   : > { %2740 = vmatpush2.msra.mxu0 %v2577_v0  ;;  %3872 = vmatpush2.msra.mxu1 %v2577_v0 }
 0x215   : > { %2741 = vmatprep.subr.mxu0 %v4323_v5  ;;  %3841 = vmatprep.subr.mxu1 %v4323_v5 }
 0x216   : > { %2742 = vmatpush2.msra.mxu0 %v2576_v1  ;;  %3873 = vmatpush2.msra.mxu1 %v2576_v1  ;;  %v1061_v1 = vld [vmem:[#allocation2 + $0x191] sm:$0xff] }
 0x217   : > { %1130 = vrot.lane.b32.xlu0 %v1051_v6, %s4326_s5  ;;  %v918_v9 = vpop.permute.xlu0 %917  ;;  %1132 = vrot.lane.b32.xlu1 %v1052_v8, %s4326_s5  ;;  %v1059_v6 = vld [vmem:[#allocation2 + $0x171] sm:$0xff]  ;;  %v1060_v8 = vld [vmem:[#allocation2 + $0x189] sm:$0xff] }
 0x218   : > { %1009 = vst.msk [vmem:[#allocation3 + $0x78] sm:$0xff] %vm1003_vm3, %v918_v9  ;;  %v2575_v9 = vld [vmem:[#allocation10 + $0xc8] sm:$0xff]  ;;  %2743 = vmatprep.subr.mxu0 %v4323_v5  ;;  %3842 = vmatprep.subr.mxu1 %v4323_v5 }
 0x219   : > { %2744 = vmatpush2.msra.mxu0 %v2575_v9  ;;  %3874 = vmatpush2.msra.mxu1 %v2575_v9 }
 0x21a   : > { %v912_v12 = vpop.permute.xlu1 %911  ;;  %2745 = vmatprep.subr.mxu0 %v4323_v5  ;;  %3843 = vmatprep.subr.mxu1 %v4323_v5 }
 0x21b   : > { %1006 = vst.msk [vmem:[#allocation3 + $0x30] sm:$0xff] %vm1003_vm3, %v912_v12  ;;  %1134 = vrot.lane.b32.xlu0 %v1053_v13, %s4326_s5  ;;  %1136 = vrot.lane.b32.xlu1 %v1054_v14, %s4326_s5  ;;  %v2574_v12 = vld [vmem:[#allocation10 + $0xc0] sm:$0xff]  ;;  %v2573_v13 = vld [vmem:[#allocation10 + $0xb8] sm:$0xff] }
 0x21c   : > { %2746 = vmatpush2.msra.mxu0 %v2574_v12  ;;  %3875 = vmatpush2.msra.mxu1 %v2574_v12  ;;  %v2570_v14 = vld [vmem:[#allocation10 + $0xa0] sm:$0xff] }
 0x21d   : > { %2747 = vmatprep.subr.mxu0 %v4323_v5  ;;  %3844 = vmatprep.subr.mxu1 %v4323_v5 }
 0x21e   : > { %v922_v23 = vpop.permute.xlu0 %921  ;;  %v916_v30 = vpop.permute.xlu1 %915  ;;  %2748 = vmatpush2.msra.mxu0 %v2573_v13  ;;  %3876 = vmatpush2.msra.mxu1 %v2573_v13 }
 0x21f   : > { %1011 = vst.msk [vmem:[#allocation3 + $0xa8] sm:$0xff] %vm1003_vm3, %v922_v23  ;;  %1008 = vst.msk [vmem:[#allocation3 + $0x60] sm:$0xff] %vm1003_vm3, %v916_v30  ;;  %1138 = vrot.lane.b32.xlu0 %v1055_v36, %s4326_s5  ;;  %1140 = vrot.lane.b32.xlu1 %v1056_v39, %s4326_s5  ;;  %v2568_v23 = vld [vmem:[#allocation10 + $0x90] sm:$0xff]  ;;  %v2567_v30 = vld [vmem:[#allocation10 + $0x88] sm:$0xff] }
 0x220   : > { %2749 = vmatprep.subr.mxu0 %v4323_v5  ;;  %3845 = vmatprep.subr.mxu1 %v4323_v5 }
 0x222   : > { %v926_v54 = vpop.permute.xlu0 %925  ;;  %v920_v57 = vpop.permute.xlu1 %919 }
 0x223   : > { %1013 = vst.msk [vmem:[#allocation3 + $0xd8] sm:$0xff] %vm1003_vm3, %v926_v54  ;;  %1010 = vst.msk [vmem:[#allocation3 + $0x90] sm:$0xff] %vm1003_vm3, %v920_v57  ;;  %1142 = vrot.lane.b32.xlu0 %v1057_v60, %s4326_s5  ;;  %1144 = vrot.lane.b32.xlu1 %v1058_v62, %s4326_s5  ;;  %v5229_v60 = vld [vmem:[#allocation2 + $0x1b1] sm:$0xff] }
 0x226   : > { %v930_v2 = vpop.permute.xlu0 %929  ;;  %v924_v4 = vpop.permute.xlu1 %923 }
 0x227   : > { %1015 = vst.msk [vmem:[#allocation3 + $0x108] sm:$0xff] %vm1003_vm3, %v930_v2  ;;  %1012 = vst.msk [vmem:[#allocation3 + $0xc0] sm:$0xff] %vm1003_vm3, %v924_v4  ;;  %1146 = vrot.lane.b32.xlu0 %v1059_v6, %s4326_s5  ;;  %1148 = vrot.lane.b32.xlu1 %v1060_v8, %s4326_s5 }
 0x22a   : > { %v928_v10 = vpop.permute.xlu1 %927 }
 0x22b   : > { %1014 = vst.msk [vmem:[#allocation3 + $0xf0] sm:$0xff] %vm1003_vm3, %v928_v10  ;;  %1293 = vrot.lane.b32.xlu0 %v4860_v31, %s4327_s21  ;;  %1519 = vrot.lane.b32.xlu1 %v4851_v28, %s4328_s12  ;;  %v2572_v31 = vld [vmem:[#allocation10 + $0xb0] sm:$0xff]  ;;  %v2571_v28 = vld [vmem:[#allocation10 + $0xa8] sm:$0xff] }
 0x22c   : > { %2750 = vmatpush2.msra.mxu0 %v2572_v31  ;;  %3877 = vmatpush2.msra.mxu1 %v2572_v31 }
 0x22d   : > { %2751 = vmatprep.subr.mxu0 %v4323_v5  ;;  %3846 = vmatprep.subr.mxu1 %v4323_v5 }
 0x22e   : > { %2752 = vmatpush2.msra.mxu0 %v2571_v28  ;;  %3878 = vmatpush2.msra.mxu1 %v2571_v28 }
 0x22f   : > { %1712 = vrot.lane.b32.xlu0 %v5028_v11, %s4329_s11  ;;  %1906 = vrot.lane.b32.xlu1 %v4836_v22, %s4330_s28 }
 0x230   : > { %2753 = vmatprep.subr.mxu0 %v4323_v5  ;;  %3847 = vmatprep.subr.mxu1 %v4323_v5 }
 0x231   : > { %2754 = vmatpush2.msra.mxu0 %v2570_v14  ;;  %3879 = vmatpush2.msra.mxu1 %v2570_v14 }
 0x232   : > { %2755 = vmatprep.subr.mxu0 %v4323_v5  ;;  %3848 = vmatprep.subr.mxu1 %v4323_v5 }
 0x233   : > { %1295 = vrot.lane.b32.xlu0 %v4853_v29, %s4327_s21  ;;  %2099 = vrot.lane.b32.xlu1 %v4871_v35, %s4331_s16  ;;  %v2569_v29 = vld [vmem:[#allocation10 + $0x98] sm:$0xff] }
 0x234   : > { %2756 = vmatpush2.msra.mxu0 %v2569_v29  ;;  %3880 = vmatpush2.msra.mxu1 %v2569_v29 }
 0x235   : > { %v944_v11 = vpop.permute.xlu1 %943  ;;  %2757 = vmatprep.subr.mxu0 %v4323_v5  ;;  %3849 = vmatprep.subr.mxu1 %v4323_v5 }
 0x236   : > { %1022 = vst.msk [vmem:[#allocation3 + $0x1b0] sm:$0xff] %vm1003_vm3, %v944_v11  ;;  %2758 = vmatpush2.msra.mxu0 %v2568_v23  ;;  %3881 = vmatpush2.msra.mxu1 %v2568_v23  ;;  %v5298_v11 = vld [vmem:[#allocation2 + $0x1d1] sm:$0xff] }
 0x237   : > { %1521 = vrot.lane.b32.xlu0 %v4830_v19, %s4328_s12  ;;  %1714 = vrot.lane.b32.xlu1 %v5037_v15, %s4329_s11 }
 0x238   : > { %2759 = vmatprep.subr.mxu0 %v4323_v5  ;;  %3850 = vmatprep.subr.mxu1 %v4323_v5 }
 0x239   : > { %v946_v17 = vpop.permute.xlu0 %945  ;;  %v932_v21 = vpop.permute.xlu1 %931  ;;  %2760 = vmatpush2.msra.mxu0 %v2567_v30  ;;  %3882 = vmatpush2.msra.mxu1 %v2567_v30 }
 0x23a   : > { %1023 = vst.msk [vmem:[#allocation3 + $0x1c8] sm:$0xff] %vm1003_vm3, %v946_v17  ;;  %1016 = vst.msk [vmem:[#allocation3 + $0x120] sm:$0xff] %vm1003_vm3, %v932_v21  ;;  %2761 = vmatprep.subr.mxu0 %v4323_v5  ;;  %3851 = vmatprep.subr.mxu1 %v4323_v5 }
 0x23b   : > { %1908 = vrot.lane.b32.xlu0 %v4847_v26, %s4330_s28  ;;  %1297 = vrot.lane.b32.xlu1 %v4836_v22, %s4327_s21  ;;  %v2566_v22 = vld [vmem:[#allocation10 + $0x80] sm:$0xff] }
 0x23c   : > { %2762 = vmatpush2.msra.mxu0 %v2566_v22  ;;  %3883 = vmatpush2.msra.mxu1 %v2566_v22  ;;  %v2042_v22 = vld [vmem:[#allocation2 + $0xb0] sm:$0xff] }
 0x23d   : > { %v934_v19 = vpop.permute.xlu0 %933  ;;  %v948_v15 = vpop.permute.xlu1 %947 }
 0x23e   : > { %1017 = vst.msk [vmem:[#allocation3 + $0x138] sm:$0xff] %vm1003_vm3, %v934_v19  ;;  %1024 = vst.msk [vmem:[#allocation3 + $0x1e0] sm:$0xff] %vm1003_vm3, %v948_v15 }
 0x23f   : > { %2101 = vrot.lane.b32.xlu0 %v4842_v25, %s4331_s16  ;;  %1523 = vrot.lane.b32.xlu1 %v4871_v35, %s4328_s12 }
 0x241   : > { %v950_v36 = vpop.permute.xlu0 %949  ;;  %v936_v39 = vpop.permute.xlu1 %935 }
 0x242   : > { %1025 = vst.msk [vmem:[#allocation3 + $0x1f8] sm:$0xff] %vm1003_vm3, %v950_v36  ;;  %1018 = vst.msk [vmem:[#allocation3 + $0x150] sm:$0xff] %vm1003_vm3, %v936_v39  ;;  %v1463_v36 = vld [vmem:[#allocation2 + $0xa8] sm:$0xff] }
 0x243   : > { %1716 = vrot.lane.b32.xlu0 %v5039_v16, %s4329_s11  ;;  %1910 = vrot.lane.b32.xlu1 %v4862_v32, %s4330_s28 }
 0x245   : > { %v938_v35 = vpop.permute.xlu0 %937  ;;  %v952_v46 = vpop.permute.xlu1 %951 }
 0x246   : > { %1019 = vst.msk [vmem:[#allocation3 + $0x168] sm:$0xff] %vm1003_vm3, %v938_v35  ;;  %1026 = vst.msk [vmem:[#allocation3 + $0x210] sm:$0xff] %vm1003_vm3, %v952_v46  ;;  %v1870_v46 = vld [vmem:[#allocation2 + $0x207] sm:$0xff] }
 0x247   : > { %1299 = vrot.lane.b32.xlu0 %v4847_v26, %s4327_s21  ;;  %2103 = vrot.lane.b32.xlu1 %v4889_v41, %s4331_s16 }
 0x249   : > { %v954_v5 = vpop.permute.xlu0 %953  ;;  %v940_v54 = vpop.permute.xlu1 %939 }
 0x24a   : > { %1027 = vst.msk [vmem:[#allocation3 + $0x228] sm:$0xff] %vm1003_vm3, %v954_v5  ;;  %1020 = vst.msk [vmem:[#allocation3 + $0x180] sm:$0xff] %vm1003_vm3, %v940_v54 }
 0x24b   : > { %1525 = vrot.lane.b32.xlu0 %v4842_v25, %s4328_s12  ;;  %1341 = vrot.lane.b32.xlu1 %v4967_v45, %s4327_s21  ;;  %v5201_v45 = vld [vmem:[#allocation2 + $0x1a9] sm:$0xff] }
 0x24d   : > { %v942_v16 = vpop.permute.xlu0 %941  ;;  %v956_v57 = vpop.permute.xlu1 %955 }
 0x24e   : > { %1021 = vst.msk [vmem:[#allocation3 + $0x198] sm:$0xff] %vm1003_vm3, %v942_v16  ;;  %1028 = vst.msk [vmem:[#allocation3 + $0x240] sm:$0xff] %vm1003_vm3, %v956_v57  ;;  %v5350_v16 = vld [vmem:[#allocation2 + $0xa9] sm:$0xff] }
 0x24f   : > { %1718 = vrot.lane.b32.xlu0 %v5048_v18, %s4329_s11  ;;  %1567 = vrot.lane.b32.xlu1 %v4965_v42, %s4328_s12 }
 0x251   : > { %v958_v26 = vpop.permute.xlu0 %957 }
 0x252   : > { %1029 = vst.msk [vmem:[#allocation3 + $0x258] sm:$0xff] %vm1003_vm3, %v958_v26 }
 0x253   : > { %1912 = vrot.lane.b32.xlu0 %v4878_v37, %s4330_s28  ;;  %1301 = vrot.lane.b32.xlu1 %v4862_v32, %s4327_s21 }
 0x255   : > { %v960_v25 = vpop.permute.xlu1 %959 }
 0x256   : > { %1030 = vst.msk [vmem:[#allocation3 + $0x270] sm:$0xff] %vm1003_vm3, %v960_v25 }
 0x257   : > { %1760 = vrot.lane.b32.xlu0 %v5201_v45, %s4329_s11  ;;  %2105 = vrot.lane.b32.xlu1 %v4869_v34, %s4331_s16 }
 0x259   : > { %v962_v42 = vpop.permute.xlu0 %961 }
 0x25a   : > { %1031 = vst.msk [vmem:[#allocation3 + $0x288] sm:$0xff] %vm1003_vm3, %v962_v42  ;;  %v1484_v42 = vld [vmem:[#allocation2 + $0x1f0] sm:$0xff] }
 0x25b   : > { %1527 = vrot.lane.b32.xlu0 %v4889_v41, %s4328_s12  ;;  %1954 = vrot.lane.b32.xlu1 %v4985_v56, %s4330_s28 }
 0x25d   : > { %v964_v32 = vpop.permute.xlu1 %963 }
 0x25e   : > { %1032 = vst.msk [vmem:[#allocation3 + $0x2a0] sm:$0xff] %vm1003_vm3, %v964_v32 }
 0x25f   : > { %1343 = vrot.lane.b32.xlu0 %v4976_v51, %s4327_s21  ;;  %1720 = vrot.lane.b32.xlu1 %v5050_v20, %s4329_s11 }
 0x261   : > { %v966_v18 = vpop.permute.xlu0 %965 }
 0x262   : > { %1033 = vst.msk [vmem:[#allocation3 + $0x2b8] sm:$0xff] %vm1003_vm3, %v966_v18 }
 0x263   : > { %2147 = vrot.lane.b32.xlu0 %v4983_v55, %s4331_s16  ;;  %1569 = vrot.lane.b32.xlu1 %v4974_v48, %s4328_s12 }
 0x265   : > { %v968_v41 = vpop.permute.xlu1 %967 }
 0x266   : > { %1034 = vst.msk [vmem:[#allocation3 + $0x2d0] sm:$0xff] %vm1003_vm3, %v968_v41 }
 0x267   : > { %1914 = vrot.lane.b32.xlu0 %v4880_v38, %s4330_s28  ;;  %1303 = vrot.lane.b32.xlu1 %v4878_v37, %s4327_s21 }
 0x269   : > { %v970_v51 = vpop.permute.xlu0 %969  ;;  %v1101_v20 = vpop.permute.xlu1 %1100 }
 0x26a   : > { %1035 = vst.msk [vmem:[#allocation3 + $0x2e8] sm:$0xff] %vm1003_vm3, %v970_v51 }
 0x26b   : > { %1197 = vst.msk [vmem:[#allocation3] sm:$0xff] %vm1196_vm4, %v1101_v20  ;;  %1762 = vrot.lane.b32.xlu0 %v5229_v60, %s4329_s11  ;;  %2107 = vrot.lane.b32.xlu1 %v4905_v47, %s4331_s16 }
 0x26d   : > { %v1103_v48 = vpop.permute.xlu0 %1102  ;;  %v1105_v62 = vpop.permute.xlu1 %1104 }
 0x26e   : > { %1198 = vst.msk [vmem:[#allocation3 + $0x18] sm:$0xff] %vm1196_vm4, %v1103_v48  ;;  %1199 = vst.msk [vmem:[#allocation3 + $0x30] sm:$0xff] %vm1196_vm4, %v1105_v62  ;;  %v2043_v48 = vld [vmem:[#allocation2 + $0xc8] sm:$0xff] }
 0x26f   : > { %1529 = vrot.lane.b32.xlu0 %v4869_v34, %s4328_s12  ;;  %1956 = vrot.lane.b32.xlu1 %v4994_v59, %s4330_s28 }
 0x271   : > { %v1107_v37 = vpop.permute.xlu0 %1106  ;;  %v1109_v0 = vpop.permute.xlu1 %1108 }
 0x272   : > { %1200 = vst.msk [vmem:[#allocation3 + $0x48] sm:$0xff] %vm1196_vm4, %v1107_v37  ;;  %1201 = vst.msk [vmem:[#allocation3 + $0x60] sm:$0xff] %vm1196_vm4, %v1109_v0  ;;  %v1871_v37 = vld [vmem:[#allocation2 + $0x20f] sm:$0xff] }
 0x273   : > { %1150 = vrot.lane.b32.xlu0 %v1061_v1, %s4326_s5  ;;  %1345 = vrot.lane.b32.xlu1 %v4985_v56, %s4327_s21 }
 0x275   : > { %v1111_v2 = vpop.permute.xlu0 %1110  ;;  %v1113_v4 = vpop.permute.xlu1 %1112 }
 0x276   : > { %1202 = vst.msk [vmem:[#allocation3 + $0x78] sm:$0xff] %vm1196_vm4, %v1111_v2  ;;  %1203 = vst.msk [vmem:[#allocation3 + $0x90] sm:$0xff] %vm1196_vm4, %v1113_v4 }
 0x277   : > { %1722 = vrot.lane.b32.xlu0 %v5059_v24, %s4329_s11  ;;  %2149 = vrot.lane.b32.xlu1 %v4992_v58, %s4331_s16  ;;  %v5260_v24 = vld [vmem:[#allocation2 + $0x1c9] sm:$0xff] }
 0x279   : > { %v1115_v34 = vpop.permute.xlu0 %1114  ;;  %v1117_v6 = vpop.permute.xlu1 %1116 }
 0x27a   : > { %1204 = vst.msk [vmem:[#allocation3 + $0xa8] sm:$0xff] %vm1196_vm4, %v1115_v34  ;;  %1205 = vst.msk [vmem:[#allocation3 + $0xc0] sm:$0xff] %vm1196_vm4, %v1117_v6  ;;  %v5390_v34 = vld [vmem:[#allocation2 + $0xb1] sm:$0xff] }
 0x27b   : > { %1571 = vrot.lane.b32.xlu0 %v4983_v55, %s4328_s12  ;;  %1916 = vrot.lane.b32.xlu1 %v4896_v43, %s4330_s28  ;;  %v2064_v6 = vld [vmem:[#allocation2 + $0x210] sm:$0xff] }
 0x27d   : > { %v1119_v56 = vpop.permute.xlu0 %1118  ;;  %v1121_v8 = vpop.permute.xlu1 %1120 }
 0x27e   : > { %1206 = vst.msk [vmem:[#allocation3 + $0xd8] sm:$0xff] %vm1196_vm4, %v1119_v56  ;;  %1207 = vst.msk [vmem:[#allocation3 + $0xf0] sm:$0xff] %vm1196_vm4, %v1121_v8 }
 0x27f   : > { %1305 = vrot.lane.b32.xlu0 %v4880_v38, %s4327_s21  ;;  %1764 = vrot.lane.b32.xlu1 %v5260_v24, %s4329_s11 }
 0x281   : > { %v1123_v9 = vpop.permute.xlu0 %1122  ;;  %v1125_v10 = vpop.permute.xlu1 %1124 }
 0x282   : > { %1208 = vst.msk [vmem:[#allocation3 + $0x108] sm:$0xff] %vm1196_vm4, %v1123_v9  ;;  %1209 = vst.msk [vmem:[#allocation3 + $0x120] sm:$0xff] %vm1196_vm4, %v1125_v10 }
 0x283   : > { %2109 = vrot.lane.b32.xlu0 %v4887_v40, %s4331_s16  ;;  %1531 = vrot.lane.b32.xlu1 %v4905_v47, %s4328_s12 }
 0x285   : > { %v1127_v55 = vpop.permute.xlu0 %1126  ;;  %v1129_v12 = vpop.permute.xlu1 %1128 }
 0x286   : > { %1210 = vst.msk [vmem:[#allocation3 + $0x138] sm:$0xff] %vm1196_vm4, %v1127_v55  ;;  %1211 = vst.msk [vmem:[#allocation3 + $0x150] sm:$0xff] %vm1196_vm4, %v1129_v12  ;;  %v1239_v12 = vld [vmem:[#allocation2 + $0xc7] sm:$0xff] }
 0x287   : > { %1958 = vrot.lane.b32.xlu0 %v5005_v63, %s4330_s28  ;;  %1152 = vrot.lane.b32.xlu1 %v5201_v45, %s4326_s5  ;;  %v2063_v45 = vld [vmem:[#allocation2 + $0x208] sm:$0xff] }
 0x289   : > { %v1131_v38 = vpop.permute.xlu0 %1130  ;;  %v1133_v13 = vpop.permute.xlu1 %1132 }
 0x28a   : > { %1212 = vst.msk [vmem:[#allocation3 + $0x168] sm:$0xff] %vm1196_vm4, %v1131_v38  ;;  %1213 = vst.msk [vmem:[#allocation3 + $0x180] sm:$0xff] %vm1196_vm4, %v1133_v13  ;;  %v1678_v38 = vld [vmem:[#allocation2 + $0x209] sm:$0xff] }
 0x28b   : > { %1347 = vrot.lane.b32.xlu0 %v4994_v59, %s4327_s21  ;;  %1724 = vrot.lane.b32.xlu1 %v5061_v27, %s4329_s11 }
 0x28d   : > { %v1135_v40 = vpop.permute.xlu0 %1134  ;;  %v1137_v47 = vpop.permute.xlu1 %1136 }
 0x28e   : > { %1214 = vst.msk [vmem:[#allocation3 + $0x198] sm:$0xff] %vm1196_vm4, %v1135_v40  ;;  %1215 = vst.msk [vmem:[#allocation3 + $0x1b0] sm:$0xff] %vm1196_vm4, %v1137_v47  ;;  %v1872_v47 = vld [vmem:[#allocation2 + $0x227] sm:$0xff] }
 0x28f   : > { %2151 = vrot.lane.b32.xlu0 %v5003_v61, %s4331_s16  ;;  %1573 = vrot.lane.b32.xlu1 %v4992_v58, %s4328_s12 }
 0x291   : > { %v1139_v31 = vpop.permute.xlu0 %1138  ;;  %v1141_v28 = vpop.permute.xlu1 %1140 }
 0x292   : > { %1216 = vst.msk [vmem:[#allocation3 + $0x1c8] sm:$0xff] %vm1196_vm4, %v1139_v31  ;;  %1217 = vst.msk [vmem:[#allocation3 + $0x1e0] sm:$0xff] %vm1196_vm4, %v1141_v28 }
 0x293   : > { %1918 = vrot.lane.b32.xlu0 %v4898_v44, %s4330_s28  ;;  %1307 = vrot.lane.b32.xlu1 %v4896_v43, %s4327_s21  ;;  %v4100_v43 = vld [vmem:[#allocation2 + $0x90] sm:$0xff] }
 0x295   : > { %v1143_v59 = vpop.permute.xlu0 %1142  ;;  %v1145_v27 = vpop.permute.xlu1 %1144 }
 0x296   : > { %1218 = vst.msk [vmem:[#allocation3 + $0x1f8] sm:$0xff] %vm1196_vm4, %v1143_v59  ;;  %1219 = vst.msk [vmem:[#allocation3 + $0x210] sm:$0xff] %vm1196_vm4, %v1145_v27 }
 0x297   : > { %1766 = vrot.lane.b32.xlu0 %v5298_v11, %s4329_s11  ;;  %2111 = vrot.lane.b32.xlu1 %v4920_v52, %s4331_s16 }
 0x299   : > { %v1147_v58 = vpop.permute.xlu0 %1146  ;;  %v1149_v14 = vpop.permute.xlu1 %1148 }
 0x29a   : > { %1220 = vst.msk [vmem:[#allocation3 + $0x228] sm:$0xff] %vm1196_vm4, %v1147_v58  ;;  %1221 = vst.msk [vmem:[#allocation3 + $0x240] sm:$0xff] %vm1196_vm4, %v1149_v14  ;;  %v5418_v14 = vld [vmem:[#allocation2 + $0xc9] sm:$0xff] }
 0x29b   : > { %1533 = vrot.lane.b32.xlu0 %v4100_v43, %s4328_s12  ;;  %1960 = vrot.lane.b32.xlu1 %v5016_v7, %s4330_s28  ;;  %v2065_v43 = vld [vmem:[#allocation2 + $0x228] sm:$0xff] }
 0x29d   : > { %v1294_v29 = vpop.permute.xlu0 %1293  ;;  %v1520_v17 = vpop.permute.xlu1 %1519 }
 0x29e   : > { %1390 = vst.msk [vmem:[#allocation3] sm:$0xff] %vm1389_vm5, %v1294_v29 }
 0x29f   : > { %1392 = vst.msk [vmem:[#allocation3 + $0x8] sm:$0xff] %vm1391_vm6, %v1294_v29  ;;  %1154 = vrot.lane.b32.xlu0 %v5229_v60, %s4326_s5  ;;  %1349 = vrot.lane.b32.xlu1 %v5005_v63, %s4327_s21  ;;  %v5372_v60 = vld [vmem:[#allocation2 + $0x1f1] sm:$0xff] }
 0x2a0   : > { %1616 = vst.msk [vmem:[#allocation3 + $0x8] sm:$0xff] %vm1615_vm7, %v1520_v17 }
 0x2a1   : > { %v1713_v52 = vpop.permute.xlu0 %1712  ;;  %v1907_v21 = vpop.permute.xlu1 %1906 }
 0x2a2   : > { %1809 = vst.msk [vmem:[#allocation3 + $0x8] sm:$0xff] %vm1808_vm8, %v1713_v52 }
 0x2a3   : > { %2003 = vst.msk [vmem:[#allocation3 + $0x8] sm:$0xff] %vm2002_vm9, %v1907_v21  ;;  %1726 = vrot.lane.b32.xlu0 %v5070_v33, %s4329_s11  ;;  %2153 = vrot.lane.b32.xlu1 %v5014_v3, %s4331_s16  ;;  %v5331_v33 = vld [vmem:[#allocation2 + $0x1e9] sm:$0xff] }
 0x2a5   : > { %v1296_v23 = vpop.permute.xlu0 %1295  ;;  %v2100_v19 = vpop.permute.xlu1 %2099 }
 0x2a6   : > { %1393 = vst.msk [vmem:[#allocation3 + $0x18] sm:$0xff] %vm1389_vm5, %v1296_v23 }
 0x2a7   : > { %1394 = vst.msk [vmem:[#allocation3 + $0x20] sm:$0xff] %vm1391_vm6, %v1296_v23  ;;  %1575 = vrot.lane.b32.xlu0 %v5003_v61, %s4328_s12  ;;  %1920 = vrot.lane.b32.xlu1 %v4911_v49, %s4330_s28 }
 0x2a8   : > { %2196 = vst.msk [vmem:[#allocation3 + $0x8] sm:$0xff] %vm2195_vm10, %v2100_v19 }
 0x2a9   : > { %2198 = vst.msk [vmem:[#allocation3 + $0x10] sm:$0xff] %vm2197_vm11, %v2100_v19  ;;  %v1522_v63 = vpop.permute.xlu0 %1521  ;;  %v1715_v3 = vpop.permute.xlu1 %1714 }
 0x2aa   : > { %1617 = vst.msk [vmem:[#allocation3 + $0x20] sm:$0xff] %vm1615_vm7, %v1522_v63  ;;  %v1852_v63 = vld [vmem:[#allocation2 + $0xe7] sm:$0xff] }
 0x2ab   : > { %1810 = vst.msk [vmem:[#allocation3 + $0x20] sm:$0xff] %vm1808_vm8, %v1715_v3  ;;  %1309 = vrot.lane.b32.xlu0 %v4898_v44, %s4327_s21  ;;  %1768 = vrot.lane.b32.xlu1 %v5331_v33, %s4329_s11  ;;  %v2454_v44 = vld [vmem:[#allocation3] sm:$0xff]  ;;  %v1240_v3 = vld [vmem:[#allocation2 + $0xcf] sm:$0xff] }
 0x2ad   : > { %v1909_v15 = vpop.permute.xlu0 %1908  ;;  %v1298_v30 = vpop.permute.xlu1 %1297 }
 0x2ae   : > { %2004 = vst.msk [vmem:[#allocation3 + $0x20] sm:$0xff] %vm2002_vm9, %v1909_v15 }
 0x2af   : > { %v2455_v61 = vld [vmem:[#allocation3 + $0x8] sm:$0xff]  ;;  %1395 = vst.msk [vmem:[#allocation3 + $0x30] sm:$0xff] %vm1389_vm5, %v1298_v30  ;;  %2113 = vrot.lane.b32.xlu0 %v2042_v22, %s4331_s16  ;;  %1535 = vrot.lane.b32.xlu1 %v1463_v36, %s4328_s12 }
 0x2b0   : > { %1396 = vst.msk [vmem:[#allocation3 + $0x38] sm:$0xff] %vm1391_vm6, %v1298_v30  ;;  %2763 = vmatprep.mubr.f32.mxu0 %v2455_v61  ;;  %v1679_v30 = vld [vmem:[#allocation2 + $0x211] sm:$0xff]  ;;  %v5438_v61 = vld [vmem:[#allocation2 + $0xe8] sm:$0xff] }
 0x2b1   : > { %2764 = vmatmul.mubr.f32.vlgmr.msra.gmra.mxu0 %v2454_v44  ;;  %v2102_v39 = vpop.permute.xlu0 %2101  ;;  %v1524_v35 = vpop.permute.xlu1 %1523 }
 0x2b2   : > { %2199 = vst.msk [vmem:[#allocation3 + $0x20] sm:$0xff] %vm2195_vm10, %v2102_v39 }
 0x2b3   : > { %2200 = vst.msk [vmem:[#allocation3 + $0x28] sm:$0xff] %vm2197_vm11, %v2102_v39  ;;  %1962 = vrot.lane.b32.xlu0 %v1870_v46, %s4330_s28  ;;  %1156 = vrot.lane.b32.xlu1 %v5260_v24, %s4326_s5 }
 0x2b4   : > { %1618 = vst.msk [vmem:[#allocation3 + $0x38] sm:$0xff] %vm1615_vm7, %v1524_v35 }
 0x2b5   : > { %v1717_v5 = vpop.permute.xlu0 %1716  ;;  %v1911_v54 = vpop.permute.xlu1 %1910 }
 0x2b6   : > { %1811 = vst.msk [vmem:[#allocation3 + $0x38] sm:$0xff] %vm1808_vm8, %v1717_v5 }
 0x2b7   : > { %2005 = vst.msk [vmem:[#allocation3 + $0x38] sm:$0xff] %vm2002_vm9, %v1911_v54  ;;  %1351 = vrot.lane.b32.xlu0 %v5016_v7, %s4327_s21  ;;  %1728 = vrot.lane.b32.xlu1 %v5350_v16, %s4329_s11  ;;  %v2457_v7 = vld [vmem:[#allocation3 + $0x18] sm:$0xff] }
 0x2b9   : > { %v1300_v57 = vpop.permute.xlu0 %1299  ;;  %v2104_v26 = vpop.permute.xlu1 %2103  ;;  %v2458_v25 = vld [vmem:[#allocation3 + $0x20] sm:$0xff] }
 0x2ba   : > { %1397 = vst.msk [vmem:[#allocation3 + $0x48] sm:$0xff] %vm1389_vm5, %v1300_v57  ;;  %2768 = vmatprep.mubr.f32.mxu0 %v2458_v25  ;;  %v2066_v25 = vld [vmem:[#allocation2 + $0x230] sm:$0xff] }
 0x2bb   : > { %1398 = vst.msk [vmem:[#allocation3 + $0x50] sm:$0xff] %vm1391_vm6, %v1300_v57  ;;  %2155 = vrot.lane.b32.xlu0 %v2063_v45, %s4331_s16  ;;  %1577 = vrot.lane.b32.xlu1 %v1484_v42, %s4328_s12  ;;  %v5451_v57 = vld [vmem:[#allocation2 + $0xd1] sm:$0xff] }
 0x2bc   : > { %2201 = vst.msk [vmem:[#allocation3 + $0x38] sm:$0xff] %vm2195_vm10, %v2104_v26  ;;  %2769 = vmatmul.mubr.f32.gmra.mxu0 %v2457_v7 }
 0x2bd   : > { %2202 = vst.msk [vmem:[#allocation3 + $0x40] sm:$0xff] %vm2197_vm11, %v2104_v26  ;;  %v1526_v32 = vpop.permute.xlu0 %1525  ;;  %v1342_v18 = vpop.permute.xlu1 %1341  ;;  %v2589_v26 = vld [vmem:[#allocation10 + $0x138] sm:$0xff] }
 0x2be   : > { %1619 = vst.msk [vmem:[#allocation3 + $0x50] sm:$0xff] %vm1615_vm7, %v1526_v32  ;;  %v1853_v32 = vld [vmem:[#allocation2 + $0xef] sm:$0xff] }
 0x2bf   : > { %1439 = vst.msk [vmem:[#allocation3 + $0x240] sm:$0xff] %vm1389_vm5, %v1342_v18  ;;  %1922 = vrot.lane.b32.xlu0 %v4913_v50, %s4330_s28  ;;  %1311 = vrot.lane.b32.xlu1 %v4911_v49, %s4327_s21  ;;  %v2460_v50 = vld [vmem:[#allocation3 + $0x30] sm:$0xff] }
 0x2c0   : > { %1440 = vst.msk [vmem:[#allocation3 + $0x248] sm:$0xff] %vm1391_vm6, %v1342_v18  ;;  %v2587_v18 = vld [vmem:[#allocation10 + $0x128] sm:$0xff] }
 0x2c1   : > { %v1719_v41 = vpop.permute.xlu0 %1718  ;;  %v1568_v51 = vpop.permute.xlu1 %1567  ;;  %v2463_v9 = vld [vmem:[#allocation3 + $0x48] sm:$0xff] }
 0x2c2   : > { %1812 = vst.msk [vmem:[#allocation3 + $0x50] sm:$0xff] %vm1808_vm8, %v1719_v41 }
 0x2c3   : > { %v2461_v20 = vld [vmem:[#allocation3 + $0x38] sm:$0xff]  ;;  %1640 = vst.msk [vmem:[#allocation3 + $0x248] sm:$0xff] %vm1615_vm7, %v1568_v51  ;;  %1770 = vrot.lane.b32.xlu0 %v5372_v60, %s4329_s11  ;;  %2115 = vrot.lane.b32.xlu1 %v2043_v48, %s4331_s16 }
 0x2c4   : > { %2773 = vmatprep.mubr.f32.mxu0 %v2461_v20 }
 0x2c5   : > { %2774 = vmatmul.mubr.f32.gmra.mxu0 %v2460_v50  ;;  %v1913_v62 = vpop.permute.xlu0 %1912  ;;  %v1302_v49 = vpop.permute.xlu1 %1301 }
 0x2c6   : > { %2006 = vst.msk [vmem:[#allocation3 + $0x50] sm:$0xff] %vm2002_vm9, %v1913_v62  ;;  %v2526_v27 = vld [vmem:[#allocation3 + $0x240] sm:$0xff]  ;;  %v2585_v62 = vld [vmem:[#allocation10 + $0x118] sm:$0xff] }
 0x2c7   : > { %1399 = vst.msk [vmem:[#allocation3 + $0x60] sm:$0xff] %vm1389_vm5, %v1302_v49  ;;  %1537 = vrot.lane.b32.xlu0 %v2042_v22, %s4328_s12  ;;  %1964 = vrot.lane.b32.xlu1 %v1871_v37, %s4330_s28  ;;  %v1873_v22 = vld [vmem:[#allocation2 + $0x22f] sm:$0xff] }
 0x2c8   : > { %1400 = vst.msk [vmem:[#allocation3 + $0x68] sm:$0xff] %vm1391_vm6, %v1302_v49 }
 0x2c9   : > { %v1761_v0 = vpop.permute.xlu0 %1760  ;;  %v2106_v1 = vpop.permute.xlu1 %2105 }
 0x2ca   : > { %1833 = vst.msk [vmem:[#allocation3 + $0x248] sm:$0xff] %vm1808_vm8, %v1761_v0  ;;  %v5473_v0 = vld [vmem:[#allocation2 + $0xe9] sm:$0xff] }
 0x2cb   : > { %2203 = vst.msk [vmem:[#allocation3 + $0x50] sm:$0xff] %vm2195_vm10, %v2106_v1  ;;  %1158 = vrot.lane.b32.xlu0 %v5298_v11, %s4326_s5  ;;  %1353 = vrot.lane.b32.xlu1 %v1870_v46, %s4327_s21  ;;  %v2590_v46 = vld [vmem:[#allocation10 + $0x140] sm:$0xf] }
 0x2cc   : > { %2204 = vst.msk [vmem:[#allocation3 + $0x58] sm:$0xff] %vm2197_vm11, %v2106_v1  ;;  %3754 = vmatprep.subr.msk.mxu1 %vm2695_vm12, %v2590_v46  ;;  %v2584_v1 = vld [vmem:[#allocation10 + $0x110] sm:$0xff] }
 0x2cd   : > { %v1528_v2 = vpop.permute.xlu0 %1527  ;;  %v1955_v4 = vpop.permute.xlu1 %1954 }
 0x2ce   : > { %1620 = vst.msk [vmem:[#allocation3 + $0x68] sm:$0xff] %vm1615_vm7, %v1528_v2  ;;  %v2466_v21 = vld [vmem:[#allocation3 + $0x60] sm:$0xff] }
 0x2cf   : > { %2027 = vst.msk [vmem:[#allocation3 + $0x248] sm:$0xff] %vm2002_vm9, %v1955_v4  ;;  %1730 = vrot.lane.b32.xlu0 %v5390_v34, %s4329_s11  ;;  %2157 = vrot.lane.b32.xlu1 %v2064_v6, %s4331_s16 }
 0x2d1   : > { %v1344_v56 = vpop.permute.xlu0 %1343  ;;  %v1721_v8 = vpop.permute.xlu1 %1720 }
 0x2d2   : > { %v2464_v24 = vld [vmem:[#allocation3 + $0x50] sm:$0xff]  ;;  %1442 = vst.msk [vmem:[#allocation3 + $0x260] sm:$0xff] %vm1391_vm6, %v1344_v56 }
 0x2d3   : > { %1813 = vst.msk [vmem:[#allocation3 + $0x68] sm:$0xff] %vm1808_vm8, %v1721_v8  ;;  %2778 = vmatprep.mubr.f32.mxu0 %v2464_v24  ;;  %1579 = vrot.lane.b32.xlu0 %v2063_v45, %s4328_s12  ;;  %v2588_v45 = vld [vmem:[#allocation10 + $0x130] sm:$0xff]  ;;  %v2582_v24 = vld [vmem:[#allocation10 + $0x100] sm:$0xff] }
 0x2d4   : > { %1924 = vrot.lane.b32.xlu1 %v4925_v53, %s4330_s28  ;;  %2779 = vmatmul.mubr.f32.gmra.mxu0 %v2463_v9  ;;  %v2044_v53 = vld [vmem:[#allocation2 + $0xd0] sm:$0xff]  ;;  %v1854_v8 = vld [vmem:[#allocation2 + $0x107] sm:$0xff] }
 0x2d5   : > { %v2148_v10 = vpop.permute.xlu0 %2147  ;;  %v1570_v55 = vpop.permute.xlu1 %1569 }
 0x2d6   : > { %2245 = vst.msk [vmem:[#allocation3 + $0x248] sm:$0xff] %vm2195_vm10, %v2148_v10 }
 0x2d7   : > { %2246 = vst.msk [vmem:[#allocation3 + $0x250] sm:$0xff] %vm2197_vm11, %v2148_v10  ;;  %1313 = vrot.lane.b32.xlu0 %v1239_v12, %s4327_s21  ;;  %v2262_v12 = vld [vmem:[#allocation2 + $0x51] sm:$0xff] }
 0x2d8   : > { %1641 = vst.msk [vmem:[#allocation3 + $0x260] sm:$0xff] %vm1615_vm7, %v1570_v55  ;;  %1772 = vrot.lane.b32.xlu1 %v1678_v38, %s4329_s11 }
 0x2d9   : > { %v1915_v13 = vpop.permute.xlu0 %1914  ;;  %v1304_v40 = vpop.permute.xlu1 %1303 }
 0x2da   : > { %2007 = vst.msk [vmem:[#allocation3 + $0x68] sm:$0xff] %vm2002_vm9, %v1915_v13 }
 0x2db   : > { %1401 = vst.msk [vmem:[#allocation3 + $0x78] sm:$0xff] %vm1389_vm5, %v1304_v40  ;;  %2117 = vrot.lane.b32.xlu0 %v2044_v53, %s4331_s16 }
 0x2dc   : > { %1402 = vst.msk [vmem:[#allocation3 + $0x80] sm:$0xff] %vm1391_vm6, %v1304_v40  ;;  %1539 = vrot.lane.b32.xlu1 %v2043_v48, %s4328_s12  ;;  %v2046_v48 = vld [vmem:[#allocation2 + $0xf0] sm:$0xff] }
 0x2dd   : > { %v1763_v31 = vpop.permute.xlu0 %1762  ;;  %v2108_v28 = vpop.permute.xlu1 %2107  ;;  %v2527_v59 = vld [vmem:[#allocation3 + $0x248] sm:$0xff] }
 0x2de   : > { %1834 = vst.msk [vmem:[#allocation3 + $0x260] sm:$0xff] %vm1808_vm8, %v1763_v31  ;;  %2883 = vmatprep.mubr.f32.mxu1 %v2527_v59  ;;  %v5495_v59 = vld [vmem:[#allocation2 + $0xf1] sm:$0xff] }
 0x2df   : > { %2205 = vst.msk [vmem:[#allocation3 + $0x68] sm:$0xff] %vm2195_vm10, %v2108_v28  ;;  %1966 = vrot.lane.b32.xlu0 %v1872_v47, %s4330_s28  ;;  %2884 = vmatmul.mubr.f32.vlgmr.msra.gmra.mxu1 %v2526_v27  ;;  %v2263_v27 = vld [vmem:[#allocation2 + $0x69] sm:$0xff] }
 0x2e0   : > { %2206 = vst.msk [vmem:[#allocation3 + $0x70] sm:$0xff] %vm2197_vm11, %v2108_v28  ;;  %1160 = vrot.lane.b32.xlu1 %v5331_v33, %s4326_s5  ;;  %3755 = vmatpush3.msk.msra.mxu1 %vm2695_vm12, %v2590_v46 }
 0x2e1   : > { %v1530_v11 = vpop.permute.xlu0 %1529  ;;  %v1957_v58 = vpop.permute.xlu1 %1956  ;;  %3756 = vmatprep.subr.mxu1 %v2589_v26 }
 0x2e2   : > { %1621 = vst.msk [vmem:[#allocation3 + $0x80] sm:$0xff] %vm1615_vm7, %v1530_v11  ;;  %3757 = vmatpush3.msra.mxu1 %v2589_v26  ;;  %v2469_v50 = vld [vmem:[#allocation3 + $0x78] sm:$0xff]  ;;  %v2049_v26 = vld [vmem:[#allocation2 + $0x128] sm:$0xff] }
 0x2e3   : > { %2028 = vst.msk [vmem:[#allocation3 + $0x260] sm:$0xff] %vm2002_vm9, %v1957_v58  ;;  %1355 = vrot.lane.b32.xlu0 %v1871_v37, %s4327_s21  ;;  %3758 = vmatprep.subr.mxu1 %v2588_v45 }
 0x2e4   : > { %1732 = vrot.lane.b32.xlu1 %v5418_v14, %s4329_s11  ;;  %3759 = vmatpush3.msra.mxu1 %v2588_v45 }
 0x2e5   : > { %v1151_v29 = vpop.permute.xlu0 %1150  ;;  %v5423_v17 = vpop.permute.xlu1 %1345  ;;  %3760 = vmatprep.subr.mxu1 %v2587_v18 }
 0x2e6   : > { %v2467_v52 = vld [vmem:[#allocation3 + $0x68] sm:$0xff]  ;;  %1222 = vst.msk [vmem:[#allocation3 + $0x258] sm:$0xff] %vm1196_vm4, %v1151_v29  ;;  %3761 = vmatpush3.msra.mxu1 %v2587_v18 }
 0x2e7   : > { %1444 = vst.msk [vmem:[#allocation3 + $0x278] sm:$0xff] %vm1391_vm6, %v5423_v17  ;;  %2783 = vmatprep.mubr.f32.mxu0 %v2467_v52  ;;  %2159 = vrot.lane.b32.xlu0 %v2065_v43, %s4331_s16  ;;  %v1855_v29 = vld [vmem:[#allocation2 + $0x10f] sm:$0xff] }
 0x2e8   : > { %1441 = vst.msk [vmem:[#allocation3 + $0x258] sm:$0xff] %vm1389_vm5, %v1344_v56  ;;  %1581 = vrot.lane.b32.xlu1 %v2064_v6, %s4328_s12  ;;  %2784 = vmatmul.mubr.f32.gmra.mxu0 %v2466_v21  ;;  %v2583_v6 = vld [vmem:[#allocation10 + $0x108] sm:$0xff]  ;;  %v2261_v56 = vld [vmem:[#allocation2 + $0x49] sm:$0xff] }
 0x2e9   : > { %v1723_v23 = vpop.permute.xlu0 %1722  ;;  %v2150_v19 = vpop.permute.xlu1 %2149 }
 0x2ea   : > { %1814 = vst.msk [vmem:[#allocation3 + $0x80] sm:$0xff] %vm1808_vm8, %v1723_v23  ;;  %v2048_v23 = vld [vmem:[#allocation2 + $0x110] sm:$0xff] }
 0x2eb   : > { %2247 = vst.msk [vmem:[#allocation3 + $0x260] sm:$0xff] %vm2195_vm10, %v2150_v19  ;;  %1926 = vrot.lane.b32.xlu0 %v1852_v63, %s4330_s28 }
 0x2ec   : > { %2248 = vst.msk [vmem:[#allocation3 + $0x268] sm:$0xff] %vm2197_vm11, %v2150_v19  ;;  %1315 = vrot.lane.b32.xlu1 %v1240_v3, %s4327_s21 }
 0x2ed   : > { %v1572_v33 = vpop.permute.xlu0 %1571  ;;  %v1917_v15 = vpop.permute.xlu1 %1916 }
 0x2ee   : > { %1642 = vst.msk [vmem:[#allocation3 + $0x278] sm:$0xff] %vm1615_vm7, %v1572_v33  ;;  %v5514_v33 = vld [vmem:[#allocation2 + $0x109] sm:$0xff] }
 0x2ef   : > { %2008 = vst.msk [vmem:[#allocation3 + $0x80] sm:$0xff] %vm2002_vm9, %v1917_v15  ;;  %1774 = vrot.lane.b32.xlu0 %v1679_v30, %s4329_s11  ;;  %v2529_v35 = vld [vmem:[#allocation3 + $0x258] sm:$0xff] }
 0x2f0   : > { %2119 = vrot.lane.b32.xlu1 %v5438_v61, %s4331_s16 }
 0x2f1   : > { %v1306_v36 = vpop.permute.xlu0 %1305  ;;  %v1765_v44 = vpop.permute.xlu1 %1764 }
 0x2f2   : > { %v2530_v39 = vld [vmem:[#allocation3 + $0x260] sm:$0xff]  ;;  %1403 = vst.msk [vmem:[#allocation3 + $0x90] sm:$0xff] %vm1389_vm5, %v1306_v36 }
 0x2f3   : > { %1404 = vst.msk [vmem:[#allocation3 + $0x98] sm:$0xff] %vm1391_vm6, %v1306_v36  ;;  %2888 = vmatprep.mubr.f32.mxu1 %v2530_v39  ;;  %1541 = vrot.lane.b32.xlu0 %v2044_v53, %s4328_s12  ;;  %v2047_v53 = vld [vmem:[#allocation2 + $0x108] sm:$0xff] }
 0x2f4   : > { %1835 = vst.msk [vmem:[#allocation3 + $0x278] sm:$0xff] %vm1808_vm8, %v1765_v44  ;;  %1968 = vrot.lane.b32.xlu1 %v1873_v22, %s4330_s28  ;;  %2889 = vmatmul.mubr.f32.gmra.mxu1 %v2529_v35  ;;  %v2265_v22 = vld [vmem:[#allocation2 + $0x89] sm:$0xff]  ;;  %v2266_v35 = vld [vmem:[#allocation2 + $0x91] sm:$0xff] }
 0x2f5   : > { %v2110_v5 = vpop.permute.xlu0 %2109  ;;  %v1532_v54 = vpop.permute.xlu1 %1531  ;;  %v1856_v36 = vld [vmem:[#allocation2 + $0x127] sm:$0xff] }
 0x2f6   : > { %2207 = vst.msk [vmem:[#allocation3 + $0x80] sm:$0xff] %vm2195_vm10, %v2110_v5 }
 0x2f7   : > { %2208 = vst.msk [vmem:[#allocation3 + $0x88] sm:$0xff] %vm2197_vm11, %v2110_v5  ;;  %1162 = vrot.lane.b32.xlu0 %v5372_v60, %s4326_s5  ;;  %v2586_v60 = vld [vmem:[#allocation10 + $0x120] sm:$0xff] }
 0x2f8   : > { %1622 = vst.msk [vmem:[#allocation3 + $0x98] sm:$0xff] %vm1615_vm7, %v1532_v54  ;;  %1734 = vrot.lane.b32.xlu1 %v5451_v57, %s4329_s11  ;;  %3762 = vmatprep.subr.mxu1 %v2586_v60 }
 0x2f9   : > { %v1959_v42 = vpop.permute.xlu0 %1958  ;;  %v1153_v7 = vpop.permute.xlu1 %1152  ;;  %3763 = vmatpush3.msra.mxu1 %v2586_v60  ;;  %v2472_v11 = vld [vmem:[#allocation3 + $0x90] sm:$0xff] }
 0x2fa   : > { %2029 = vst.msk [vmem:[#allocation3 + $0x278] sm:$0xff] %vm2002_vm9, %v1959_v42  ;;  %3764 = vmatprep.subr.mxu1 %v2585_v62 }
 0x2fb   : > { %1223 = vst.msk [vmem:[#allocation3 + $0x270] sm:$0xff] %vm1196_vm4, %v1153_v7  ;;  %2161 = vrot.lane.b32.xlu0 %v2066_v25, %s4331_s16  ;;  %3765 = vmatpush3.msra.mxu1 %v2585_v62  ;;  %v5536_v7 = vld [vmem:[#allocation2 + $0x111] sm:$0xff] }
 0x2fc   : > { %1443 = vst.msk [vmem:[#allocation3 + $0x270] sm:$0xff] %vm1389_vm5, %v5423_v17  ;;  %1928 = vrot.lane.b32.xlu1 %v1853_v32, %s4330_s28  ;;  %3766 = vmatprep.subr.mxu1 %v2584_v1  ;;  %v2264_v17 = vld [vmem:[#allocation2 + $0x71] sm:$0xff] }
 0x2fd   : > { %v5463_v41 = vpop.permute.xlu0 %1347  ;;  %v1725_v51 = vpop.permute.xlu1 %1724  ;;  %v2470_v20 = vld [vmem:[#allocation3 + $0x80] sm:$0xff]  ;;  %3767 = vmatpush3.msra.mxu1 %v2584_v1 }
 0x2fe   : > { %1446 = vst.msk [vmem:[#allocation3 + $0x290] sm:$0xff] %vm1391_vm6, %v5463_v41  ;;  %2788 = vmatprep.mubr.f32.mxu0 %v2470_v20  ;;  %3768 = vmatprep.subr.mxu1 %v2583_v6 }
 0x2ff   : > { %1815 = vst.msk [vmem:[#allocation3 + $0x98] sm:$0xff] %vm1808_vm8, %v1725_v51  ;;  %1317 = vrot.lane.b32.xlu0 %v1852_v63, %s4327_s21  ;;  %2789 = vmatmul.mubr.f32.gmra.mxu0 %v2469_v50 }
 0x300   : > { %2121 = vrot.lane.b32.xlu1 %v2046_v48, %s4331_s16  ;;  %3769 = vmatpush3.msra.mxu1 %v2583_v6 }
 0x301   : > { %v2152_v49 = vpop.permute.xlu0 %2151  ;;  %v1574_v37 = vpop.permute.xlu1 %1573  ;;  %3770 = vmatprep.subr.mxu1 %v2582_v24 }
 0x302   : > { %2249 = vst.msk [vmem:[#allocation3 + $0x278] sm:$0xff] %vm2195_vm10, %v2152_v49  ;;  %3771 = vmatpush3.msra.mxu1 %v2582_v24 }
 0x303   : > { %2250 = vst.msk [vmem:[#allocation3 + $0x280] sm:$0xff] %vm2197_vm11, %v2152_v49  ;;  %1543 = vrot.lane.b32.xlu0 %v5438_v61, %s4328_s12  ;;  %v2532_v38 = vld [vmem:[#allocation3 + $0x270] sm:$0xff] }
 0x304   : > { %1643 = vst.msk [vmem:[#allocation3 + $0x290] sm:$0xff] %vm1615_vm7, %v1574_v37  ;;  %1736 = vrot.lane.b32.xlu1 %v5473_v0, %s4329_s11 }
 0x305   : > { %v1919_v2 = vpop.permute.xlu0 %1918  ;;  %v1308_v4 = vpop.permute.xlu1 %1307 }
 0x306   : > { %2009 = vst.msk [vmem:[#allocation3 + $0x98] sm:$0xff] %vm2002_vm9, %v1919_v2  ;;  %v1858_v2 = vld [vmem:[#allocation2 + $0x147] sm:$0xff] }
 0x307   : > { %1405 = vst.msk [vmem:[#allocation3 + $0xa8] sm:$0xff] %vm1389_vm5, %v1308_v4  ;;  %2325 = vrot.lane.b32.xlu0 %v2261_v56, %s4332_s1 }
 0x308   : > { %1406 = vst.msk [vmem:[#allocation3 + $0xb0] sm:$0xff] %vm1391_vm6, %v1308_v4  ;;  %1930 = vrot.lane.b32.xlu1 %v1854_v8, %s4330_s28 }
 0x309   : > { %v1767_v9 = vpop.permute.xlu0 %1766  ;;  %v2112_v10 = vpop.permute.xlu1 %2111  ;;  %v2533_v55 = vld [vmem:[#allocation3 + $0x278] sm:$0xff] }
 0x30a   : > { %1836 = vst.msk [vmem:[#allocation3 + $0x290] sm:$0xff] %vm1808_vm8, %v1767_v9  ;;  %2893 = vmatprep.mubr.f32.mxu1 %v2533_v55 }
 0x30b   : > { %2209 = vst.msk [vmem:[#allocation3 + $0x98] sm:$0xff] %vm2195_vm10, %v2112_v10  ;;  %2327 = vrot.lane.b32.xlu0 %v2262_v12, %s4332_s1  ;;  %2894 = vmatmul.mubr.f32.gmra.mxu1 %v2532_v38 }
 0x30c   : > { %2210 = vst.msk [vmem:[#allocation3 + $0xa0] sm:$0xff] %vm2197_vm11, %v2112_v10  ;;  %1319 = vrot.lane.b32.xlu1 %v1853_v32, %s4327_s21 }
 0x30d   : > { %v1534_v13 = vpop.permute.xlu0 %1533  ;;  %v1961_v40 = vpop.permute.xlu1 %1960 }
 0x30e   : > { %1623 = vst.msk [vmem:[#allocation3 + $0xb0] sm:$0xff] %vm1615_vm7, %v1534_v13  ;;  %v2475_v25 = vld [vmem:[#allocation3 + $0xa8] sm:$0xff] }
 0x30f   : > { %2030 = vst.msk [vmem:[#allocation3 + $0x290] sm:$0xff] %vm2002_vm9, %v1961_v40  ;;  %2123 = vrot.lane.b32.xlu0 %v2047_v53, %s4331_s16  ;;  %v1859_v40 = vld [vmem:[#allocation2 + $0x14f] sm:$0xff] }
 0x310   : > { %1545 = vrot.lane.b32.xlu1 %v2046_v48, %s4328_s12 }
 0x311   : > { %v1155_v47 = vpop.permute.xlu0 %1154  ;;  %v1350_v31 = vpop.permute.xlu1 %1349 }
 0x312   : > { %v2473_v28 = vld [vmem:[#allocation3 + $0x98] sm:$0xff]  ;;  %1224 = vst.msk [vmem:[#allocation3 + $0x288] sm:$0xff] %vm1196_vm4, %v1155_v47 }
 0x313   : > { %1448 = vst.msk [vmem:[#allocation3 + $0x2a8] sm:$0xff] %vm1391_vm6, %v1350_v31  ;;  %2793 = vmatprep.mubr.f32.mxu0 %v2473_v28  ;;  %1738 = vrot.lane.b32.xlu0 %v5495_v59, %s4329_s11 }
 0x314   : > { %1445 = vst.msk [vmem:[#allocation3 + $0x288] sm:$0xff] %vm1389_vm5, %v5463_v41  ;;  %2329 = vrot.lane.b32.xlu1 %v2263_v27, %s4332_s1  ;;  %2794 = vmatmul.mubr.f32.gmra.mxu0 %v2472_v11  ;;  %v1857_v41 = vld [vmem:[#allocation2 + $0x12f] sm:$0xff] }
 0x315   : > { %v1727_v58 = vpop.permute.xlu0 %1726  ;;  %v2154_v43 = vpop.permute.xlu1 %2153 }
 0x316   : > { %1816 = vst.msk [vmem:[#allocation3 + $0xb0] sm:$0xff] %vm1808_vm8, %v1727_v58 }
 0x317   : > { %2251 = vst.msk [vmem:[#allocation3 + $0x290] sm:$0xff] %vm2195_vm10, %v2154_v43  ;;  %1932 = vrot.lane.b32.xlu0 %v1855_v29, %s4330_s28 }
 0x318   : > { %2252 = vst.msk [vmem:[#allocation3 + $0x298] sm:$0xff] %vm2197_vm11, %v2154_v43  ;;  %2331 = vrot.lane.b32.xlu1 %v2264_v17, %s4332_s1 }
 0x319   : > { %v1576_v52 = vpop.permute.xlu0 %1575  ;;  %v1921_v21 = vpop.permute.xlu1 %1920 }
 0x31a   : > { %1644 = vst.msk [vmem:[#allocation3 + $0x2a8] sm:$0xff] %vm1615_vm7, %v1576_v52 }
 0x31b   : > { %2010 = vst.msk [vmem:[#allocation3 + $0xb0] sm:$0xff] %vm2002_vm9, %v1921_v21  ;;  %1321 = vrot.lane.b32.xlu0 %v1854_v8, %s4327_s21  ;;  %v2535_v15 = vld [vmem:[#allocation3 + $0x288] sm:$0xff] }
 0x31c   : > { %2125 = vrot.lane.b32.xlu1 %v2048_v23, %s4331_s16 }
 0x31d   : > { %v1310_v19 = vpop.permute.xlu0 %1309  ;;  %v1769_v63 = vpop.permute.xlu1 %1768 }
 0x31e   : > { %v2536_v3 = vld [vmem:[#allocation3 + $0x290] sm:$0xff]  ;;  %1407 = vst.msk [vmem:[#allocation3 + $0xc0] sm:$0xff] %vm1389_vm5, %v1310_v19 }
 0x31f   : > { %1408 = vst.msk [vmem:[#allocation3 + $0xc8] sm:$0xff] %vm1391_vm6, %v1310_v19  ;;  %2898 = vmatprep.mubr.f32.mxu1 %v2536_v3  ;;  %1547 = vrot.lane.b32.xlu0 %v2047_v53, %s4328_s12 }
 0x320   : > { %1837 = vst.msk [vmem:[#allocation3 + $0x2a8] sm:$0xff] %vm1808_vm8, %v1769_v63  ;;  %1740 = vrot.lane.b32.xlu1 %v5514_v33, %s4329_s11  ;;  %2899 = vmatmul.mubr.f32.gmra.mxu1 %v2535_v15  ;;  %v2053_v63 = vld [vmem:[#allocation2 + $0x168] sm:$0xff] }
 0x321   : > { %v2114_v30 = vpop.permute.xlu0 %2113  ;;  %v1536_v61 = vpop.permute.xlu1 %1535 }
 0x322   : > { %2211 = vst.msk [vmem:[#allocation3 + $0xb0] sm:$0xff] %vm2195_vm10, %v2114_v30 }
 0x323   : > { %2212 = vst.msk [vmem:[#allocation3 + $0xb8] sm:$0xff] %vm2197_vm11, %v2114_v30  ;;  %2333 = vrot.lane.b32.xlu0 %v2265_v22, %s4332_s1  ;;  %v1667_v30 = vld [vmem:[#allocation2 + $0x151] sm:$0xff] }
 0x324   : > { %1624 = vst.msk [vmem:[#allocation3 + $0xc8] sm:$0xff] %vm1615_vm7, %v1536_v61  ;;  %1934 = vrot.lane.b32.xlu1 %v1856_v36, %s4330_s28 }
 0x325   : > { %v1963_v44 = vpop.permute.xlu0 %1962  ;;  %v1157_v39 = vpop.permute.xlu1 %1156  ;;  %v2478_v4 = vld [vmem:[#allocation3 + $0xc0] sm:$0xff] }
 0x326   : > { %2031 = vst.msk [vmem:[#allocation3 + $0x2a8] sm:$0xff] %vm2002_vm9, %v1963_v44  ;;  %v1861_v44 = vld [vmem:[#allocation2 + $0x16f] sm:$0xff] }
 0x327   : > { %1225 = vst.msk [vmem:[#allocation3 + $0x2a0] sm:$0xff] %vm1196_vm4, %v1157_v39  ;;  %2335 = vrot.lane.b32.xlu0 %v2266_v35, %s4332_s1 }
 0x328   : > { %1447 = vst.msk [vmem:[#allocation3 + $0x2a0] sm:$0xff] %vm1389_vm5, %v1350_v31  ;;  %1323 = vrot.lane.b32.xlu1 %v1855_v29, %s4327_s21  ;;  %v1860_v29 = vld [vmem:[#allocation2 + $0x167] sm:$0xff] }
 0x329   : > { %v1352_v46 = vpop.permute.xlu0 %1351  ;;  %v1729_v5 = vpop.permute.xlu1 %1728  ;;  %v2476_v54 = vld [vmem:[#allocation3 + $0xb0] sm:$0xff] }
 0x32a   : > { %1450 = vst.msk [vmem:[#allocation3 + $0x2c0] sm:$0xff] %vm1391_vm6, %v1352_v46  ;;  %2798 = vmatprep.mubr.f32.mxu0 %v2476_v54 }
 0x32b   : > { %1817 = vst.msk [vmem:[#allocation3 + $0xc8] sm:$0xff] %vm1808_vm8, %v1729_v5  ;;  %2127 = vrot.lane.b32.xlu0 %v2049_v26, %s4331_s16  ;;  %2799 = vmatmul.mubr.f32.gmra.mxu0 %v2475_v25  ;;  %v2054_v5 = vld [vmem:[#allocation2 + $0x170] sm:$0xff] }
 0x32c   : > { %1549 = vrot.lane.b32.xlu1 %v2048_v23, %s4328_s12 }
 0x32d   : > { %v2156_v45 = vpop.permute.xlu0 %2155  ;;  %v1578_v42 = vpop.permute.xlu1 %1577 }
 0x32e   : > { %2253 = vst.msk [vmem:[#allocation3 + $0x2a8] sm:$0xff] %vm2195_vm10, %v2156_v45 }
 0x32f   : > { %2254 = vst.msk [vmem:[#allocation3 + $0x2b0] sm:$0xff] %vm2197_vm11, %v2156_v45  ;;  %1742 = vrot.lane.b32.xlu0 %v5536_v7, %s4329_s11  ;;  %v2538_v48 = vld [vmem:[#allocation3 + $0x2a0] sm:$0xff] }
 0x330   : > { %1645 = vst.msk [vmem:[#allocation3 + $0x2c0] sm:$0xff] %vm1615_vm7, %v1578_v42  ;;  %2337 = vrot.lane.b32.xlu1 %v5350_v16, %s4332_s1  ;;  %v2050_v16 = vld [vmem:[#allocation2 + $0x130] sm:$0xff] }
 0x331   : > { %v1923_v32 = vpop.permute.xlu0 %1922  ;;  %v1312_v18 = vpop.permute.xlu1 %1311  ;;  %v1668_v42 = vld [vmem:[#allocation2 + $0x169] sm:$0xff] }
 0x332   : > { %2011 = vst.msk [vmem:[#allocation3 + $0xc8] sm:$0xff] %vm2002_vm9, %v1923_v32 }
 0x333   : > { %1409 = vst.msk [vmem:[#allocation3 + $0xd8] sm:$0xff] %vm1389_vm5, %v1312_v18  ;;  %1936 = vrot.lane.b32.xlu0 %v1857_v41, %s4330_s28 }
 0x334   : > { %1410 = vst.msk [vmem:[#allocation3 + $0xe0] sm:$0xff] %vm1391_vm6, %v1312_v18  ;;  %2339 = vrot.lane.b32.xlu1 %v5390_v34, %s4332_s1  ;;  %v5555_v34 = vld [vmem:[#allocation2 + $0x129] sm:$0xff] }
 0x335   : > { %v1771_v51 = vpop.permute.xlu0 %1770  ;;  %v2116_v20 = vpop.permute.xlu1 %2115  ;;  %v2539_v60 = vld [vmem:[#allocation3 + $0x2a8] sm:$0xff] }
 0x336   : > { %1838 = vst.msk [vmem:[#allocation3 + $0x2c0] sm:$0xff] %vm1808_vm8, %v1771_v51  ;;  %2903 = vmatprep.mubr.f32.mxu1 %v2539_v60 }
 0x337   : > { %2213 = vst.msk [vmem:[#allocation3 + $0xc8] sm:$0xff] %vm2195_vm10, %v2116_v20  ;;  %1325 = vrot.lane.b32.xlu0 %v1856_v36, %s4327_s21  ;;  %2904 = vmatmul.mubr.f32.gmra.mxu1 %v2538_v48 }
 0x338   : > { %2214 = vst.msk [vmem:[#allocation3 + $0xd0] sm:$0xff] %vm2197_vm11, %v2116_v20  ;;  %2129 = vrot.lane.b32.xlu1 %v2050_v16, %s4331_s16 }
 0x339   : > { %v1538_v50 = vpop.permute.xlu0 %1537  ;;  %v1965_v62 = vpop.permute.xlu1 %1964 }
 0x33a   : > { %1625 = vst.msk [vmem:[#allocation3 + $0xe0] sm:$0xff] %vm1615_vm7, %v1538_v50  ;;  %v2481_v11 = vld [vmem:[#allocation3 + $0xd8] sm:$0xff] }
 0x33b   : > { %2032 = vst.msk [vmem:[#allocation3 + $0x2c0] sm:$0xff] %vm2002_vm9, %v1965_v62  ;;  %1551 = vrot.lane.b32.xlu0 %v2049_v26, %s4328_s12 }
 0x33c   : > { %1744 = vrot.lane.b32.xlu1 %v5555_v34, %s4329_s11 }
 0x33d   : > { %v1159_v49 = vpop.permute.xlu0 %1158  ;;  %v1354_v37 = vpop.permute.xlu1 %1353 }
 0x33e   : > { %v2479_v1 = vld [vmem:[#allocation3 + $0xc8] sm:$0xff]  ;;  %1226 = vst.msk [vmem:[#allocation3 + $0x2b8] sm:$0xff] %vm1196_vm4, %v1159_v49 }
 0x33f   : > { %1452 = vst.msk [vmem:[#allocation3 + $0x2d8] sm:$0xff] %vm1391_vm6, %v1354_v37  ;;  %2803 = vmatprep.mubr.f32.mxu0 %v2479_v1  ;;  %2341 = vrot.lane.b32.xlu0 %v5418_v14, %s4332_s1  ;;  %v2051_v14 = vld [vmem:[#allocation2 + $0x148] sm:$0xff] }
 0x340   : > { %1449 = vst.msk [vmem:[#allocation3 + $0x2b8] sm:$0xff] %vm1389_vm5, %v1352_v46  ;;  %1938 = vrot.lane.b32.xlu1 %v1858_v2, %s4330_s28  ;;  %2804 = vmatmul.mubr.f32.gmra.mxu0 %v2478_v4 }
 0x341   : > { %v1731_v6 = vpop.permute.xlu0 %1730  ;;  %v2158_v56 = vpop.permute.xlu1 %2157 }
 0x342   : > { %1818 = vst.msk [vmem:[#allocation3 + $0xe0] sm:$0xff] %vm1808_vm8, %v1731_v6  ;;  %v1669_v6 = vld [vmem:[#allocation2 + $0x171] sm:$0xff] }
 0x343   : > { %2255 = vst.msk [vmem:[#allocation3 + $0x2c0] sm:$0xff] %vm2195_vm10, %v2158_v56  ;;  %2343 = vrot.lane.b32.xlu0 %v5451_v57, %s4332_s1  ;;  %v5579_v57 = vld [vmem:[#allocation2 + $0x131] sm:$0xff] }
 0x344   : > { %2256 = vst.msk [vmem:[#allocation3 + $0x2c8] sm:$0xff] %vm2197_vm11, %v2158_v56  ;;  %1327 = vrot.lane.b32.xlu1 %v1857_v41, %s4327_s21  ;;  %v1862_v41 = vld [vmem:[#allocation2 + $0x187] sm:$0xff] }
 0x345   : > { %v1580_v8 = vpop.permute.xlu0 %1579 }
 0x346   : > { %v1925_v24 = vpop.permute.xlu1 %1924  ;;  %1646 = vst.msk [vmem:[#allocation3 + $0x2d8] sm:$0xff] %vm1615_vm7, %v1580_v8 }
 0x347   : > { %2012 = vst.msk [vmem:[#allocation3 + $0xe0] sm:$0xff] %vm2002_vm9, %v1925_v24  ;;  %2131 = vrot.lane.b32.xlu0 %v2051_v14, %s4331_s16  ;;  %v2541_v12 = vld [vmem:[#allocation3 + $0x2b8] sm:$0xff] }
 0x348   : > { %1553 = vrot.lane.b32.xlu1 %v2050_v16, %s4328_s12 }
 0x349   : > { %v1314_v9 = vpop.permute.xlu0 %1313 }
 0x34a   : > { %v1773_v10 = vpop.permute.xlu1 %1772  ;;  %v2542_v55 = vld [vmem:[#allocation3 + $0x2c0] sm:$0xff]  ;;  %1411 = vst.msk [vmem:[#allocation3 + $0xf0] sm:$0xff] %vm1389_vm5, %v1314_v9 }
 0x34b   : > { %1412 = vst.msk [vmem:[#allocation3 + $0xf8] sm:$0xff] %vm1391_vm6, %v1314_v9  ;;  %2908 = vmatprep.mubr.f32.mxu1 %v2542_v55  ;;  %1746 = vrot.lane.b32.xlu0 %v5579_v57, %s4329_s11 }
 0x34c   : > { %1839 = vst.msk [vmem:[#allocation3 + $0x2d8] sm:$0xff] %vm1808_vm8, %v1773_v10  ;;  %2345 = vrot.lane.b32.xlu1 %v5473_v0, %s4332_s1  ;;  %2909 = vmatmul.mubr.f32.gmra.mxu1 %v2541_v12  ;;  %v2052_v0 = vld [vmem:[#allocation2 + $0x150] sm:$0xff] }
 0x34d   : > { %v2118_v38 = vpop.permute.xlu0 %2117  ;;  %v1863_v10 = vld [vmem:[#allocation2 + $0x18f] sm:$0xff] }
 0x34e   : > { %v1540_v13 = vpop.permute.xlu1 %1539  ;;  %2215 = vst.msk [vmem:[#allocation3 + $0xe0] sm:$0xff] %vm2195_vm10, %v2118_v38 }
 0x34f   : > { %2216 = vst.msk [vmem:[#allocation3 + $0xe8] sm:$0xff] %vm2197_vm11, %v2118_v38  ;;  %1940 = vrot.lane.b32.xlu0 %v1859_v40, %s4330_s28  ;;  %v2056_v38 = vld [vmem:[#allocation2 + $0x190] sm:$0xff] }
 0x350   : > { %1626 = vst.msk [vmem:[#allocation3 + $0xf8] sm:$0xff] %vm1615_vm7, %v1540_v13  ;;  %2347 = vrot.lane.b32.xlu1 %v5495_v59, %s4332_s1  ;;  %v5598_v59 = vld [vmem:[#allocation2 + $0x149] sm:$0xff] }
 0x351   : > { %v1967_v53 = vpop.permute.xlu0 %1966  ;;  %v2484_v39 = vld [vmem:[#allocation3 + $0xf0] sm:$0xff] }
 0x352   : > { %v1161_v47 = vpop.permute.xlu1 %1160  ;;  %2033 = vst.msk [vmem:[#allocation3 + $0x2d8] sm:$0xff] %vm2002_vm9, %v1967_v53 }
 0x353   : > { %1227 = vst.msk [vmem:[#allocation3 + $0x2d0] sm:$0xff] %vm1196_vm4, %v1161_v47  ;;  %1329 = vrot.lane.b32.xlu0 %v1858_v2, %s4327_s21 }
 0x354   : > { %1451 = vst.msk [vmem:[#allocation3 + $0x2d0] sm:$0xff] %vm1389_vm5, %v1354_v37  ;;  %2133 = vrot.lane.b32.xlu1 %v2052_v0, %s4331_s16  ;;  %v2055_v37 = vld [vmem:[#allocation2 + $0x188] sm:$0xff] }
 0x355   : > { %v1356_v31 = vpop.permute.xlu0 %1355  ;;  %v2482_v27 = vld [vmem:[#allocation3 + $0xe0] sm:$0xff] }
 0x356   : > { %v1733_v28 = vpop.permute.xlu1 %1732  ;;  %1454 = vst.msk [vmem:[#allocation3 + $0x2f0] sm:$0xff] %vm1391_vm6, %v1356_v31  ;;  %2808 = vmatprep.mubr.f32.mxu0 %v2482_v27 }
 0x357   : > { %1819 = vst.msk [vmem:[#allocation3 + $0xf8] sm:$0xff] %vm1808_vm8, %v1733_v28  ;;  %1555 = vrot.lane.b32.xlu0 %v2051_v14, %s4328_s12  ;;  %2809 = vmatmul.mubr.f32.gmra.mxu0 %v2481_v11 }
 0x358   : > { %1748 = vrot.lane.b32.xlu1 %v5598_v59, %s4329_s11 }
 0x359   : > { %v2160_v58 = vpop.permute.xlu0 %2159 }
 0x35a   : > { %v1582_v43 = vpop.permute.xlu1 %1581  ;;  %2257 = vst.msk [vmem:[#allocation3 + $0x2d8] sm:$0xff] %vm2195_vm10, %v2160_v58 }
 0x35b   : > { %2258 = vst.msk [vmem:[#allocation3 + $0x2e0] sm:$0xff] %vm2197_vm11, %v2160_v58  ;;  %2349 = vrot.lane.b32.xlu0 %v5514_v33, %s4332_s1  ;;  %v2544_v3 = vld [vmem:[#allocation3 + $0x2d0] sm:$0xff] }
 0x35c   : > { %1647 = vst.msk [vmem:[#allocation3 + $0x2f0] sm:$0xff] %vm1615_vm7, %v1582_v43  ;;  %1942 = vrot.lane.b32.xlu1 %v1860_v29, %s4330_s28 }
 0x35d   : > { %v1927_v17 = vpop.permute.xlu0 %1926 }
 0x35e   : > { %v1316_v52 = vpop.permute.xlu1 %1315  ;;  %2013 = vst.msk [vmem:[#allocation3 + $0xf8] sm:$0xff] %vm2002_vm9, %v1927_v17 }
 0x35f   : > { %1413 = vst.msk [vmem:[#allocation3 + $0x108] sm:$0xff] %vm1389_vm5, %v1316_v52  ;;  %2351 = vrot.lane.b32.xlu0 %v5536_v7, %s4332_s1 }
 0x360   : > { %1414 = vst.msk [vmem:[#allocation3 + $0x110] sm:$0xff] %vm1391_vm6, %v1316_v52  ;;  %1331 = vrot.lane.b32.xlu1 %v1859_v40, %s4327_s21  ;;  %v2282_v52 = vld [vmem:[#allocation2 + $0x191] sm:$0xff] }
 0x361   : > { %v1775_v21 = vpop.permute.xlu0 %1774  ;;  %v2545_v19 = vld [vmem:[#allocation3 + $0x2d8] sm:$0xff] }
 0x362   : > { %v2120_v23 = vpop.permute.xlu1 %2119  ;;  %1840 = vst.msk [vmem:[#allocation3 + $0x2f0] sm:$0xff] %vm1808_vm8, %v1775_v21  ;;  %2913 = vmatprep.mubr.f32.mxu1 %v2545_v19 }
 0x363   : > { %2217 = vst.msk [vmem:[#allocation3 + $0xf8] sm:$0xff] %vm2195_vm10, %v2120_v23  ;;  %2135 = vrot.lane.b32.xlu0 %v2053_v63, %s4331_s16  ;;  %2914 = vmatmul.mubr.f32.gmra.mxu1 %v2544_v3 }
 0x364   : > { %2218 = vst.msk [vmem:[#allocation3 + $0x100] sm:$0xff] %vm2197_vm11, %v2120_v23  ;;  %1557 = vrot.lane.b32.xlu1 %v2052_v0, %s4328_s12  ;;  %v1670_v0 = vld [vmem:[#allocation2 + $0x189] sm:$0xff] }
 0x365   : > { %v1542_v33 = vpop.permute.xlu0 %1541 }
 0x366   : > { %v1969_v15 = vpop.permute.xlu1 %1968  ;;  %1627 = vst.msk [vmem:[#allocation3 + $0x110] sm:$0xff] %vm1615_vm7, %v1542_v33  ;;  %v2487_v48 = vld [vmem:[#allocation3 + $0x108] sm:$0xff] }
 0x367   : > { %2034 = vst.msk [vmem:[#allocation3 + $0x2f0] sm:$0xff] %vm2002_vm9, %v1969_v15  ;;  %1750 = vrot.lane.b32.xlu0 %v1667_v30, %s4329_s11 }
 0x368   : > { %2353 = vrot.lane.b32.xlu1 %v5555_v34, %s4332_s1 }
 0x369   : > { %v1163_v61 = vpop.permute.xlu0 %1162 }
 0x36a   : > { %v1735_v22 = vpop.permute.xlu1 %1734  ;;  %v2485_v36 = vld [vmem:[#allocation3 + $0xf8] sm:$0xff]  ;;  %1228 = vst.msk [vmem:[#allocation3 + $0x2e8] sm:$0xff] %vm1196_vm4, %v1163_v61 }
 0x36b   : > { %1820 = vst.msk [vmem:[#allocation3 + $0x110] sm:$0xff] %vm1808_vm8, %v1735_v22  ;;  %2813 = vmatprep.mubr.f32.mxu0 %v2485_v36  ;;  %1944 = vrot.lane.b32.xlu0 %v1861_v44, %s4330_s28 }
 0x36c   : > { %1453 = vst.msk [vmem:[#allocation3 + $0x2e8] sm:$0xff] %vm1389_vm5, %v1356_v31  ;;  %2355 = vrot.lane.b32.xlu1 %v5579_v57, %s4332_s1  ;;  %2814 = vmatmul.mubr.f32.gmra.mxu0 %v2484_v39 }
 0x36d   : > { %v2162_v35 = vpop.permute.xlu0 %2161 }
 0x36e   : > { %v1929_v46 = vpop.permute.xlu1 %1928  ;;  %2259 = vst.msk [vmem:[#allocation3 + $0x2f0] sm:$0xff] %vm2195_vm10, %v2162_v35 }
 0x36f   : > { %2260 = vst.msk [vmem:[#allocation3 + $0x2f8] sm:$0xff] %vm2197_vm11, %v2162_v35  ;;  %1333 = vrot.lane.b32.xlu0 %v1860_v29, %s4327_s21  ;;  %v2283_v35 = vld [vmem:[#allocation2 + $0x1a9] sm:$0xff] }
 0x370   : > { %2014 = vst.msk [vmem:[#allocation3 + $0x110] sm:$0xff] %vm2002_vm9, %v1929_v46  ;;  %2137 = vrot.lane.b32.xlu1 %v2054_v5, %s4331_s16  ;;  %v1865_v46 = vld [vmem:[#allocation2 + $0x1af] sm:$0xff] }
 0x371   : > { %v5636_v54 = vpop.f32.mrf.mxu0  ;;  %v1318_v26 = vpop.permute.xlu0 %1317 }
 0x372   : > { %v2122_v25 = vpop.permute.xlu1 %2121  ;;  %1415 = vst.msk [vmem:[#allocation3 + $0x120] sm:$0xff] %vm1389_vm5, %v1318_v26 }
 0x373   : > { %1416 = vst.msk [vmem:[#allocation3 + $0x128] sm:$0xff] %vm1391_vm6, %v1318_v26  ;;  %v2767_v45 = vpop.f32.mrf.mxu0  ;;  %1559 = vrot.lane.b32.xlu0 %v2053_v63, %s4328_s12  ;;  %v2547_v51 = vld [vmem:[#allocation3 + $0x2e8] sm:$0xff] }
 0x374   : > { %2219 = vst.msk [vmem:[#allocation3 + $0x110] sm:$0xff] %vm2195_vm10, %v2122_v25  ;;  %1752 = vrot.lane.b32.xlu1 %v1668_v42, %s4329_s11  ;;  %v2057_v63 = vld [vmem:[#allocation2 + $0x1a8] sm:$0xff]  ;;  %v2284_v45 = vld [vmem:[#allocation2 + $0x1b1] sm:$0xff] }
 0x375   : > { %2220 = vst.msk [vmem:[#allocation3 + $0x118] sm:$0xff] %vm2197_vm11, %v2122_v25  ;;  %v1544_v7 = vpop.permute.xlu0 %1543  ;;  %v2548_v18 = vld [vmem:[#allocation3 + $0x2f0] sm:$0xff] }
 0x376   : > { %v1737_v32 = vpop.permute.xlu1 %1736  ;;  %1628 = vst.msk [vmem:[#allocation3 + $0x128] sm:$0xff] %vm1615_vm7, %v1544_v7  ;;  %2918 = vmatprep.mubr.f32.mxu1 %v2548_v18 }
 0x377   : > { %1821 = vst.msk [vmem:[#allocation3 + $0x128] sm:$0xff] %vm1808_vm8, %v1737_v32  ;;  %2357 = vrot.lane.b32.xlu0 %v5598_v59, %s4332_s1  ;;  %2919 = vmatmul.mubr.f32.gmra.mxu1 %v2547_v51  ;;  %v1864_v59 = vld [vmem:[#allocation2 + $0x1a7] sm:$0xff] }
 0x378   : > { %1946 = vrot.lane.b32.xlu1 %v1862_v41, %s4330_s28 }
 0x379   : > { %v2326_v20 = vpop.permute.xlu0 %2325  ;;  %v2490_v13 = vld [vmem:[#allocation3 + $0x120] sm:$0xff] }
 0x37a   : > { %v1931_v60 = vpop.permute.xlu1 %1930  ;;  %2422 = vst.msk [vmem:[#allocation3 + $0x10] sm:$0xff] %vm2421_vm13, %v2326_v20 }
 0x37b   : > { %v2488_v16 = vld [vmem:[#allocation3 + $0x110] sm:$0xff]  ;;  %2015 = vst.msk [vmem:[#allocation3 + $0x128] sm:$0xff] %vm2002_vm9, %v1931_v60  ;;  %2359 = vrot.lane.b32.xlu0 %v1667_v30, %s4332_s1 }
 0x37c   : > { %2818 = vmatprep.mubr.f32.mxu0 %v2488_v16  ;;  %1335 = vrot.lane.b32.xlu1 %v1861_v44, %s4327_s21  ;;  %v5653_v50 = vpop.f32.mrf.mxu0  ;;  %v2058_v30 = vld [vmem:[#allocation2 + $0x1b0] sm:$0xff] }
 0x37d   : > { %2819 = vmatmul.mubr.f32.gmra.mxu0 %v2487_v48  ;;  %v2328_v62 = vpop.permute.xlu0 %2327  ;;  %v2286_v60 = vld [vmem:[#allocation2 + $0x1d1] sm:$0xff]  ;;  %v2287_v16 = vld [vmem:[#allocation2 + $0x1e9] sm:$0xff] }
 0x37e   : > { %v1320_v34 = vpop.permute.xlu1 %1319  ;;  %2423 = vst.msk [vmem:[#allocation3 + $0x28] sm:$0xff] %vm2421_vm13, %v2328_v62  ;;  %v2772_v49 = vpop.f32.mrf.mxu0 }
 0x37f   : > { %1417 = vst.msk [vmem:[#allocation3 + $0x138] sm:$0xff] %vm1389_vm5, %v1320_v34  ;;  %2139 = vrot.lane.b32.xlu0 %v2055_v37, %s4331_s16  ;;  %v2288_v49 = vld [vmem:[#allocation2 + $0x1f1] sm:$0xff] }
 0x380   : > { %1418 = vst.msk [vmem:[#allocation3 + $0x140] sm:$0xff] %vm1391_vm6, %v1320_v34  ;;  %1561 = vrot.lane.b32.xlu1 %v2054_v5, %s4328_s12 }
 0x381   : > { %v2124_v1 = vpop.permute.xlu0 %2123  ;;  %v2456_v4 = vld [vmem:[#allocation3 + $0x10] sm:$0xff] }
 0x382   : > { %v1546_v2 = vpop.permute.xlu1 %1545  ;;  %2221 = vst.msk [vmem:[#allocation3 + $0x128] sm:$0xff] %vm2195_vm10, %v2124_v1  ;;  %3772 = vmatprep.mubr.msk.f32.mxu1 %vm2598_vm14, %v2456_v4 }
 0x383   : > { %2222 = vst.msk [vmem:[#allocation3 + $0x130] sm:$0xff] %vm2197_vm11, %v2124_v1  ;;  %1754 = vrot.lane.b32.xlu0 %v1669_v6, %s4329_s11 }
 0x384   : > { %1629 = vst.msk [vmem:[#allocation3 + $0x140] sm:$0xff] %vm1615_vm7, %v1546_v2  ;;  %2361 = vrot.lane.b32.xlu1 %v1668_v42, %s4332_s1  ;;  %v2285_v42 = vld [vmem:[#allocation2 + $0x1c9] sm:$0xff] }
 0x385   : > { %v5666_v56 = vpop.f32.mrf.mxu0  ;;  %v1739_v8 = vpop.permute.xlu0 %1738  ;;  %v2459_v14 = vld [vmem:[#allocation3 + $0x28] sm:$0xff] }
 0x386   : > { %v2330_v24 = vpop.permute.xlu1 %2329  ;;  %1822 = vst.msk [vmem:[#allocation3 + $0x140] sm:$0xff] %vm1808_vm8, %v1739_v8  ;;  %3773 = vmatmul.mubr.msk.f32.vlgmr.msra.gmra.mxu1 %vm2598_vm14, %v2459_v14  ;;  %v2493_v21 = vld [vmem:[#allocation3 + $0x138] sm:$0xff] }
 0x387   : > { %2424 = vst.msk [vmem:[#allocation3 + $0x40] sm:$0xff] %vm2421_vm13, %v2330_v24  ;;  %v2777_v9 = vpop.f32.mrf.mxu0  ;;  %1948 = vrot.lane.b32.xlu0 %v1863_v10, %s4330_s28  ;;  %v2290_v8 = vld [vmem:[#allocation2 + $0x211] sm:$0xff] }
 0x388   : > { %2363 = vrot.lane.b32.xlu1 %v1669_v6, %s4332_s1  ;;  %v2291_v6 = vld [vmem:[#allocation2 + $0x229] sm:$0xff]  ;;  %v2292_v9 = vld [vmem:[#allocation2 + $0x231] sm:$0xff] }
 0x389   : > { %v1933_v55 = vpop.permute.xlu0 %1932  ;;  %v2491_v12 = vld [vmem:[#allocation3 + $0x128] sm:$0xff] }
 0x38a   : > { %v2332_v57 = vpop.permute.xlu1 %2331  ;;  %2016 = vst.msk [vmem:[#allocation3 + $0x140] sm:$0xff] %vm2002_vm9, %v1933_v55  ;;  %2823 = vmatprep.mubr.f32.mxu0 %v2491_v12 }
 0x38b   : > { %2425 = vst.msk [vmem:[#allocation3 + $0x58] sm:$0xff] %vm2421_vm13, %v2332_v57  ;;  %1337 = vrot.lane.b32.xlu0 %v1862_v41, %s4327_s21  ;;  %2824 = vmatmul.mubr.f32.gmra.mxu0 %v2490_v13 }
 0x38c   : > { %2141 = vrot.lane.b32.xlu1 %v2056_v38, %s4331_s16 }
 0x38d   : > { %v1322_v40 = vpop.permute.xlu0 %1321 }
 0x38e   : > { %v2126_v53 = vpop.permute.xlu1 %2125  ;;  %v2462_v47 = vld [vmem:[#allocation3 + $0x40] sm:$0xff]  ;;  %1419 = vst.msk [vmem:[#allocation3 + $0x150] sm:$0xff] %vm1389_vm5, %v1322_v40 }
 0x38f   : > { %1420 = vst.msk [vmem:[#allocation3 + $0x158] sm:$0xff] %vm1391_vm6, %v1322_v40  ;;  %3775 = vmatprep.mubr.msk.f32.mxu1 %vm2598_vm14, %v2462_v47  ;;  %1563 = vrot.lane.b32.xlu0 %v2055_v37, %s4328_s12  ;;  %v2289_v37 = vld [vmem:[#allocation2 + $0x209] sm:$0xff] }
 0x390   : > { %2223 = vst.msk [vmem:[#allocation3 + $0x140] sm:$0xff] %vm2195_vm10, %v2126_v53  ;;  %1756 = vrot.lane.b32.xlu1 %v1670_v0, %s4329_s11 }
 0x391   : > { %2224 = vst.msk [vmem:[#allocation3 + $0x148] sm:$0xff] %vm2197_vm11, %v2126_v53  ;;  %v1548_v31 = vpop.permute.xlu0 %1547 }
 0x392   : > { %v1741_v28 = vpop.permute.xlu1 %1740  ;;  %v2465_v27 = vld [vmem:[#allocation3 + $0x58] sm:$0xff]  ;;  %1630 = vst.msk [vmem:[#allocation3 + $0x158] sm:$0xff] %vm1615_vm7, %v1548_v31 }
 0x393   : > { %3776 = vmatmul.mubr.msk.f32.gmra.mxu1 %vm2598_vm14, %v2465_v27  ;;  %1823 = vst.msk [vmem:[#allocation3 + $0x158] sm:$0xff] %vm1808_vm8, %v1741_v28  ;;  %2365 = vrot.lane.b32.xlu0 %v1670_v0, %s4332_s1 }
 0x394   : > { %1950 = vrot.lane.b32.xlu1 %v1864_v59, %s4330_s28  ;;  %v5689_v11 = vpop.f32.mrf.mxu0 }
 0x395   : > { %v2334_v58 = vpop.permute.xlu0 %2333  ;;  %v2496_v7 = vld [vmem:[#allocation3 + $0x150] sm:$0xff] }
 0x396   : > { %v1935_v43 = vpop.permute.xlu1 %1934  ;;  %2426 = vst.msk [vmem:[#allocation3 + $0x70] sm:$0xff] %vm2421_vm13, %v2334_v58  ;;  %v2782_v17 = vpop.f32.mrf.mxu0 }
 0x397   : > { %v2494_v29 = vld [vmem:[#allocation3 + $0x140] sm:$0xff]  ;;  %2017 = vst.msk [vmem:[#allocation3 + $0x158] sm:$0xff] %vm2002_vm9, %v1935_v43  ;;  %2367 = vrot.lane.b32.xlu0 %v2282_v52, %s4332_s1 }
 0x398   : > { %2828 = vmatprep.mubr.f32.mxu0 %v2494_v29  ;;  %1339 = vrot.lane.b32.xlu1 %v1863_v10, %s4327_s21 }
 0x399   : > { %2829 = vmatmul.mubr.f32.gmra.mxu0 %v2493_v21  ;;  %v2336_v23 = vpop.permute.xlu0 %2335 }
 0x39a   : > { %v1324_v19 = vpop.permute.xlu1 %1323  ;;  %2427 = vst.msk [vmem:[#allocation3 + $0x88] sm:$0xff] %vm2421_vm13, %v2336_v23 }
 0x39b   : > { %1421 = vst.msk [vmem:[#allocation3 + $0x168] sm:$0xff] %vm1389_vm5, %v1324_v19  ;;  %2143 = vrot.lane.b32.xlu0 %v2057_v63, %s4331_s16 }
 0x39c   : > { %1422 = vst.msk [vmem:[#allocation3 + $0x170] sm:$0xff] %vm1391_vm6, %v1324_v19  ;;  %1565 = vrot.lane.b32.xlu1 %v2056_v38, %s4328_s12 }
 0x39d   : > { %v2128_v3 = vpop.permute.xlu0 %2127  ;;  %v2468_v15 = vld [vmem:[#allocation3 + $0x70] sm:$0xff] }
 0x39e   : > { %v1550_v33 = vpop.permute.xlu1 %1549  ;;  %2225 = vst.msk [vmem:[#allocation3 + $0x158] sm:$0xff] %vm2195_vm10, %v2128_v3  ;;  %3778 = vmatprep.mubr.msk.f32.mxu1 %vm2598_vm14, %v2468_v15 }
 0x39f   : > { %2226 = vst.msk [vmem:[#allocation3 + $0x160] sm:$0xff] %vm2197_vm11, %v2128_v3  ;;  %1758 = vrot.lane.b32.xlu0 %v2282_v52, %s4329_s11  ;;  %v5706_v61 = vpop.f32.mrf.mxu1 }
 0x3a0   : > { %1631 = vst.msk [vmem:[#allocation3 + $0x170] sm:$0xff] %vm1615_vm7, %v1550_v33  ;;  %2145 = vrot.lane.b32.xlu1 %v2058_v30, %s4331_s16 }
 0x3a1   : > { %v1743_v22 = vpop.permute.xlu0 %1742  ;;  %v2471_v44 = vld [vmem:[#allocation3 + $0x88] sm:$0xff]  ;;  %v2887_v39 = vpop.f32.mrf.mxu1 }
 0x3a2   : > { %v2338_v36 = vpop.permute.xlu1 %2337  ;;  %1824 = vst.msk [vmem:[#allocation3 + $0x170] sm:$0xff] %vm1808_vm8, %v1743_v22  ;;  %3779 = vmatmul.mubr.msk.f32.gmra.mxu1 %vm2598_vm14, %v2471_v44  ;;  %v2499_v24 = vld [vmem:[#allocation3 + $0x168] sm:$0xff] }
 0x3a3   : > { %2428 = vst.msk [vmem:[#allocation3 + $0xa0] sm:$0xff] %vm2421_vm13, %v2338_v36  ;;  %2369 = vrot.lane.b32.xlu0 %v2283_v35, %s4332_s1 }
 0x3a4   : > { %1952 = vrot.lane.b32.xlu1 %v1865_v46, %s4330_s28 }
 0x3a5   : > { %v1937_v5 = vpop.permute.xlu0 %1936  ;;  %v2497_v25 = vld [vmem:[#allocation3 + $0x158] sm:$0xff] }
 0x3a6   : > { %v2340_v26 = vpop.permute.xlu1 %2339  ;;  %2018 = vst.msk [vmem:[#allocation3 + $0x170] sm:$0xff] %vm2002_vm9, %v1937_v5  ;;  %2833 = vmatprep.mubr.f32.mxu0 %v2497_v25 }
 0x3a7   : > { %2429 = vst.msk [vmem:[#allocation3 + $0xb8] sm:$0xff] %vm2421_vm13, %v2340_v26  ;;  %2371 = vrot.lane.b32.xlu0 %v2284_v45, %s4332_s1  ;;  %2834 = vmatmul.mubr.f32.gmra.mxu0 %v2496_v7 }
 0x3a8   : > { %2373 = vrot.lane.b32.xlu1 %v2285_v42, %s4332_s1  ;;  %v5717_v32 = vpop.f32.mrf.mxu0 }
 0x3a9   : > { %v1326_v18 = vpop.permute.xlu0 %1325 }
 0x3aa   : > { %v2130_v41 = vpop.permute.xlu1 %2129  ;;  %v2474_v51 = vld [vmem:[#allocation3 + $0xa0] sm:$0xff]  ;;  %1423 = vst.msk [vmem:[#allocation3 + $0x180] sm:$0xff] %vm1389_vm5, %v1326_v18  ;;  %v2787_v20 = vpop.f32.mrf.mxu0 }
 0x3ab   : > { %1424 = vst.msk [vmem:[#allocation3 + $0x188] sm:$0xff] %vm1391_vm6, %v1326_v18  ;;  %3781 = vmatprep.mubr.msk.f32.mxu1 %vm2598_vm14, %v2474_v51  ;;  %2375 = vrot.lane.b32.xlu0 %v2286_v60, %s4332_s1 }
 0x3ac   : > { %2227 = vst.msk [vmem:[#allocation3 + $0x170] sm:$0xff] %vm2195_vm10, %v2130_v41  ;;  %2377 = vrot.lane.b32.xlu1 %v2287_v16, %s4332_s1 }
 0x3ad   : > { %2228 = vst.msk [vmem:[#allocation3 + $0x178] sm:$0xff] %vm2197_vm11, %v2130_v41  ;;  %v1552_v48 = vpop.permute.xlu0 %1551 }
 0x3ae   : > { %v1745_v62 = vpop.permute.xlu1 %1744  ;;  %v2477_v34 = vld [vmem:[#allocation3 + $0xb8] sm:$0xff]  ;;  %1632 = vst.msk [vmem:[#allocation3 + $0x188] sm:$0xff] %vm1615_vm7, %v1552_v48 }
 0x3af   : > { %3782 = vmatmul.mubr.msk.f32.gmra.mxu1 %vm2598_vm14, %v2477_v34  ;;  %1825 = vst.msk [vmem:[#allocation3 + $0x188] sm:$0xff] %vm1808_vm8, %v1745_v62  ;;  %2379 = vrot.lane.b32.xlu0 %v2288_v49, %s4332_s1 }
 0x3b0   : > { %2381 = vrot.lane.b32.xlu1 %v2289_v37, %s4332_s1 }
 0x3b1   : > { %v2342_v1 = vpop.permute.xlu0 %2341  ;;  %v2502_v58 = vld [vmem:[#allocation3 + $0x180] sm:$0xff] }
 0x3b2   : > { %v1939_v2 = vpop.permute.xlu1 %1938  ;;  %2430 = vst.msk [vmem:[#allocation3 + $0xd0] sm:$0xff] %vm2421_vm13, %v2342_v1 }
 0x3b3   : > { %v2500_v4 = vld [vmem:[#allocation3 + $0x170] sm:$0xff]  ;;  %2019 = vst.msk [vmem:[#allocation3 + $0x188] sm:$0xff] %vm2002_vm9, %v1939_v2  ;;  %2383 = vrot.lane.b32.xlu0 %v2290_v8, %s4332_s1 }
 0x3b4   : > { %2838 = vmatprep.mubr.f32.mxu0 %v2500_v4  ;;  %v5734_v14 = vpop.f32.mrf.mxu1  ;;  %2385 = vrot.lane.b32.xlu1 %v2291_v6, %s4332_s1 }
 0x3b5   : > { %2839 = vmatmul.mubr.f32.gmra.mxu0 %v2499_v24  ;;  %v2344_v10 = vpop.permute.xlu0 %2343 }
 0x3b6   : > { %v1328_v55 = vpop.permute.xlu1 %1327  ;;  %2431 = vst.msk [vmem:[#allocation3 + $0xe8] sm:$0xff] %vm2421_vm13, %v2344_v10  ;;  %v2892_v57 = vpop.f32.mrf.mxu1 }
 0x3b7   : > { %1425 = vst.msk [vmem:[#allocation3 + $0x198] sm:$0xff] %vm1389_vm5, %v1328_v55  ;;  %2387 = vrot.lane.b32.xlu0 %v2292_v9, %s4332_s1 }
 0x3b8   : > { %1426 = vst.msk [vmem:[#allocation3 + $0x1a0] sm:$0xff] %vm1391_vm6, %v1328_v55 }
 0x3b9   : > { %v2132_v12 = vpop.permute.xlu0 %2131  ;;  %v2480_v13 = vld [vmem:[#allocation3 + $0xd0] sm:$0xff] }
 0x3ba   : > { %v1554_v38 = vpop.permute.xlu1 %1553  ;;  %2229 = vst.msk [vmem:[#allocation3 + $0x188] sm:$0xff] %vm2195_vm10, %v2132_v12  ;;  %3784 = vmatprep.mubr.msk.f32.mxu1 %vm2598_vm14, %v2480_v13 }
 0x3bb   : > { %2230 = vst.msk [vmem:[#allocation3 + $0x190] sm:$0xff] %vm2197_vm11, %v2132_v12 }
 0x3bc   : > { %1633 = vst.msk [vmem:[#allocation3 + $0x1a0] sm:$0xff] %vm1615_vm7, %v1554_v38 }
 0x3bd   : > { %v1747_v40 = vpop.permute.xlu0 %1746  ;;  %v2483_v47 = vld [vmem:[#allocation3 + $0xe8] sm:$0xff] }
 0x3be   : > { %v2346_v53 = vpop.permute.xlu1 %2345  ;;  %1826 = vst.msk [vmem:[#allocation3 + $0x1a0] sm:$0xff] %vm1808_vm8, %v1747_v40  ;;  %3785 = vmatmul.mubr.msk.f32.gmra.mxu1 %vm2598_vm14, %v2483_v47  ;;  %v2505_v30 = vld [vmem:[#allocation3 + $0x198] sm:$0xff] }
 0x3bf   : > { %2432 = vst.msk [vmem:[#allocation3 + $0x100] sm:$0xff] %vm2421_vm13, %v2346_v53  ;;  %v5748_v0 = vpop.f32.mrf.mxu0 }
 0x3c1   : > { %v1941_v31 = vpop.permute.xlu0 %1940  ;;  %v2503_v27 = vld [vmem:[#allocation3 + $0x188] sm:$0xff]  ;;  %v2792_v59 = vpop.f32.mrf.mxu0 }
 0x3c2   : > { %v2348_v28 = vpop.permute.xlu1 %2347  ;;  %2020 = vst.msk [vmem:[#allocation3 + $0x1a0] sm:$0xff] %vm2002_vm9, %v1941_v31  ;;  %2843 = vmatprep.mubr.f32.mxu0 %v2503_v27 }
 0x3c3   : > { %2433 = vst.msk [vmem:[#allocation3 + $0x118] sm:$0xff] %vm2421_vm13, %v2348_v28  ;;  %2844 = vmatmul.mubr.f32.gmra.mxu0 %v2502_v58 }
 0x3c5   : > { %v1330_v43 = vpop.permute.xlu0 %1329 }
 0x3c6   : > { %v2134_v29 = vpop.permute.xlu1 %2133  ;;  %v2486_v17 = vld [vmem:[#allocation3 + $0x100] sm:$0xff]  ;;  %1427 = vst.msk [vmem:[#allocation3 + $0x1b0] sm:$0xff] %vm1389_vm5, %v1330_v43 }
 0x3c7   : > { %1428 = vst.msk [vmem:[#allocation3 + $0x1b8] sm:$0xff] %vm1391_vm6, %v1330_v43  ;;  %3787 = vmatprep.mubr.msk.f32.mxu1 %vm2598_vm14, %v2486_v17 }
 0x3c8   : > { %2231 = vst.msk [vmem:[#allocation3 + $0x1a0] sm:$0xff] %vm2195_vm10, %v2134_v29 }
 0x3c9   : > { %2232 = vst.msk [vmem:[#allocation3 + $0x1a8] sm:$0xff] %vm2197_vm11, %v2134_v29  ;;  %v1556_v52 = vpop.permute.xlu0 %1555 }
 0x3ca   : > { %v1749_v21 = vpop.permute.xlu1 %1748  ;;  %v2489_v23 = vld [vmem:[#allocation3 + $0x118] sm:$0xff]  ;;  %1634 = vst.msk [vmem:[#allocation3 + $0x1b8] sm:$0xff] %vm1615_vm7, %v1556_v52 }
 0x3cb   : > { %3788 = vmatmul.mubr.msk.f32.gmra.mxu1 %vm2598_vm14, %v2489_v23  ;;  %1827 = vst.msk [vmem:[#allocation3 + $0x1b8] sm:$0xff] %vm1808_vm8, %v1749_v21  ;;  %v5760_v19 = vpop.f32.mrf.mxu1 }
 0x3cd   : > { %v2350_v63 = vpop.permute.xlu0 %2349  ;;  %v2897_v15 = vpop.f32.mrf.mxu1  ;;  %v2508_v41 = vld [vmem:[#allocation3 + $0x1b0] sm:$0xff] }
 0x3ce   : > { %v1943_v3 = vpop.permute.xlu1 %1942  ;;  %2434 = vst.msk [vmem:[#allocation3 + $0x130] sm:$0xff] %vm2421_vm13, %v2350_v63 }
 0x3cf   : > { %v2506_v33 = vld [vmem:[#allocation3 + $0x1a0] sm:$0xff]  ;;  %2021 = vst.msk [vmem:[#allocation3 + $0x1b8] sm:$0xff] %vm2002_vm9, %v1943_v3 }
 0x3d0   : > { %2848 = vmatprep.mubr.f32.mxu0 %v2506_v33 }
 0x3d1   : > { %2849 = vmatmul.mubr.f32.gmra.mxu0 %v2505_v30  ;;  %v2352_v22 = vpop.permute.xlu0 %2351 }
 0x3d2   : > { %v1332_v36 = vpop.permute.xlu1 %1331  ;;  %2435 = vst.msk [vmem:[#allocation3 + $0x148] sm:$0xff] %vm2421_vm13, %v2352_v22 }
 0x3d3   : > { %1429 = vst.msk [vmem:[#allocation3 + $0x1c8] sm:$0xff] %vm1389_vm5, %v1332_v36 }
 0x3d4   : > { %1430 = vst.msk [vmem:[#allocation3 + $0x1d0] sm:$0xff] %vm1391_vm6, %v1332_v36  ;;  %v5767_v44 = vpop.f32.mrf.mxu0 }
 0x3d5   : > { %v2136_v39 = vpop.permute.xlu0 %2135  ;;  %v2492_v46 = vld [vmem:[#allocation3 + $0x130] sm:$0xff] }
 0x3d6   : > { %v1558_v35 = vpop.permute.xlu1 %1557  ;;  %2233 = vst.msk [vmem:[#allocation3 + $0x1b8] sm:$0xff] %vm2195_vm10, %v2136_v39  ;;  %v2797_v5 = vpop.f32.mrf.mxu0  ;;  %3790 = vmatprep.mubr.msk.f32.mxu1 %vm2598_vm14, %v2492_v46 }
 0x3d7   : > { %2234 = vst.msk [vmem:[#allocation3 + $0x1c0] sm:$0xff] %vm2197_vm11, %v2136_v39 }
 0x3d8   : > { %1635 = vst.msk [vmem:[#allocation3 + $0x1d0] sm:$0xff] %vm1615_vm7, %v1558_v35 }
 0x3d9   : > { %v1751_v26 = vpop.permute.xlu0 %1750  ;;  %v2495_v45 = vld [vmem:[#allocation3 + $0x148] sm:$0xff] }
 0x3da   : > { %v2354_v25 = vpop.permute.xlu1 %2353  ;;  %1828 = vst.msk [vmem:[#allocation3 + $0x1d0] sm:$0xff] %vm1808_vm8, %v1751_v26  ;;  %3791 = vmatmul.mubr.msk.f32.gmra.mxu1 %vm2598_vm14, %v2495_v45  ;;  %v2511_v4 = vld [vmem:[#allocation3 + $0x1c8] sm:$0xff] }
 0x3db   : > { %2436 = vst.msk [vmem:[#allocation3 + $0x160] sm:$0xff] %vm2421_vm13, %v2354_v25 }
 0x3dd   : > { %v1945_v42 = vpop.permute.xlu0 %1944  ;;  %v2509_v18 = vld [vmem:[#allocation3 + $0x1b8] sm:$0xff] }
 0x3de   : > { %v2356_v7 = vpop.permute.xlu1 %2355  ;;  %2022 = vst.msk [vmem:[#allocation3 + $0x1d0] sm:$0xff] %vm2002_vm9, %v1945_v42  ;;  %2853 = vmatprep.mubr.f32.mxu0 %v2509_v18 }
 0x3df   : > { %2437 = vst.msk [vmem:[#allocation3 + $0x178] sm:$0xff] %vm2421_vm13, %v2356_v7  ;;  %2854 = vmatmul.mubr.f32.gmra.mxu0 %v2508_v41 }
 0x3e0   : > { %v5778_v51 = vpop.f32.mrf.mxu1 }
 0x3e1   : > { %v1334_v20 = vpop.permute.xlu0 %1333 }
 0x3e2   : > { %v2138_v60 = vpop.permute.xlu1 %2137  ;;  %v2498_v16 = vld [vmem:[#allocation3 + $0x160] sm:$0xff]  ;;  %1431 = vst.msk [vmem:[#allocation3 + $0x1e0] sm:$0xff] %vm1389_vm5, %v1334_v20  ;;  %v2902_v48 = vpop.f32.mrf.mxu1 }
 0x3e3   : > { %1432 = vst.msk [vmem:[#allocation3 + $0x1e8] sm:$0xff] %vm1391_vm6, %v1334_v20  ;;  %3793 = vmatprep.mubr.msk.f32.mxu1 %vm2598_vm14, %v2498_v16 }
 0x3e4   : > { %2235 = vst.msk [vmem:[#allocation3 + $0x1d0] sm:$0xff] %vm2195_vm10, %v2138_v60 }
 0x3e5   : > { %2236 = vst.msk [vmem:[#allocation3 + $0x1d8] sm:$0xff] %vm2197_vm11, %v2138_v60  ;;  %v1560_v62 = vpop.permute.xlu0 %1559 }
 0x3e6   : > { %v1753_v34 = vpop.permute.xlu1 %1752  ;;  %v2501_v49 = vld [vmem:[#allocation3 + $0x178] sm:$0xff]  ;;  %1636 = vst.msk [vmem:[#allocation3 + $0x1e8] sm:$0xff] %vm1615_vm7, %v1560_v62 }
 0x3e7   : > { %3794 = vmatmul.mubr.msk.f32.gmra.mxu1 %vm2598_vm14, %v2501_v49  ;;  %1829 = vst.msk [vmem:[#allocation3 + $0x1e8] sm:$0xff] %vm1808_vm8, %v1753_v34 }
 0x3e9   : > { %v2358_v37 = vpop.permute.xlu0 %2357  ;;  %v2514_v27 = vld [vmem:[#allocation3 + $0x1e0] sm:$0xff] }
 0x3ea   : > { %v1947_v1 = vpop.permute.xlu1 %1946  ;;  %2438 = vst.msk [vmem:[#allocation3 + $0x190] sm:$0xff] %vm2421_vm13, %v2358_v37 }
 0x3eb   : > { %v2512_v2 = vld [vmem:[#allocation3 + $0x1d0] sm:$0xff]  ;;  %2023 = vst.msk [vmem:[#allocation3 + $0x1e8] sm:$0xff] %vm2002_vm9, %v1947_v1  ;;  %v5790_v6 = vpop.f32.mrf.mxu0 }
 0x3ec   : > { %2858 = vmatprep.mubr.f32.mxu0 %v2512_v2 }
 0x3ed   : > { %2859 = vmatmul.mubr.f32.gmra.mxu0 %v2511_v4  ;;  %v2360_v8 = vpop.permute.xlu0 %2359  ;;  %v2802_v9 = vpop.f32.mrf.mxu0 }
 0x3ee   : > { %v1336_v24 = vpop.permute.xlu1 %1335  ;;  %2439 = vst.msk [vmem:[#allocation3 + $0x1a8] sm:$0xff] %vm2421_vm13, %v2360_v8 }
 0x3ef   : > { %1433 = vst.msk [vmem:[#allocation3 + $0x1f8] sm:$0xff] %vm1389_vm5, %v1336_v24 }
 0x3f0   : > { %1434 = vst.msk [vmem:[#allocation3 + $0x200] sm:$0xff] %vm1391_vm6, %v1336_v24 }
 0x3f1   : > { %v2140_v10 = vpop.permute.xlu0 %2139  ;;  %v2504_v57 = vld [vmem:[#allocation3 + $0x190] sm:$0xff] }
 0x3f2   : > { %v1562_v55 = vpop.permute.xlu1 %1561  ;;  %2237 = vst.msk [vmem:[#allocation3 + $0x1e8] sm:$0xff] %vm2195_vm10, %v2140_v10  ;;  %3796 = vmatprep.mubr.msk.f32.mxu1 %vm2598_vm14, %v2504_v57 }
 0x3f3   : > { %2238 = vst.msk [vmem:[#allocation3 + $0x1f0] sm:$0xff] %vm2197_vm11, %v2140_v10 }
 0x3f4   : > { %1637 = vst.msk [vmem:[#allocation3 + $0x200] sm:$0xff] %vm1615_vm7, %v1562_v55 }
 0x3f5   : > { %v1755_v12 = vpop.permute.xlu0 %1754  ;;  %v2507_v13 = vld [vmem:[#allocation3 + $0x1a8] sm:$0xff] }
 0x3f6   : > { %v2362_v38 = vpop.permute.xlu1 %2361  ;;  %1830 = vst.msk [vmem:[#allocation3 + $0x200] sm:$0xff] %vm1808_vm8, %v1755_v12  ;;  %3797 = vmatmul.mubr.msk.f32.gmra.mxu1 %vm2598_vm14, %v2507_v13  ;;  %v2517_v15 = vld [vmem:[#allocation3 + $0x1f8] sm:$0xff] }
 0x3f7   : > { %2440 = vst.msk [vmem:[#allocation3 + $0x1c0] sm:$0xff] %vm2421_vm13, %v2362_v38  ;;  %v5802_v40 = vpop.f32.mrf.mxu1 }
 0x3f9   : > { %v1949_v53 = vpop.permute.xlu0 %1948  ;;  %v2515_v31 = vld [vmem:[#allocation3 + $0x1e8] sm:$0xff]  ;;  %v2907_v28 = vpop.f32.mrf.mxu1 }
 0x3fa   : > { %v2364_v47 = vpop.permute.xlu1 %2363  ;;  %2024 = vst.msk [vmem:[#allocation3 + $0x200] sm:$0xff] %vm2002_vm9, %v1949_v53  ;;  %2863 = vmatprep.mubr.f32.mxu0 %v2515_v31 }
 0x3fb   : > { %2441 = vst.msk [vmem:[#allocation3 + $0x1d8] sm:$0xff] %vm2421_vm13, %v2364_v47  ;;  %2864 = vmatmul.mubr.f32.gmra.mxu0 %v2514_v27 }
 0x3fd   : > { %v1338_v59 = vpop.permute.xlu0 %1337 }
 0x3fe   : > { %v2142_v58 = vpop.permute.xlu1 %2141  ;;  %v2510_v43 = vld [vmem:[#allocation3 + $0x1c0] sm:$0xff]  ;;  %1435 = vst.msk [vmem:[#allocation3 + $0x210] sm:$0xff] %vm1389_vm5, %v1338_v59 }
 0x3ff   : > { %1436 = vst.msk [vmem:[#allocation3 + $0x218] sm:$0xff] %vm1391_vm6, %v1338_v59  ;;  %3799 = vmatprep.mubr.msk.f32.mxu1 %vm2598_vm14, %v2510_v43 }
 0x400   : > { %2239 = vst.msk [vmem:[#allocation3 + $0x200] sm:$0xff] %vm2195_vm10, %v2142_v58  ;;  %v5811_v29 = vpop.f32.mrf.mxu0 }
 0x401   : > { %2240 = vst.msk [vmem:[#allocation3 + $0x208] sm:$0xff] %vm2197_vm11, %v2142_v58  ;;  %v1564_v17 = vpop.permute.xlu0 %1563 }
 0x402   : > { %v1757_v52 = vpop.permute.xlu1 %1756  ;;  %v2513_v21 = vld [vmem:[#allocation3 + $0x1d8] sm:$0xff]  ;;  %1638 = vst.msk [vmem:[#allocation3 + $0x218] sm:$0xff] %vm1615_vm7, %v1564_v17  ;;  %v2807_v23 = vpop.f32.mrf.mxu0 }
 0x403   : > { %3800 = vmatmul.mubr.msk.f32.gmra.mxu1 %vm2598_vm14, %v2513_v21  ;;  %1831 = vst.msk [vmem:[#allocation3 + $0x218] sm:$0xff] %vm1808_vm8, %v1757_v52  ;;  %v5863_v23 = vld [vmem:[%s6039_s4] ss:$0 sm:$0xff] }
 0x405   : > { %v2366_v63 = vpop.permute.xlu0 %2365  ;;  %v2520_v41 = vld [vmem:[#allocation3 + $0x210] sm:$0xff] }
 0x406   : > { %v1951_v3 = vpop.permute.xlu1 %1950  ;;  %2442 = vst.msk [vmem:[#allocation3 + $0x1f0] sm:$0xff] %vm2421_vm13, %v2366_v63 }
 0x407   : > { %v2518_v33 = vld [vmem:[#allocation3 + $0x200] sm:$0xff]  ;;  %2025 = vst.msk [vmem:[#allocation3 + $0x218] sm:$0xff] %vm2002_vm9, %v1951_v3  ;;  %v2766_v3 = vadd.f32 %v5863_v23, %v5636_v54 }
 0x408   : > { %2868 = vmatprep.mubr.f32.mxu0 %v2518_v33 }
 0x409   : > { %2869 = vmatmul.mubr.f32.gmra.mxu0 %v2517_v15  ;;  %v2368_v30 = vpop.permute.xlu0 %2367 }
 0x40a   : > { %v1340_v22 = vpop.permute.xlu1 %1339  ;;  %2443 = vst.msk [vmem:[#allocation3 + $0x208] sm:$0xff] %vm2421_vm13, %v2368_v30  ;;  %v2771_v30 = vadd.f32 %v5863_v23, %v5653_v50 }
 0x40b   : > { %1437 = vst.msk [vmem:[#allocation3 + $0x228] sm:$0xff] %vm1389_vm5, %v1340_v22 }
 0x40c   : > { %1438 = vst.msk [vmem:[#allocation3 + $0x230] sm:$0xff] %vm1391_vm6, %v1340_v22  ;;  %v5821_v36 = vpop.f32.mrf.mxu1 }
 0x40d   : > { %v2144_v39 = vpop.permute.xlu0 %2143  ;;  %v2516_v46 = vld [vmem:[#allocation3 + $0x1f0] sm:$0xff] }
 0x40e   : > { %v1566_v35 = vpop.permute.xlu1 %1565  ;;  %2241 = vst.msk [vmem:[#allocation3 + $0x218] sm:$0xff] %vm2195_vm10, %v2144_v39  ;;  %v2912_v5 = vpop.f32.mrf.mxu1  ;;  %3802 = vmatprep.mubr.msk.f32.mxu1 %vm2598_vm14, %v2516_v46 }
 0x40f   : > { %2242 = vst.msk [vmem:[#allocation3 + $0x220] sm:$0xff] %vm2197_vm11, %v2144_v39  ;;  %v2776_v5 = vadd.f32 %v5863_v23, %v5666_v56 }
 0x410   : > { %1639 = vst.msk [vmem:[#allocation3 + $0x230] sm:$0xff] %vm1615_vm7, %v1566_v35 }
 0x411   : > { %v1759_v26 = vpop.permute.xlu0 %1758  ;;  %v2519_v45 = vld [vmem:[#allocation3 + $0x208] sm:$0xff] }
 0x412   : > { %v2146_v25 = vpop.permute.xlu1 %2145  ;;  %1832 = vst.msk [vmem:[#allocation3 + $0x230] sm:$0xff] %vm1808_vm8, %v1759_v26  ;;  %3803 = vmatmul.mubr.msk.f32.gmra.mxu1 %vm2598_vm14, %v2519_v45  ;;  %v2523_v1 = vld [vmem:[#allocation3 + $0x228] sm:$0xff]  ;;  %v2781_v45 = vadd.f32 %v5863_v23, %v5689_v11 }
 0x413   : > { %2244 = vst.msk [vmem:[#allocation3 + $0x238] sm:$0xff] %vm2197_vm11, %v2146_v25 }
 0x415   : > { %v2370_v42 = vpop.permute.xlu0 %2369  ;;  %v2521_v18 = vld [vmem:[#allocation3 + $0x218] sm:$0xff] }
 0x416   : > { %v1953_v7 = vpop.permute.xlu1 %1952  ;;  %2444 = vst.msk [vmem:[#allocation3 + $0x220] sm:$0xff] %vm2421_vm13, %v2370_v42  ;;  %2873 = vmatprep.mubr.f32.mxu0 %v2521_v18  ;;  %v2786_v18 = vadd.f32 %v5863_v23, %v5717_v32 }
 0x417   : > { %2026 = vst.msk [vmem:[#allocation3 + $0x230] sm:$0xff] %vm2002_vm9, %v1953_v7  ;;  %2874 = vmatmul.mubr.f32.gmra.mxu0 %v2520_v41  ;;  %v5833_v20 = vpop.f32.mrf.mxu0 }
 0x418   : > { %2243 = vst.msk [vmem:[#allocation3 + $0x230] sm:$0xff] %vm2195_vm10, %v2146_v25 }
 0x419   : > { %v2372_v60 = vpop.permute.xlu0 %2371  ;;  %v2812_v48 = vpop.f32.mrf.mxu0 }
 0x41a   : > { %v2374_v16 = vpop.permute.xlu1 %2373  ;;  %2445 = vst.msk [vmem:[#allocation3 + $0x238] sm:$0xff] %vm2421_vm13, %v2372_v60 }
 0x41b   : > { %2446 = vst.msk [vmem:[#allocation3 + $0x250] sm:$0xff] %vm2421_vm13, %v2374_v16  ;;  %v2791_v16 = vadd.f32 %v5863_v23, %v5748_v0 }
 0x41d   : > { %v2376_v62 = vpop.permute.xlu0 %2375  ;;  %v2522_v49 = vld [vmem:[#allocation3 + $0x220] sm:$0xff] }
 0x41e   : > { %v2378_v34 = vpop.permute.xlu1 %2377  ;;  %2447 = vst.msk [vmem:[#allocation3 + $0x268] sm:$0xff] %vm2421_vm13, %v2376_v62  ;;  %3805 = vmatprep.mubr.msk.f32.mxu1 %vm2598_vm14, %v2522_v49 }
 0x41f   : > { %2448 = vst.msk [vmem:[#allocation3 + $0x280] sm:$0xff] %vm2421_vm13, %v2378_v34  ;;  %v2524_v37 = vld [vmem:[#allocation3 + $0x230] sm:$0xff]  ;;  %v2796_v34 = vadd.f32 %v5863_v23, %v5767_v44 }
 0x420   : > { %2878 = vmatprep.mubr.f32.mxu0 %v2524_v37 }
 0x421   : > { %2879 = vmatmul.mubr.f32.gmra.mxu0 %v2523_v1  ;;  %v2380_v2 = vpop.permute.xlu0 %2379  ;;  %v2525_v8 = vld [vmem:[#allocation3 + $0x238] sm:$0xff]  ;;  %v2801_v1 = vadd.f32 %v5863_v23, %v5790_v6 }
 0x422   : > { %v2382_v4 = vpop.permute.xlu1 %2381  ;;  %v2528_v24 = vld [vmem:[#allocation3 + $0x250] sm:$0xff]  ;;  %2449 = vst.msk [vmem:[#allocation3 + $0x298] sm:$0xff] %vm2421_vm13, %v2380_v2  ;;  %3806 = vmatmul.mubr.msk.f32.gmra.mxu1 %vm2598_vm14, %v2525_v8  ;;  %v2806_v8 = vadd.f32 %v5863_v23, %v5811_v29 }
 0x423   : > { %2450 = vst.msk [vmem:[#allocation3 + $0x2b0] sm:$0xff] %vm2421_vm13, %v2382_v4  ;;  %3808 = vmatprep.mubr.msk.f32.mxu1 %vm2598_vm14, %v2528_v24  ;;  %v5844_v9 = vpop.f32.mrf.mxu1 }
 0x425   : > { %v2384_v10 = vpop.permute.xlu0 %2383  ;;  %v2531_v55 = vld [vmem:[#allocation3 + $0x268] sm:$0xff]  ;;  %v2917_v12 = vpop.f32.mrf.mxu1 }
 0x426   : > { %v2534_v57 = vld [vmem:[#allocation3 + $0x280] sm:$0xff]  ;;  %2451 = vst.msk [vmem:[#allocation3 + $0x2c8] sm:$0xff] %vm2421_vm13, %v2384_v10  ;;  %3809 = vmatmul.mubr.msk.f32.gmra.mxu1 %vm2598_vm14, %v2531_v55  ;;  %v2386_v38 = vpop.permute.xlu1 %2385  ;;  %v2811_v55 = vadd.f32 %v5863_v23, %v5833_v20 }
 0x427   : > { %3811 = vmatprep.mubr.msk.f32.mxu1 %vm2598_vm14, %v2534_v57  ;;  %2452 = vst.msk [vmem:[#allocation3 + $0x2e0] sm:$0xff] %vm2421_vm13, %v2386_v38 }
 0x429   : > { %v2388_v13 = vpop.permute.xlu0 %2387  ;;  %v2537_v53 = vld [vmem:[#allocation3 + $0x298] sm:$0xff] }
 0x42a   : > { %v2540_v47 = vld [vmem:[#allocation3 + $0x2b0] sm:$0xff]  ;;  %2453 = vst.msk [vmem:[#allocation3 + $0x2f8] sm:$0xff] %vm2421_vm13, %v2388_v13  ;;  %3812 = vmatmul.mubr.msk.f32.gmra.mxu1 %vm2598_vm14, %v2537_v53 }
 0x42b   : > { %3814 = vmatprep.mubr.msk.f32.mxu1 %vm2598_vm14, %v2540_v47 }
 0x42c   : > { %v5853_v31 = vpop.f32.mrf.mxu0 }
 0x42d   : > { %v2543_v28 = vld [vmem:[#allocation3 + $0x2c8] sm:$0xff]  ;;  %v2816_v38 = vadd.f32 %v5863_v23, %v5853_v31 }
 0x42e   : > { %v2817_v27 = vpop.f32.mrf.mxu0  ;;  %3815 = vmatmul.mubr.msk.f32.gmra.mxu1 %vm2598_vm14, %v2543_v28  ;;  %v2546_v59 = vld [vmem:[#allocation3 + $0x2e0] sm:$0xff] }
 0x42f   : > { %3817 = vmatprep.mubr.msk.f32.mxu1 %vm2598_vm14, %v2546_v59 }
 0x431   : > { %v2549_v58 = vld [vmem:[#allocation3 + $0x2f8] sm:$0xff] }
 0x432   : > { %3818 = vmatmul.mubr.msk.f32.gmra.mxu1 %vm2598_vm14, %v2549_v58 }
 0x437   : > { %v5858_v43 = vpop.f32.mrf.mxu1 }
 0x439   : > { %v2922_v17 = vpop.f32.mrf.mxu1 }
 0x43d   : > { %v2820_v52 = vpop.f32.mrf.mxu0 }
 0x43e   : > { %v2821_v47 = vadd.f32 %v5863_v23, %v2820_v52 }
 0x43f   : > { %v2822_v21 = vpop.f32.mrf.mxu0 }
 0x446   : > { %v3774_v63 = vpop.f32.mrf.mxu1 }
 0x447   : > { %v2996_v39 = vadd.f32 %v3774_v63, %v2771_v30 }
 0x448   : > { %v2990_v33 = vpop.f32.mrf.mxu1 }
 0x449   : > { %v2991_v15 = vadd.f32 %v2990_v33, %v2766_v3 }
 0x44b   : > { %3149 = vxpose.xlu1.b32.start [1/16] %v2991_v15, 128  ;;  %v2825_v22 = vpop.f32.mrf.mxu0 }
 0x44c   : > { %v2826_v20 = vadd.f32 %v5863_v23, %v2825_v22 }
 0x44d   : > { %v2827_v35 = vpop.f32.mrf.mxu0 }
 0x44f   : > { %3150 = vxpose.xlu1.b32.cont [2/16] %v2996_v39, 128 }
 0x453   : > { %v3777_v46 = vpop.f32.mrf.mxu1 }
 0x454   : > { %v3006_v42 = vadd.f32 %v3777_v46, %v2781_v45 }
 0x455   : > { %v3000_v26 = vpop.f32.mrf.mxu1 }
 0x456   : > { %v3001_v25 = vadd.f32 %v3000_v26, %v2776_v5 }
 0x458   : > { %3151 = vxpose.xlu1.b32.cont [3/16] %v3001_v25, 128 }
 0x459   : > { %v2830_v54 = vpop.f32.mrf.mxu0 }
 0x45a   : > { %v2831_v21 = vadd.f32 %v5863_v23, %v2830_v54 }
 0x45b   : > { %v2832_v7 = vpop.f32.mrf.mxu0 }
 0x45c   : > { %3152 = vxpose.xlu1.b32.cont [4/16] %v3006_v42, 128 }
 0x462   : > { %v3780_v50 = vpop.f32.mrf.mxu1 }
 0x463   : > { %v3016_v48 = vadd.f32 %v3780_v50, %v2791_v16 }
 0x464   : > { %v3010_v41 = vpop.f32.mrf.mxu1 }
 0x465   : > { %v3011_v60 = vadd.f32 %v3010_v41, %v2786_v18 }
 0x467   : > { %3153 = vxpose.xlu1.b32.cont [5/16] %v3011_v60, 128  ;;  %v2835_v56 = vpop.f32.mrf.mxu0 }
 0x468   : > { %v2836_v52 = vadd.f32 %v5863_v23, %v2835_v56 }
 0x469   : > { %v2837_v62 = vpop.f32.mrf.mxu0 }
 0x46b   : > { %3154 = vxpose.xlu1.b32.cont [6/16] %v3016_v48, 128 }
 0x46f   : > { %v3783_v11 = vpop.f32.mrf.mxu1 }
 0x470   : > { %v3026_v2 = vadd.f32 %v3783_v11, %v2801_v1 }
 0x471   : > { %v3020_v49 = vpop.f32.mrf.mxu1 }
 0x472   : > { %v3021_v37 = vadd.f32 %v3020_v49, %v2796_v34 }
 0x474   : > { %3155 = vxpose.xlu1.b32.cont [7/16] %v3021_v37, 128 }
 0x475   : > { %v2840_v32 = vpop.f32.mrf.mxu0 }
 0x476   : > { %v2841_v39 = vadd.f32 %v5863_v23, %v2840_v32 }
 0x477   : > { %v2842_v4 = vpop.f32.mrf.mxu0 }
 0x478   : > { %3156 = vxpose.xlu1.b32.cont [8/16] %v3026_v2, 128 }
 0x47e   : > { %v3786_v0 = vpop.f32.mrf.mxu1 }
 0x47f   : > { %v3036_v57 = vadd.f32 %v3786_v0, %v2811_v55 }
 0x480   : > { %v3030_v24 = vpop.f32.mrf.mxu1 }
 0x481   : > { %v3031_v10 = vadd.f32 %v3030_v24, %v2806_v8 }
 0x483   : > { %v2845_v44 = vpop.f32.mrf.mxu0  ;;  %3157 = vxpose.xlu1.b32.cont [9/16] %v3031_v10, 128 }
 0x484   : > { %v2846_v26 = vadd.f32 %v5863_v23, %v2845_v44 }
 0x485   : > { %v2847_v12 = vpop.f32.mrf.mxu0 }
 0x487   : > { %3158 = vxpose.xlu1.b32.cont [10/16] %v3036_v57, 128 }
 0x48b   : > { %v3789_v6 = vpop.f32.mrf.mxu1 }
 0x48c   : > { %v3046_v29 = vadd.f32 %v3789_v6, %v2821_v47 }
 0x48d   : > { %v3040_v13 = vpop.f32.mrf.mxu1 }
 0x48e   : > { %v3041_v53 = vadd.f32 %v3040_v13, %v2816_v38 }
 0x490   : > { %3159 = vxpose.xlu1.b32.cont [11/16] %v3041_v53, 128  ;;  %v2886_v53 = vadd.f32 %v5863_v23, %v5706_v61  ;;  %v2901_v61 = vadd.f32 %v5863_v23, %v5778_v51  ;;  %v2916_v51 = vadd.f32 %v5863_v23, %v5844_v9 }
 0x491   : > { %v2850_v28 = vpop.f32.mrf.mxu0 }
 0x492   : > { %v2851_v54 = vadd.f32 %v5863_v23, %v2850_v28 }
 0x493   : > { %v2852_v27 = vpop.f32.mrf.mxu0 }
 0x494   : > { %3160 = vxpose.xlu1.b32.cont [12/16] %v3046_v29, 128  ;;  %v2891_v29 = vadd.f32 %v5863_v23, %v5734_v14  ;;  %v2906_v14 = vadd.f32 %v5863_v23, %v5802_v40  ;;  %v2921_v40 = vadd.f32 %v5863_v23, %v5858_v43 }
 0x49a   : > { %v3792_v59 = vpop.f32.mrf.mxu1 }
 0x49b   : > { %v3056_v3 = vadd.f32 %v3792_v59, %v2831_v21 }
 0x49c   : > { %v3050_v58 = vpop.f32.mrf.mxu1 }
 0x49d   : > { %v3051_v17 = vadd.f32 %v3050_v58, %v2826_v20  ;;  %v2896_v58 = vadd.f32 %v5863_v23, %v5760_v19  ;;  %v2911_v19 = vadd.f32 %v5863_v23, %v5821_v36 }
 0x49f   : > { %v2855_v63 = vpop.f32.mrf.mxu0  ;;  %3161 = vxpose.xlu1.b32.cont [13/16] %v3051_v17, 128 }
 0x4a0   : > { %v2856_v41 = vadd.f32 %v5863_v23, %v2855_v63 }
 0x4a1   : > { %v2857_v31 = vpop.f32.mrf.mxu0 }
 0x4a3   : > { %3162 = vxpose.xlu1.b32.cont [14/16] %v3056_v3, 128 }
 0x4a7   : > { %v3795_v33 = vpop.f32.mrf.mxu1 }
 0x4a8   : > { %v3066_v46 = vadd.f32 %v3795_v33, %v2841_v39 }
 0x4a9   : > { %v3060_v15 = vpop.f32.mrf.mxu1 }
 0x4aa   : > { %v3061_v30 = vadd.f32 %v3060_v15, %v2836_v52 }
 0x4ac   : > { %3163 = vxpose.xlu1.b32.cont [15/16] %v3061_v30, 128 }
 0x4ad   : > { %v2860_v35 = vpop.f32.mrf.mxu0 }
 0x4ae   : > { %v2861_v56 = vadd.f32 %v5863_v23, %v2860_v35 }
 0x4af   : > { %v2862_v22 = vpop.f32.mrf.mxu0 }
 0x4b0   : > { %3164 = vxpose.xlu1.b32.end [16/16] %v3066_v46, 128 }
 0x4b6   : > { %v3798_v5 = vpop.f32.mrf.mxu1 }
 0x4b7   : > { %v3076_v7 = vadd.f32 %v3798_v5, %v2851_v54 }
 0x4b8   : > { %v3070_v25 = vpop.f32.mrf.mxu1 }
 0x4b9   : > { %v3071_v45 = vadd.f32 %v3070_v25, %v2846_v26 }
 0x4bb   : > { %v2865_v42 = vpop.f32.mrf.mxu0  ;;  %3181 = vxpose.xlu0.b32.start [1/16] %v3071_v45, 128 }
 0x4bc   : > { %v2866_v49 = vadd.f32 %v5863_v23, %v2865_v42 }
 0x4bd   : > { %v2867_v50 = vpop.f32.mrf.mxu0 }
 0x4bf   : > { %3182 = vxpose.xlu0.b32.cont [2/16] %v3076_v7, 128 }
 0x4c3   : > { %v3801_v18 = vpop.f32.mrf.mxu1 }
 0x4c4   : > { %v3086_v62 = vadd.f32 %v3801_v18, %v2861_v56 }
 0x4c5   : > { %v3080_v60 = vpop.f32.mrf.mxu1 }
 0x4c6   : > { %v3081_v16 = vadd.f32 %v3080_v60, %v2856_v41 }
 0x4c8   : > { %3183 = vxpose.xlu0.b32.cont [3/16] %v3081_v16, 128 }
 0x4c9   : > { %v2870_v48 = vpop.f32.mrf.mxu0 }
 0x4ca   : > { %v2871_v32 = vadd.f32 %v5863_v23, %v2870_v48 }
 0x4cb   : > { %v2872_v11 = vpop.f32.mrf.mxu0 }
 0x4cc   : > { %3184 = vxpose.xlu0.b32.cont [4/16] %v3086_v62, 128 }
 0x4d2   : > { %v3804_v34 = vpop.f32.mrf.mxu1 }
 0x4d3   : > { %v3096_v4 = vadd.f32 %v3804_v34, %v2871_v32 }
 0x4d4   : > { %v3090_v37 = vpop.f32.mrf.mxu1 }
 0x4d5   : > { %v3091_v1 = vadd.f32 %v3090_v37, %v2866_v49 }
 0x4d7   : > { %v2875_v2 = vpop.f32.mrf.mxu0  ;;  %3185 = vxpose.xlu0.b32.cont [5/16] %v3091_v1, 128 }
 0x4d8   : > { %v2876_v55 = vadd.f32 %v5863_v23, %v2875_v2 }
 0x4d9   : > { %v2877_v0 = vpop.f32.mrf.mxu0 }
 0x4db   : > { %3186 = vxpose.xlu0.b32.cont [6/16] %v3096_v4, 128 }
 0x4e1   : > { %v2880_v8 = vpop.f32.mrf.mxu0 }
 0x4e2   : > { %v3807_v10 = vpop.f32.mrf.mxu1  ;;  %v2881_v57 = vadd.f32 %v5863_v23, %v2880_v8 }
 0x4e3   : > { %v2882_v24 = vpop.f32.mrf.mxu0 }
 0x4e4   : > { %v3100_v44 = vpop.f32.mrf.mxu1  ;;  %v3106_v38 = vadd.f32 %v3807_v10, %v2881_v57 }
 0x4e5   : > { %v3101_v12 = vadd.f32 %v3100_v44, %v2876_v55 }
 0x4e6   : > { %v3810_v6 = vpop.f32.mrf.mxu1 }
 0x4e7   : > { %3187 = vxpose.xlu0.b32.cont [7/16] %v3101_v12, 128  ;;  %v3116_v59 = vadd.f32 %v3810_v6, %v2891_v29  ;;  %v3365_v29 = vld [vmem:[%s4595_s14] sm:$0xff] }
 0x4e8   : > { %v3110_v13 = vpop.f32.mrf.mxu1 }
 0x4e9   : > { %v3111_v47 = vadd.f32 %v3110_v13, %v2886_v53 }
 0x4ea   : > { %v3813_v28 = vpop.f32.mrf.mxu1 }
 0x4eb   : > { %3188 = vxpose.xlu0.b32.cont [8/16] %v3106_v38, 128  ;;  %v3126_v31 = vadd.f32 %v3813_v28, %v2901_v61  ;;  %v3367_v61 = vld [vmem:[%s4595_s14 + $0x10] sm:$0xff] }
 0x4ec   : > { %v3120_v20 = vpop.f32.mrf.mxu1 }
 0x4ed   : > { %v3121_v21 = vadd.f32 %v3120_v20, %v2896_v58 }
 0x4ee   : > { %v3816_v63 = vpop.f32.mrf.mxu1 }
 0x4ef   : > { %3189 = vxpose.xlu0.b32.cont [9/16] %v3111_v47, 128  ;;  %v3136_v35 = vadd.f32 %v3816_v63, %v2911_v19 }
 0x4f0   : > { %v3165_v27 = vpop.trf.xlu1  ;;  %v3130_v33 = vpop.f32.mrf.mxu1 }
 0x4f1   : > { %v3131_v15 = vadd.f32 %v3130_v33, %v2906_v14  ;;  %v3676_v25 = vmul.f32 -1.442695, %v3165_v27 }
 0x4f2   : > { %v3819_v30 = vpop.f32.mrf.mxu1 }
 0x4f3   : > { %3190 = vxpose.xlu0.b32.cont [10/16] %v3116_v59, 128  ;;  %v3146_v36 = vadd.f32 %v3819_v30, %v2921_v40 }
 0x4f4   : > { %v3166_v17 = vpop.trf.xlu1  ;;  %v3140_v46 = vpop.f32.mrf.mxu1 }
 0x4f5   : > { %v3141_v26 = vadd.f32 %v3140_v46, %v2916_v51  ;;  %v3678_v42 = vmul.f32 -1.442695, %v3166_v17 }
 0x4f7   : > { %3191 = vxpose.xlu0.b32.cont [11/16] %v3121_v21, 128 }
 0x4f8   : > { %v3167_v3 = vpop.trf.xlu1 }
 0x4f9   : > { %v3680_v9 = vmul.f32 -1.442695, %v3167_v3 }
 0x4fb   : > { %3192 = vxpose.xlu0.b32.cont [12/16] %v3126_v31, 128 }
 0x4fc   : > { %v3168_v52 = vpop.trf.xlu1 }
 0x4fd   : > { %v3682_v60 = vmul.f32 -1.442695, %v3168_v52 }
 0x4ff   : > { %3193 = vxpose.xlu0.b32.cont [13/16] %v3131_v15, 128 }
 0x500   : > { %v3169_v39 = vpop.trf.xlu1 }
 0x501   : > { %v3684_v5 = vmul.f32 -1.442695, %v3169_v39  ;;  %v3369_v39 = vld [vmem:[%s4595_s14 + $0x20] sm:$0xff] }
 0x503   : > { %3194 = vxpose.xlu0.b32.cont [14/16] %v3136_v35, 128  ;;  %3972 = vpow2.f32 %v3684_v5 }
 0x504   : > { %v3170_v22 = vpop.trf.xlu1  ;;  %3974 = vpow2.f32 %v3676_v25 }
 0x505   : > { %v3686_v45 = vmul.f32 -1.442695, %v3170_v22 }
 0x507   : > { %3195 = vxpose.xlu0.b32.cont [15/16] %v3141_v26, 128  ;;  %3976 = vpow2.f32 %v3686_v45  ;;  %v3371_v45 = vld [vmem:[%s4595_s14 + $0x30] sm:$0xff] }
 0x508   : > { %v3171_v54 = vpop.trf.xlu1  ;;  %3978 = vpow2.f32 %v3678_v42 }
 0x509   : > { %v3688_v7 = vmul.f32 -1.442695, %v3171_v54 }
 0x50b   : > { %3196 = vxpose.xlu0.b32.end [16/16] %v3146_v36, 128  ;;  %3980 = vpow2.f32 %v3688_v7 }
 0x50c   : > { %v3172_v50 = vpop.trf.xlu1  ;;  %3982 = vpow2.f32 %v3680_v9 }
 0x50d   : > { %v3690_v18 = vmul.f32 -1.442695, %v3172_v50 }
 0x50f   : > { %3984 = vpow2.f32 %v3690_v18 }
 0x510   : > { %v3173_v41 = vpop.trf.xlu1  ;;  %v3973_v23 = vpop.eup %3972  ;;  %3986 = vpow2.f32 %v3682_v60 }
 0x511   : > { %v3975_v16 = vpop.eup %3974  ;;  %v3692_v56 = vmul.f32 -1.442695, %v3173_v41  ;;  %v3293_v11 = vadd.f32 1.0, %v3973_v23 }
 0x512   : > { %v3285_v34 = vadd.f32 1.0, %v3975_v16 }
 0x513   : > { %3988 = vpow2.f32 %v3692_v56 }
 0x514   : > { %v3174_v43 = vpop.trf.xlu1  ;;  %v3977_v62 = vpop.eup %3976  ;;  %3990 = vrcp.f32 %v3293_v11 }
 0x515   : > { %v3979_v49 = vpop.eup %3978  ;;  %v3694_v37 = vmul.f32 -1.442695, %v3174_v43  ;;  %v3295_v1 = vadd.f32 1.0, %v3977_v62  ;;  %3992 = vrcp.f32 %v3285_v34 }
 0x516   : > { %v3287_v4 = vadd.f32 1.0, %v3979_v49 }
 0x517   : > { %3994 = vpow2.f32 %v3694_v37 }
 0x518   : > { %v3175_v48 = vpop.trf.xlu1  ;;  %v3981_v2 = vpop.eup %3980  ;;  %3996 = vrcp.f32 %v3295_v1 }
 0x519   : > { %v3983_v0 = vpop.eup %3982  ;;  %v3696_v8 = vmul.f32 -1.442695, %v3175_v48  ;;  %v3297_v24 = vadd.f32 1.0, %v3981_v2 }
 0x51a   : > { %v3289_v44 = vadd.f32 1.0, %v3983_v0 }
 0x51c   : > { %v3176_v32 = vpop.trf.xlu1  ;;  %v3985_v55 = vpop.eup %3984 }
 0x51d   : > { %v3698_v57 = vmul.f32 -1.442695, %v3176_v32  ;;  %v3987_v12 = vpop.eup %3986  ;;  %v3299_v6 = vadd.f32 1.0, %v3985_v55 }
 0x51e   : > { %v3291_v13 = vadd.f32 1.0, %v3987_v12 }
 0x520   : > { %v3177_v10 = vpop.trf.xlu1  ;;  %v3989_v47 = vpop.eup %3988 }
 0x521   : > { %3998 = vtanh.f32 %v3177_v10  ;;  %v3991_v28 = vpop.eup %3990  ;;  %v3301_v17 = vadd.f32 1.0, %v3989_v47 }
 0x522   : > { %4000 = vrcp.f32 %v3287_v4  ;;  %v3993_v27 = vpop.eup %3992  ;;  %v3373_v21 = vmul.f32 %v3991_v28, %v3365_v29 }
 0x523   : > { %4002 = vpow2.f32 %v3696_v8 }
 0x524   : > { %4004 = vrcp.f32 %v3297_v24  ;;  %v3178_v38 = vpop.trf.xlu1  ;;  %v3995_v59 = vpop.eup %3994 }
 0x525   : > { %4006 = vtanh.f32 %v3178_v38  ;;  %v3997_v58 = vpop.eup %3996  ;;  %v3303_v52 = vadd.f32 1.0, %v3995_v59 }
 0x526   : > { %4008 = vrcp.f32 %v3289_v44  ;;  %v3375_v30 = vmul.f32 %v3997_v58, %v3367_v61 }
 0x527   : > { %4010 = vpow2.f32 %v3698_v57 }
 0x528   : > { %4012 = vrcp.f32 %v3299_v6  ;;  %v3179_v53 = vpop.trf.xlu1 }
 0x529   : > { %4014 = vtanh.f32 %v3179_v53 }
 0x52a   : > { %4016 = vrcp.f32 %v3291_v13 }
 0x52c   : > { %v3180_v20 = vpop.trf.xlu1 }
 0x52d   : > { %4018 = vtanh.f32 %v3180_v20 }
 0x52e   : > { %v3999_v63 = vpop.eup %3998  ;;  %4020 = vrcp.f32 %v3301_v17 }
 0x52f   : > { %v4001_v3 = vpop.eup %4000  ;;  %v3381_v31 = vmul.f32 %v3999_v63, %v3993_v27 }
 0x530   : > { %v4003_v33 = vpop.eup %4002 }
 0x531   : > { %v4005_v14 = vpop.eup %4004  ;;  %v3389_v15 = vadd.f32 %v3381_v31, %v3373_v21  ;;  %v3305_v5 = vadd.f32 1.0, %v4003_v33 }
 0x532   : > { %v4007_v19 = vpop.eup %4006  ;;  %v3377_v25 = vmul.f32 %v4005_v14, %v3369_v39 }
 0x533   : > { %v4009_v35 = vpop.eup %4008  ;;  %4022 = vtanh.f32 %v3389_v15  ;;  %3413 = vst [vmem:[%s5920_s20] sm:$0xff] %v3389_v15  ;;  %v3383_v46 = vmul.f32 %v4007_v19, %v4001_v3 }
 0x534   : > { %v4011_v51 = vpop.eup %4010  ;;  %4024 = vrcp.f32 %v3303_v52 }
 0x535   : > { %v4013_v22 = vpop.eup %4012  ;;  %v3391_v26 = vadd.f32 %v3383_v46, %v3375_v30  ;;  %v3307_v42 = vadd.f32 1.0, %v4011_v51 }
 0x536   : > { %v4015_v40 = vpop.eup %4014  ;;  %v3379_v50 = vmul.f32 %v4013_v22, %v3371_v45 }
 0x537   : > { %4026 = vtanh.f32 %v3391_v26  ;;  %3415 = vst [vmem:[%s5920_s20 + $0x10] sm:$0xff] %v3391_v26  ;;  %v3385_v54 = vmul.f32 %v4015_v40, %v4009_v35  ;;  %v4017_v36 = vpop.eup %4016 }
 0x538   : > { %4028 = vrcp.f32 %v3305_v5 }
 0x539   : > { %v3393_v7 = vadd.f32 %v3385_v54, %v3377_v25 }
 0x53a   : > { %v4019_v9 = vpop.eup %4018 }
 0x53b   : > { %4030 = vtanh.f32 %v3393_v7  ;;  %3417 = vst [vmem:[%s5920_s20 + $0x20] sm:$0xff] %v3393_v7  ;;  %v3387_v18 = vmul.f32 %v4019_v9, %v4017_v36  ;;  %v4021_v60 = vpop.eup %4020  ;;  %v3366_v36 = vld [vmem:[%s4595_s14 + $0x8] sm:$0xff] }
 0x53c   : > { %4032 = vrcp.f32 %v3307_v42 }
 0x53d   : > { %v3395_v41 = vadd.f32 %v3387_v18, %v3379_v50 }
 0x53f   : > { %4034 = vtanh.f32 %v3395_v41  ;;  %3419 = vst [vmem:[%s5920_s20 + $0x30] sm:$0xff] %v3395_v41 }
 0x540   : > { %v4023_v43 = vpop.eup %4022 }
 0x541   : > { %v3405_v23 = vmul.f32 %v4023_v43, %v4021_v60  ;;  %v4025_v16 = vpop.eup %4024 }
 0x543   : > { %3421 = vst [vmem:[%s5928_s27] sm:$0xff] %v3405_v23  ;;  %v3368_v23 = vld [vmem:[%s4595_s14 + $0x18] sm:$0xff] }
 0x544   : > { %v4027_v56 = vpop.eup %4026 }
 0x545   : > { %v3407_v48 = vmul.f32 %v4027_v56, %v4025_v16  ;;  %v4029_v62 = vpop.eup %4028 }
 0x547   : > { %3423 = vst [vmem:[%s5928_s27 + $0x10] sm:$0xff] %v3407_v48 }
 0x548   : > { %v4031_v11 = vpop.eup %4030 }
 0x549   : > { %v3409_v34 = vmul.f32 %v4031_v11, %v4029_v62  ;;  %v4033_v49 = vpop.eup %4032 }
 0x54b   : > { %3425 = vst [vmem:[%s5928_s27 + $0x20] sm:$0xff] %v3409_v34  ;;  %v3197_v1 = vpop.trf.xlu0 }
 0x54c   : > { %v4035_v37 = vpop.eup %4034  ;;  %v3677_v55 = vmul.f32 -1.442695, %v3197_v1  ;;  %v3370_v1 = vld [vmem:[%s4595_s14 + $0x28] sm:$0xff] }
 0x54d   : > { %v3411_v32 = vmul.f32 %v4035_v37, %v4033_v49 }
 0x54f   : > { %3427 = vst [vmem:[%s5928_s27 + $0x30] sm:$0xff] %v3411_v32  ;;  %v3198_v2 = vpop.trf.xlu0 }
 0x550   : > { %v3679_v12 = vmul.f32 -1.442695, %v3198_v2 }
 0x553   : > { %v3199_v4 = vpop.trf.xlu0 }
 0x554   : > { %v3681_v13 = vmul.f32 -1.442695, %v3199_v4 }
 0x557   : > { %v3200_v0 = vpop.trf.xlu0 }
 0x558   : > { %v3683_v28 = vmul.f32 -1.442695, %v3200_v0 }
 0x55b   : > { %v3201_v8 = vpop.trf.xlu0 }
 0x55c   : > { %v3685_v10 = vmul.f32 -1.442695, %v3201_v8 }
 0x55e   : > { %4036 = vpow2.f32 %v3685_v10 }
 0x55f   : > { %v3202_v24 = vpop.trf.xlu0  ;;  %4038 = vpow2.f32 %v3677_v55 }
 0x560   : > { %v3687_v57 = vmul.f32 -1.442695, %v3202_v24 }
 0x562   : > { %4040 = vpow2.f32 %v3687_v57 }
 0x563   : > { %v3203_v44 = vpop.trf.xlu0  ;;  %4042 = vpow2.f32 %v3679_v12 }
 0x564   : > { %v3689_v38 = vmul.f32 -1.442695, %v3203_v44  ;;  %v3372_v44 = vld [vmem:[%s4595_s14 + $0x38] sm:$0xff]  ;;  %s4215_s14 = sshll.u32 %s4333_s30, 4  ;;  %s4216_s14 = int_to_ptr.vmem [resolvable:$false] %s4215_s14 }
 0x565   : > { %s4217_s9 = scalar_lea.vmem %s4216_s14, 2048  ;;  %p4218_p10 = scmp.lt.s32.totalorder %s5950_s25, %s4216_s14 }
 0x566   : > { %4044 = vpow2.f32 %v3689_v38  ;;  %p4219_p9 = scmp.lt.s32.totalorder %s4217_s9, %s4211_s26 }
 0x567   : > { %v3204_v6 = vpop.trf.xlu0  ;;  %4046 = vpow2.f32 %v3681_v13 }
 0x568   : > { %v3691_v47 = vmul.f32 -1.442695, %v3204_v6  ;;  %p4220_p0 = por %p4219_p9, %p4218_p10 }
 0x56a   : > { %4048 = vpow2.f32 %v3691_v47  ;;  %p4221_p11 = pnand %p4220_p0, %p4214_p5 }
 0x56b   : > { %v3205_v53 = vpop.trf.xlu0  ;;  %v4037_v27 = vpop.eup %4036  ;;  %4050 = vpow2.f32 %v3683_v28 }
 0x56c   : > { %v4039_v20 = vpop.eup %4038  ;;  %v3693_v58 = vmul.f32 -1.442695, %v3205_v53  ;;  %v3294_v17 = vadd.f32 1.0, %v4037_v27 }
 0x56d   : > { %v3286_v63 = vadd.f32 1.0, %v4039_v20 }
 0x56e   : > { %4052 = vpow2.f32 %v3693_v58 }
 0x56f   : > { %v3206_v29 = vpop.trf.xlu0  ;;  %v4041_v21 = vpop.eup %4040  ;;  %4054 = vrcp.f32 %v3294_v17 }
 0x570   : > { %v4043_v3 = vpop.eup %4042  ;;  %v3695_v31 = vmul.f32 -1.442695, %v3206_v29  ;;  %v3296_v33 = vadd.f32 1.0, %v4041_v21  ;;  %4056 = vrcp.f32 %v3286_v63 }
 0x571   : > { %v3288_v52 = vadd.f32 1.0, %v4043_v3 }
 0x573   : > { %v3207_v59 = vpop.trf.xlu0  ;;  %v4045_v14 = vpop.eup %4044 }
 0x574   : > { %v4047_v30 = vpop.eup %4046  ;;  %v3697_v19 = vmul.f32 -1.442695, %v3207_v59  ;;  %v3298_v39 = vadd.f32 1.0, %v4045_v14 }
 0x575   : > { %v3290_v46 = vadd.f32 1.0, %v4047_v30 }
 0x577   : > { %v3208_v61 = vpop.trf.xlu0  ;;  %v4049_v35 = vpop.eup %4048 }
 0x578   : > { %v4051_v22 = vpop.eup %4050  ;;  %v3699_v5 = vmul.f32 -1.442695, %v3208_v61  ;;  %v3300_v26 = vadd.f32 1.0, %v4049_v35 }
 0x579   : > { %v3292_v25 = vadd.f32 1.0, %v4051_v22 }
 0x57b   : > { %v3209_v15 = vpop.trf.xlu0  ;;  %v4053_v45 = vpop.eup %4052 }
 0x57c   : > { %4058 = vtanh.f32 %v3209_v15  ;;  %v4055_v54 = vpop.eup %4054  ;;  %v3302_v9 = vadd.f32 1.0, %v4053_v45 }
 0x57d   : > { %4060 = vpow2.f32 %v3695_v31  ;;  %v4057_v7 = vpop.eup %4056  ;;  %v3374_v41 = vmul.f32 %v4055_v54, %v3366_v36 }
 0x57e   : > { %4062 = vrcp.f32 %v3296_v33 }
 0x57f   : > { %4064 = vrcp.f32 %v3288_v52  ;;  %v3210_v51 = vpop.trf.xlu0 }
 0x580   : > { %4066 = vtanh.f32 %v3210_v51 }
 0x581   : > { %4068 = vpow2.f32 %v3697_v19 }
 0x582   : > { %4070 = vrcp.f32 %v3298_v39 }
 0x583   : > { %4072 = vrcp.f32 %v3290_v46  ;;  %v3211_v40 = vpop.trf.xlu0 }
 0x584   : > { %4074 = vtanh.f32 %v3211_v40 }
 0x585   : > { %4076 = vpow2.f32 %v3699_v5 }
 0x586   : > { %4078 = vrcp.f32 %v3300_v26 }
 0x587   : > { %4080 = vrcp.f32 %v3292_v25  ;;  %v3212_v42 = vpop.trf.xlu0 }
 0x588   : > { %4082 = vtanh.f32 %v3212_v42 }
 0x589   : > { %v4059_v50 = vpop.eup %4058  ;;  %4084 = vrcp.f32 %v3302_v9 }
 0x58a   : > { %v4061_v18 = vpop.eup %4060  ;;  %v3382_v60 = vmul.f32 %v4059_v50, %v4057_v7 }
 0x58b   : > { %v4063_v43 = vpop.eup %4062  ;;  %v3304_v62 = vadd.f32 1.0, %v4061_v18 }
 0x58c   : > { %v4065_v16 = vpop.eup %4064  ;;  %v3390_v56 = vadd.f32 %v3382_v60, %v3374_v41  ;;  %v3376_v34 = vmul.f32 %v4063_v43, %v3368_v23 }
 0x58d   : > { %v4067_v48 = vpop.eup %4066 }
 0x58e   : > { %v4069_v11 = vpop.eup %4068  ;;  %4086 = vtanh.f32 %v3390_v56  ;;  %3414 = vst [vmem:[%s5920_s20 + $0x8] sm:$0xff] %v3390_v56  ;;  %v3384_v49 = vmul.f32 %v4067_v48, %v4065_v16 }
 0x58f   : > { %v4071_v37 = vpop.eup %4070  ;;  %4088 = vrcp.f32 %v3304_v62  ;;  %v3306_v0 = vadd.f32 1.0, %v4069_v11 }
 0x590   : > { %v4073_v32 = vpop.eup %4072  ;;  %v3392_v2 = vadd.f32 %v3384_v49, %v3376_v34  ;;  %v3378_v24 = vmul.f32 %v4071_v37, %v3370_v1 }
 0x591   : > { %v4075_v4 = vpop.eup %4074 }
 0x592   : > { %v4077_v8 = vpop.eup %4076  ;;  %4090 = vtanh.f32 %v3392_v2  ;;  %3416 = vst [vmem:[%s5920_s20 + $0x18] sm:$0xff] %v3392_v2  ;;  %v3386_v10 = vmul.f32 %v4075_v4, %v4073_v32 }
 0x593   : > { %v4079_v55 = vpop.eup %4078  ;;  %4092 = vrcp.f32 %v3306_v0  ;;  %v3308_v38 = vadd.f32 1.0, %v4077_v8 }
 0x594   : > { %v4081_v57 = vpop.eup %4080  ;;  %v3394_v12 = vadd.f32 %v3386_v10, %v3378_v24  ;;  %v3380_v13 = vmul.f32 %v4079_v55, %v3372_v44 }
 0x595   : > { %v4083_v6 = vpop.eup %4082 }
 0x596   : > { %4094 = vtanh.f32 %v3394_v12  ;;  %3418 = vst [vmem:[%s5920_s20 + $0x28] sm:$0xff] %v3394_v12  ;;  %v3388_v53 = vmul.f32 %v4083_v6, %v4081_v57  ;;  %v4085_v28 = vpop.eup %4084 }
 0x597   : > { %4096 = vrcp.f32 %v3308_v38 }
 0x598   : > { %v3396_v47 = vadd.f32 %v3388_v53, %v3380_v13 }
 0x59a   : > { %4098 = vtanh.f32 %v3396_v47  ;;  %3420 = vst [vmem:[%s5920_s20 + $0x38] sm:$0xff] %v3396_v47 }
 0x59b   : > { %v4087_v29 = vpop.eup %4086 }
 0x59c   : > { %4224 = shalt.err (!%p4221_p11)
}
 0x59d   : > { %s4225_s19 = scalar_lea.hbm %s5948_s8, 1024  ;;  %s4229_s11 = scalar_lea.hbm %s6041_s6, 2048 }
 0x59e   : > { %p4226_p3 = scmp.ne.s32.totalorder %s5948_s8, %s4225_s19  ;;  %p4230_p13 = scmp.lt.s32.totalorder %s5948_s8, %s6041_s6 }
 0x59f   : > { %p4231_p6 = scmp.lt.s32.totalorder %s4229_s11, %s4225_s19 }
 0x5a0   : > { %p4227_p4 = pnand %p4226_p3, %p6079_p7 }
 0x5a1   : > { %p4232_p12 = por %p4231_p6, %p4230_p13 }
 0x5a2   : > { %p4228_p8 = pneg %p4227_p4 }
 0x5a4   : > { %p4233_p2 = pnand %p4232_p12, %p4228_p8 }
 0x5a6   : > { %4236 = shalt.err (!%p4233_p2)
}
 0x5a7   : > { %s4334_s1 = smov 256   ;;  %v3406_v27 = vmul.f32 %v4087_v29, %v4085_v28  ;;  %v4089_v59 = vpop.eup %4088  ;;  %s3448_s23 = sshll.u32 %s5928_s27, 4  ;;  %s5990_s23 = int_to_ptr.vmem [resolvable:$true] %s3448_s23 }
 0x5a8   : > { %3895 = dma.vmem_to_hbm [thread:$0]  (%p6079_p7), %s5950_s25, 1024, %s5948_s8, %s3435_s15, %s4334_s1, %s4334_s1, %s4328_s12   ;;  %v4091_v20 = vpop.eup %4090 }
 0x5a9   : > { %3422 = vst [vmem:[%s5928_s27 + $0x8] sm:$0xff] %v3406_v27  ;;  %v3408_v58 = vmul.f32 %v4091_v20, %v4089_v59  ;;  %v4093_v17 = vpop.eup %4092  ;;  %s6080_s25 = sld [smem:[#allocation27_spill]]  ;;  %s3430_s24 = scalar_lea.sflag [#allocation6], %s4575_s17 }
 0x5aa   : > { %v4095_v21 = vpop.eup %4094  ;;  %s4237_s8 = scalar_lea.vmem %s5990_s23, 1024  ;;  %s4335_s15 = smov [#allocation12]  }
 0x5ab   : > { %3424 = vst [vmem:[%s5928_s27 + $0x18] sm:$0xff] %v3408_v58  ;;  %v3410_v63 = vmul.f32 %v4095_v21, %v4093_v17  ;;  %v4097_v61 = vpop.eup %4096  ;;  %p4238_p1 = scmp.ne.s32.totalorder %s5990_s23, %s4237_s8  ;;  %s4241_s26 = sshll.u32 %s4335_s15, 4  ;;  %s4242_s26 = int_to_ptr.vmem [resolvable:$false] %s4241_s26 }
 0x5ac   : > { %v4099_v3 = vpop.eup %4098  ;;  %s4243_s10 = scalar_lea.vmem %s4242_s26, 2048  ;;  %p4244_p9 = scmp.lt.s32.totalorder %s5990_s23, %s4242_s26 }
 0x5ad   : > { %3426 = vst [vmem:[%s5928_s27 + $0x28] sm:$0xff] %v3410_v63  ;;  %v3412_v31 = vmul.f32 %v4099_v3, %v4097_v61  ;;  %p4239_p5 = pnand %p4238_p1, %p6079_p7  ;;  %p4245_p0 = scmp.lt.s32.totalorder %s4243_s10, %s4237_s8 }
 0x5af   : > { %s5988_s29 = scalar_lea.hbm %s6080_s25, %s3711_s13  ;;  %3428 = vst [vmem:[%s5928_s27 + $0x38] sm:$0xff] %v3412_v31  ;;  %p4240_p10 = pneg %p4239_p5 }
 0x5b0   : > { %p4246_p11 = por %p4245_p0, %p4244_p9 }
 0x5b2   : > { %p4247_p3 = pnand %p4246_p11, %p4240_p10 }
 0x5b4   : > { %4250 = shalt.err (!%p4247_p3)
}
 0x5b5   : > { %s4251_s27 = scalar_lea.hbm %s5988_s29, 1024  ;;  %s4255_s30 = scalar_lea.hbm %s6080_s25, 2048 }
 0x5b6   : > { %p4252_p4 = scmp.ne.s32.totalorder %s5988_s29, %s4251_s27  ;;  %p4256_p6 = scmp.lt.s32.totalorder %s5988_s29, %s6080_s25 }
 0x5b7   : > { %p4257_p12 = scmp.lt.s32.totalorder %s4255_s30, %s4251_s27 }
 0x5b8   : > { %p4253_p8 = pnand %p4252_p4, %p6079_p7 }
 0x5b9   : > { %p4258_p2 = por %p4257_p12, %p4256_p6 }
 0x5ba   : > { %p4254_p13 = pneg %p4253_p8 }
 0x5bc   : > { %p4259_p1 = pnand %p4258_p2, %p4254_p13 }
 0x5be   : > { %4262 = shalt.err (!%p4259_p1)
}
 0x5bf   : > { %3894 = dma.vmem_to_hbm [thread:$0]  (%p6079_p7), %s5990_s23, 1024, %s5988_s29, %s3430_s24, %s4334_s1, %s4334_s1, %s4328_s12  }
 0x5c0 PF: > { %s6081_s19 = sld [smem:[#allocation20_spill]] }
 0x5c1   : > { %s6082_s5 = sld [smem:[#allocation25_spill]] }
 0x5c2   : > { %s6083_s21 = sld [smem:[#allocation22_spill]] }
 0x5c6   : > { %s3479_s11 = sand.u32 1, %s6081_s19  }
 0x5c7   : > { %p6084_p5 = scmp.ne.s32.totalorder %s6082_s5, 0  ;;  %s3480_s28 = scalar_lea.sflag [#allocation6], %s3479_s11 }
 0x5c8   : > { %p6085_p10 = scmp.ge.s32.totalorder %s6083_s21, 2 }
 0x5ca   : > { %p3913_p9 = pnand %p6085_p10, %p6084_p5 }
 0x5cc   : > { %p3914_p0 = pneg %p3913_p9 }
 0x5ce   : > { %4292 = dma.done.wait (%p3914_p0), %s3480_s28, 1024  }
 0x5cf   : > { %4294 = vsyncadd (%p3914_p0), %s3480_s28, 4294966272  ;;  %s3489_s16 = scalar_lea.sflag [#allocation14], %s3479_s11 }
 0x5d0   : > { %4296 = dma.done.wait (%p3914_p0), %s3489_s16, 1024  }
 0x5d1   : > { %4298 = vsyncadd (%p3914_p0), %s3489_s16, 4294966272  ;;  %s6086_s24 = sld [smem:[#allocation23_spill]]  ;;  %s6089_s21 = smov %s4305_s22 }
 0x5d2   : > { %s6087_s7 = sld [smem:[#allocation21_spill]] }
 0x5d3   : > { %s6088_s23 = sld [smem:[#allocation24_spill]] }
 0x5d7   : > { %p27_p7 = scmp.ge.s32.totalorder %s6086_s24, 4  }
 0x5d8   : > { %s6090_s22 = smov %s6087_s7 }
 0x5d9   :  { %29 = sbr.rel (!%p27_p7) target bundleno = 13 (0xd), region = 132 }
 0x5de   :  { %3494 = vsyncpa [#allocation5], 1 }
 0x5df   :  { %3496 = vsyncpa [#allocation5 + $0x1], 1 }
 0x5e0   :  { %3497 = vsyncpa [#allocation8], 1 }
 0x5e1   :  { %3499 = vsyncpa [#allocation8 + $0x1], 1 }
 0x5e2   :  { %3500 = vsyncpa [#allocation11], 1 }
 0x5e3   :  { %3501 = vsyncpa [#allocation6], 1 }
 0x5e4   :  { %3503 = vsyncpa [#allocation6 + $0x1], 1 }
 0x5e5   :  { %3504 = vsyncpa [#allocation14], 1 }
 0x5e6   :  { %3506 = vsyncpa [#allocation14 + $0x1], 1 }

</bundles_post_ra>
